<compile_context>
chip_gen: v7x
topology: tpu7x:2x2x1
jax: 0.10.0
libtpu: 0.0.40
codegen_flags: <defaults>
</compile_context>

<pallas_src>
import math

import jax
import jax.numpy as jnp
from jax.experimental import pallas as pl
from jax.experimental.pallas import tpu as pltpu

BN_EPS = 1e-5
HIDDEN = 256
LSTM_IN = 1120                      # 32 * 5 * 7, fixed by the architecture
XH = LSTM_IN + HIDDEN               # 1376  ([x, h] concatenation)
K_BLOCKS = 4                        # grid steps over the LSTM contraction dim
XH_PAD = 1536                       # 4 * 384, zero-padded contraction dim
K_BLK = XH_PAD // K_BLOCKS          # 384 (multiple of 128)


# --------------------------------------------------------------------------
# Pallas kernels
# --------------------------------------------------------------------------
def conv_bn_relu_kernel(w_ref, p_ref, b_ref, g_ref, bb_ref, o_ref):
    """Fused im2col-matmul conv + training-mode BatchNorm2d + ReLU (flipped).

    w_ref:  (C, K)  bf16   conv weight, PyTorch flatten order (C_in, kh, kw)
    p_ref:  (K, P)  bf16   im2col patches, columns in (H, W) order
    b_ref:  (C, 1)  f32    conv bias
    g_ref:  (C, 1)  f32    BN weight (gamma)
    bb_ref: (C, 1)  f32    BN bias (beta)
    o_ref:  (C, P)  bf16   relu(bn(conv(x))) — already flattened CHW
    """
    y = jnp.dot(w_ref[...], p_ref[...], preferred_element_type=jnp.float32)
    y = y + b_ref[...]
    # BatchNorm2d (training mode): per-channel stats over N*H*W (N=1 -> over P),
    # biased variance, eps = 1e-5.  All BN math in f32.
    mean = jnp.mean(y, axis=1, keepdims=True)
    var = jnp.mean(jnp.square(y - mean), axis=1, keepdims=True)
    y = (y - mean) * jax.lax.rsqrt(var + BN_EPS)
    y = jnp.maximum(y * g_ref[...] + bb_ref[...], 0.0)
    o_ref[...] = y.astype(o_ref.dtype)


def lstm_head_kernel(xh_ref, w_ref, b_ref, c_ref, wh_ref, bh_ref,
                     critic_ref, actor_ref, h_out_ref, c_out_ref, acc_ref):
    """LSTMCell + critic/actor heads, fused; contraction dim streamed by grid.

    Grid: (K_BLOCKS,) over the zero-padded [x, h] contraction dimension.

    xh_ref: (1, K_BLK)        bf16   slice of [x, h, 0-pad]
    w_ref:  (K_BLK, 1024)     bf16   slice of [W_ih; W_hh; 0-pad]^T, gates i,f,g,o
    b_ref:  (1, 1024)         f32    bias_ih + bias_hh             (resident)
    c_ref:  (1, 256)          f32    cx                            (resident)
    wh_ref: (256, 1+A)        bf16   [critic_w; actor_w]^T         (resident)
    bh_ref: (1, 1+A)          f32    [critic_b, actor_b]           (resident)
    acc_ref:(1, 1024)         f32    VMEM gate accumulator
    """
    j = pl.program_id(0)

    @pl.when(j == 0)
    def _():
        acc_ref[...] = jnp.zeros_like(acc_ref)

    acc_ref[...] += jnp.dot(xh_ref[...], w_ref[...],
                            preferred_element_type=jnp.float32)

    @pl.when(j == pl.num_programs(0) - 1)
    def _():
        gates = acc_ref[...] + b_ref[...]
        i_g = jax.nn.sigmoid(gates[:, 0 * HIDDEN:1 * HIDDEN])
        f_g = jax.nn.sigmoid(gates[:, 1 * HIDDEN:2 * HIDDEN])
        g_g = jnp.tanh(gates[:, 2 * HIDDEN:3 * HIDDEN])
        o_g = jax.nn.sigmoid(gates[:, 3 * HIDDEN:4 * HIDDEN])

        c_new = f_g * c_ref[...] + i_g * g_g
        h_new = o_g * jnp.tanh(c_new)
        c_out_ref[...] = c_new
        h_out_ref[...] = h_new

        head = (jnp.dot(h_new.astype(wh_ref.dtype), wh_ref[...],
                        preferred_element_type=jnp.float32) + bh_ref[...])
        n_act = actor_ref.shape[1]
        critic_ref[...] = head[:, 0:1]
        actor_ref[...] = head[:, 1:1 + n_act]


# --------------------------------------------------------------------------
# pallas_call wrappers
# --------------------------------------------------------------------------
_VMEM = pl.BlockSpec(memory_space=pltpu.MemorySpace.VMEM)


def conv_bn_relu(w, patches, b, gamma, beta):
    C = w.shape[0]
    P = patches.shape[1]
    return pl.pallas_call(
        conv_bn_relu_kernel,
        out_shape=jax.ShapeDtypeStruct((C, P), jnp.bfloat16),
        in_specs=[_VMEM] * 5,
        out_specs=_VMEM,
    )(w, patches, b, gamma, beta)


def lstm_head(xh, w_xh, b_lstm, cx, w_head, b_head):
    head_n = w_head.shape[1]
    n_actions = head_n - 1
    out_shape = (
        jax.ShapeDtypeStruct((1, 1), jnp.float32),          # critic
        jax.ShapeDtypeStruct((1, n_actions), jnp.float32),  # actor
        jax.ShapeDtypeStruct((1, HIDDEN), jnp.float32),     # hx'
        jax.ShapeDtypeStruct((1, HIDDEN), jnp.float32),     # cx'
    )
    return pl.pallas_call(
        lstm_head_kernel,
        out_shape=out_shape,
        grid=(K_BLOCKS,),
        in_specs=[
            pl.BlockSpec((1, K_BLK), lambda j: (0, j)),            # xh slice
            pl.BlockSpec((K_BLK, 4 * HIDDEN), lambda j: (j, 0)),   # weight slab
            pl.BlockSpec((1, 4 * HIDDEN), lambda j: (0, 0)),       # bias
            pl.BlockSpec((1, HIDDEN), lambda j: (0, 0)),           # cx
            pl.BlockSpec((HIDDEN, head_n), lambda j: (0, 0)),      # head weights
            pl.BlockSpec((1, head_n), lambda j: (0, 0)),           # head biases
        ],
        out_specs=(
            pl.BlockSpec((1, 1), lambda j: (0, 0)),
            pl.BlockSpec((1, n_actions), lambda j: (0, 0)),
            pl.BlockSpec((1, HIDDEN), lambda j: (0, 0)),
            pl.BlockSpec((1, HIDDEN), lambda j: (0, 0)),
        ),
        scratch_shapes=[pltpu.VMEM((1, 4 * HIDDEN), jnp.float32)],
        compiler_params=pltpu.CompilerParams(
            dimension_semantics=("arbitrary",)),
    )(xh, w_xh, b_lstm, cx, w_head, b_head)


# --------------------------------------------------------------------------
# JAX glue: im2col directly in (K, P) order
# --------------------------------------------------------------------------
def im2col_kp(x, kh, kw, stride, pad_h, pad_w):
    """x: (C, H, W) -> patches (C*kh*kw, Ho*Wo).

    Rows ordered (c, di, dj) — matches PyTorch weight.reshape(C_out, -1) —
    columns in (Ho, Wo) raster order, so conv output (C_out, Ho*Wo) is already
    the flattened CHW feature map.
    """
    if pad_h or pad_w:
        x = jnp.pad(x, ((0, 0), (pad_h, pad_h), (pad_w, pad_w)))
    C, H, W = x.shape
    Ho = (H - kh) // stride + 1
    Wo = (W - kw) // stride + 1
    rows = []
    for di in range(kh):
        for dj in range(kw):
            rows.append(x[:, di:di + stride * Ho:stride, dj:dj + stride * Wo:stride])
    p = jnp.stack(rows, axis=1)                  # (C, kh*kw, Ho, Wo)
    return p.reshape(C * kh * kw, Ho * Wo), Ho, Wo


# --------------------------------------------------------------------------
# Parameter initialization (deterministic, mirrors the PyTorch init scheme)
# --------------------------------------------------------------------------
def _conv_weight(key, cout, cin, kh, kw):
    fan_in = cin * kh * kw
    fan_out = kh * kw * cout
    bound = math.sqrt(6.0 / (fan_in + fan_out))
    return jax.random.uniform(key, (cout, cin, kh, kw), jnp.float32, -bound, bound)


def _norm_col_init(key, shape, std):
    x = jax.random.normal(key, shape, jnp.float32)
    y = jnp.sum(x * x, axis=1, keepdims=True)
    return x * (std / jnp.sqrt(y))


def init_params(key, n_channels, n_actions):
    ks = jax.random.split(key, 8)
    p = {}

    # conv layers: weights uniform(+-sqrt(6/(fan_in+fan_out))), bias 0; bf16 for MXU
    w1 = _conv_weight(ks[0], 16, n_channels, 8, 8)
    w2 = _conv_weight(ks[1], 32, 16, 6, 6)
    w3 = _conv_weight(ks[2], 32, 32, 4, 4)
    p["w1"] = w1.reshape(16, -1).astype(jnp.bfloat16)
    p["w2"] = w2.reshape(32, -1).astype(jnp.bfloat16)
    p["w3"] = w3.reshape(32, -1).astype(jnp.bfloat16)
    for name, c in (("1", 16), ("2", 32), ("3", 32)):
        p["b" + name] = jnp.zeros((c, 1), jnp.float32)    # conv bias
        p["g" + name] = jnp.ones((c, 1), jnp.float32)     # BN gamma
        p["bb" + name] = jnp.zeros((c, 1), jnp.float32)   # BN beta

    # LSTMCell: uniform(+-1/sqrt(hidden)); biases explicitly zeroed in __init__.
    k_lstm = 1.0 / math.sqrt(HIDDEN)
    wih = jax.random.uniform(ks[3], (4 * HIDDEN, LSTM_IN), jnp.float32, -k_lstm, k_lstm)
    whh = jax.random.uniform(ks[4], (4 * HIDDEN, HIDDEN), jnp.float32, -k_lstm, k_lstm)
    # Fused + zero-padded [W_ih; W_hh; 0]^T, column order = gates (i, f, g, o).
    w_xh = jnp.concatenate(
        [wih.T, whh.T, jnp.zeros((XH_PAD - XH, 4 * HIDDEN), jnp.float32)], axis=0)
    p["w_xh"] = w_xh.astype(jnp.bfloat16)                 # (1536, 1024)
    p["b_lstm"] = jnp.zeros((1, 4 * HIDDEN), jnp.float32)  # bias_ih + bias_hh = 0

    # critic / actor heads: norm_col_init weights, zero bias; packed into one matrix.
    wc = _norm_col_init(ks[5], (1, HIDDEN), 1.0)
    wa = _norm_col_init(ks[6], (n_actions, HIDDEN), 0.01)
    p["w_head"] = jnp.concatenate([wc, wa], axis=0).T.astype(jnp.bfloat16)  # (256, 1+A)
    p["b_head"] = jnp.zeros((1, 1 + n_actions), jnp.float32)
    return p


# --------------------------------------------------------------------------
# Full forward pass
# --------------------------------------------------------------------------
def a3c_forward(params, x, hx, cx):
    # x: (1, C, 164, 196) NCHW, batch = 1 (as required by x.view(1, -1))
    x0 = x[0].astype(jnp.bfloat16)

    p1, h1, w1 = im2col_kp(x0, 8, 8, 4, 0, 0)                 # (C*64, 1920)
    y1 = conv_bn_relu(params["w1"], p1, params["b1"], params["g1"], params["bb1"])
    # y1: (16, 1920) == flattened (16, 40, 48) CHW — reshape is free.

    p2, h2, w2 = im2col_kp(y1.reshape(16, h1, w1), 6, 6, 3, 0, 2)  # (576, 192)
    y2 = conv_bn_relu(params["w2"], p2, params["b2"], params["g2"], params["bb2"])
    # y2: (32, 192) == flattened (32, 12, 16)

    p3, h3, w3 = im2col_kp(y2.reshape(32, h2, w2), 4, 4, 2, 0, 0)  # (512, 35)
    y3 = conv_bn_relu(params["w3"], p3, params["b3"], params["g3"], params["bb3"])
    # y3: (32, 35) == flattened (32, 5, 7)

    flat = y3.reshape(1, -1)               # (1, 1120), same order as torch .view(1, -1)
    xh = jnp.concatenate(
        [flat, hx.astype(jnp.bfloat16),
         jnp.zeros((1, XH_PAD - XH), jnp.bfloat16)], axis=1)       # (1, 1536)

    critic, actor, h_new, c_new = lstm_head(
        xh, params["w_xh"], params["b_lstm"], cx, params["w_head"], params["b_head"])
    return critic, actor, (h_new, c_new)


# --------------------------------------------------------------------------
# Demo
# --------------------------------------------------------------------------
if __name__ == "__main__":
    n_channels = 4
    n_actions = 6

    key = jax.random.PRNGKey(0)
    k_param, k_x, k_h, k_c = jax.random.split(key, 4)

    params = init_params(k_param, n_channels, n_actions)

    # Minimum spatial size consistent with LSTM input dim 1120 (= 32*5*7).
    x = jax.random.normal(k_x, (1, n_channels, 164, 196), jnp.float32)
    hx = jax.random.normal(k_h, (1, HIDDEN), jnp.float32) * 0.1
    cx = jax.random.normal(k_c, (1, HIDDEN), jnp.float32) * 0.1

    fwd = jax.jit(a3c_forward)
    critic, actor, (h_new, c_new) = fwd(params, x, hx, cx)
    jax.block_until_ready((critic, actor, h_new, c_new))

    assert critic.shape == (1, 1)
    assert actor.shape == (1, n_actions)
    assert h_new.shape == (1, HIDDEN) and c_new.shape == (1, HIDDEN)
    print("KERNEL_OK")
</pallas_src>

<mosaic_0001>
module attributes {stable_mosaic.version = 11 : i64} {
  func.func @conv_bn_relu_kernel(%arg0: memref<16x256xbf16, #tpu.memory_space<vmem>>, %arg1: memref<256x1920xbf16, #tpu.memory_space<vmem>>, %arg2: memref<16x1xf32, #tpu.memory_space<vmem>>, %arg3: memref<16x1xf32, #tpu.memory_space<vmem>>, %arg4: memref<16x1xf32, #tpu.memory_space<vmem>>, %arg5: memref<16x1920xbf16, #tpu.memory_space<vmem>>) attributes {dimension_semantics = [], scalar_prefetch = 0 : i64, scratch_operands = 0 : i64, tpu.core_type = #tpu.core_type<tc>} {
    %c0 = arith.constant 0 : index
    %c0_0 = arith.constant 0 : index
    %0 = vector.load %arg0[%c0, %c0_0] : memref<16x256xbf16, #tpu.memory_space<vmem>>, vector<16x256xbf16>
    %c0_1 = arith.constant 0 : index
    %c0_2 = arith.constant 0 : index
    %1 = vector.load %arg1[%c0_1, %c0_2] : memref<256x1920xbf16, #tpu.memory_space<vmem>>, vector<256x1920xbf16>
    %cst = arith.constant dense<0.000000e+00> : vector<16x1920xf32>
    %2 = tpu.matmul %0, %1, %cst {dimension_numbers = #tpu.dot_dimension_numbers<[1], [0], [0], [1], [0, 0, 1, 1], [], []>} : vector<16x256xbf16>, vector<256x1920xbf16>, vector<16x1920xf32> -> vector<16x1920xf32>
    %c0_3 = arith.constant 0 : index
    %c0_4 = arith.constant 0 : index
    %3 = vector.load %arg2[%c0_3, %c0_4] : memref<16x1xf32, #tpu.memory_space<vmem>>, vector<16x1xf32>
    %4 = vector.broadcast %3 : vector<16x1xf32> to vector<16x1920xf32>
    %5 = arith.addf %2, %4 : vector<16x1920xf32>
    %cst_5 = arith.constant dense<0.000000e+00> : vector<16xf32>
    %6 = vector.multi_reduction <add>, %5, %cst_5 [1] : vector<16x1920xf32> to vector<16xf32>
    %7 = vector.shape_cast %6 : vector<16xf32> to vector<16x1xf32>
    %cst_6 = arith.constant 1.920000e+03 : f32
    %8 = vector.broadcast %cst_6 : f32 to vector<16x1xf32>
    %9 = arith.divf %7, %8 : vector<16x1xf32>
    %10 = vector.broadcast %9 : vector<16x1xf32> to vector<16x1920xf32>
    %11 = arith.subf %5, %10 : vector<16x1920xf32>
    %12 = arith.mulf %11, %11 : vector<16x1920xf32>
    %cst_7 = arith.constant dense<0.000000e+00> : vector<16xf32>
    %13 = vector.multi_reduction <add>, %12, %cst_7 [1] : vector<16x1920xf32> to vector<16xf32>
    %14 = vector.shape_cast %13 : vector<16xf32> to vector<16x1xf32>
    %cst_8 = arith.constant 1.920000e+03 : f32
    %15 = vector.broadcast %cst_8 : f32 to vector<16x1xf32>
    %16 = arith.divf %14, %15 : vector<16x1xf32>
    %17 = vector.broadcast %9 : vector<16x1xf32> to vector<16x1920xf32>
    %18 = arith.subf %5, %17 : vector<16x1920xf32>
    %cst_9 = arith.constant 9.99999974E-6 : f32
    %19 = vector.broadcast %cst_9 : f32 to vector<16x1xf32>
    %20 = arith.addf %16, %19 : vector<16x1xf32>
    %21 = math.rsqrt %20 : vector<16x1xf32>
    %22 = vector.broadcast %21 : vector<16x1xf32> to vector<16x1920xf32>
    %23 = arith.mulf %18, %22 : vector<16x1920xf32>
    %c0_10 = arith.constant 0 : index
    %c0_11 = arith.constant 0 : index
    %24 = vector.load %arg3[%c0_10, %c0_11] : memref<16x1xf32, #tpu.memory_space<vmem>>, vector<16x1xf32>
    %25 = vector.broadcast %24 : vector<16x1xf32> to vector<16x1920xf32>
    %26 = arith.mulf %23, %25 : vector<16x1920xf32>
    %c0_12 = arith.constant 0 : index
    %c0_13 = arith.constant 0 : index
    %27 = vector.load %arg4[%c0_12, %c0_13] : memref<16x1xf32, #tpu.memory_space<vmem>>, vector<16x1xf32>
    %28 = vector.broadcast %27 : vector<16x1xf32> to vector<16x1920xf32>
    %29 = arith.addf %26, %28 : vector<16x1920xf32>
    %cst_14 = arith.constant 0.000000e+00 : f32
    %30 = vector.broadcast %cst_14 : f32 to vector<16x1920xf32>
    %31 = arith.maximumf %29, %30 : vector<16x1920xf32>
    %32 = arith.truncf %31 : vector<16x1920xf32> to vector<16x1920xbf16>
    %c0_15 = arith.constant 0 : index
    %c0_16 = arith.constant 0 : index
    %33 = vector.load %arg5[%c0_15, %c0_16] : memref<16x1920xbf16, #tpu.memory_space<vmem>>, vector<16x1920xbf16>
    tpu.vector_store %arg5[%c0_15, %c0_16], %32 {strides = array<i32>} : memref<16x1920xbf16, #tpu.memory_space<vmem>>, vector<16x1920xbf16>,
    return
  }
}

module attributes {stable_mosaic.version = 11 : i64} {
  func.func @conv_bn_relu_kernel(%arg0: memref<32x576xbf16, #tpu.memory_space<vmem>>, %arg1: memref<576x192xbf16, #tpu.memory_space<vmem>>, %arg2: memref<32x1xf32, #tpu.memory_space<vmem>>, %arg3: memref<32x1xf32, #tpu.memory_space<vmem>>, %arg4: memref<32x1xf32, #tpu.memory_space<vmem>>, %arg5: memref<32x192xbf16, #tpu.memory_space<vmem>>) attributes {dimension_semantics = [], scalar_prefetch = 0 : i64, scratch_operands = 0 : i64, tpu.core_type = #tpu.core_type<tc>} {
    %c0 = arith.constant 0 : index
    %c0_0 = arith.constant 0 : index
    %0 = vector.load %arg0[%c0, %c0_0] : memref<32x576xbf16, #tpu.memory_space<vmem>>, vector<32x576xbf16>
    %c0_1 = arith.constant 0 : index
    %c0_2 = arith.constant 0 : index
    %1 = vector.load %arg1[%c0_1, %c0_2] : memref<576x192xbf16, #tpu.memory_space<vmem>>, vector<576x192xbf16>
    %cst = arith.constant dense<0.000000e+00> : vector<32x192xf32>
    %2 = tpu.matmul %0, %1, %cst {dimension_numbers = #tpu.dot_dimension_numbers<[1], [0], [0], [1], [0, 0, 1, 1], [], []>} : vector<32x576xbf16>, vector<576x192xbf16>, vector<32x192xf32> -> vector<32x192xf32>
    %c0_3 = arith.constant 0 : index
    %c0_4 = arith.constant 0 : index
    %3 = vector.load %arg2[%c0_3, %c0_4] : memref<32x1xf32, #tpu.memory_space<vmem>>, vector<32x1xf32>
    %4 = vector.broadcast %3 : vector<32x1xf32> to vector<32x192xf32>
    %5 = arith.addf %2, %4 : vector<32x192xf32>
    %cst_5 = arith.constant dense<0.000000e+00> : vector<32xf32>
    %6 = vector.multi_reduction <add>, %5, %cst_5 [1] : vector<32x192xf32> to vector<32xf32>
    %7 = vector.shape_cast %6 : vector<32xf32> to vector<32x1xf32>
    %cst_6 = arith.constant 1.920000e+02 : f32
    %8 = vector.broadcast %cst_6 : f32 to vector<32x1xf32>
    %9 = arith.divf %7, %8 : vector<32x1xf32>
    %10 = vector.broadcast %9 : vector<32x1xf32> to vector<32x192xf32>
    %11 = arith.subf %5, %10 : vector<32x192xf32>
    %12 = arith.mulf %11, %11 : vector<32x192xf32>
    %cst_7 = arith.constant dense<0.000000e+00> : vector<32xf32>
    %13 = vector.multi_reduction <add>, %12, %cst_7 [1] : vector<32x192xf32> to vector<32xf32>
    %14 = vector.shape_cast %13 : vector<32xf32> to vector<32x1xf32>
    %cst_8 = arith.constant 1.920000e+02 : f32
    %15 = vector.broadcast %cst_8 : f32 to vector<32x1xf32>
    %16 = arith.divf %14, %15 : vector<32x1xf32>
    %17 = vector.broadcast %9 : vector<32x1xf32> to vector<32x192xf32>
    %18 = arith.subf %5, %17 : vector<32x192xf32>
    %cst_9 = arith.constant 9.99999974E-6 : f32
    %19 = vector.broadcast %cst_9 : f32 to vector<32x1xf32>
    %20 = arith.addf %16, %19 : vector<32x1xf32>
    %21 = math.rsqrt %20 : vector<32x1xf32>
    %22 = vector.broadcast %21 : vector<32x1xf32> to vector<32x192xf32>
    %23 = arith.mulf %18, %22 : vector<32x192xf32>
    %c0_10 = arith.constant 0 : index
    %c0_11 = arith.constant 0 : index
    %24 = vector.load %arg3[%c0_10, %c0_11] : memref<32x1xf32, #tpu.memory_space<vmem>>, vector<32x1xf32>
    %25 = vector.broadcast %24 : vector<32x1xf32> to vector<32x192xf32>
    %26 = arith.mulf %23, %25 : vector<32x192xf32>
    %c0_12 = arith.constant 0 : index
    %c0_13 = arith.constant 0 : index
    %27 = vector.load %arg4[%c0_12, %c0_13] : memref<32x1xf32, #tpu.memory_space<vmem>>, vector<32x1xf32>
    %28 = vector.broadcast %27 : vector<32x1xf32> to vector<32x192xf32>
    %29 = arith.addf %26, %28 : vector<32x192xf32>
    %cst_14 = arith.constant 0.000000e+00 : f32
    %30 = vector.broadcast %cst_14 : f32 to vector<32x192xf32>
    %31 = arith.maximumf %29, %30 : vector<32x192xf32>
    %32 = arith.truncf %31 : vector<32x192xf32> to vector<32x192xbf16>
    %c0_15 = arith.constant 0 : index
    %c0_16 = arith.constant 0 : index
    %33 = vector.load %arg5[%c0_15, %c0_16] : memref<32x192xbf16, #tpu.memory_space<vmem>>, vector<32x192xbf16>
    tpu.vector_store %arg5[%c0_15, %c0_16], %32 {strides = array<i32>} : memref<32x192xbf16, #tpu.memory_space<vmem>>, vector<32x192xbf16>,
    return
  }
}

module attributes {stable_mosaic.version = 11 : i64} {
  func.func @conv_bn_relu_kernel(%arg0: memref<32x512xbf16, #tpu.memory_space<vmem>>, %arg1: memref<512x35xbf16, #tpu.memory_space<vmem>>, %arg2: memref<32x1xf32, #tpu.memory_space<vmem>>, %arg3: memref<32x1xf32, #tpu.memory_space<vmem>>, %arg4: memref<32x1xf32, #tpu.memory_space<vmem>>, %arg5: memref<32x35xbf16, #tpu.memory_space<vmem>>) attributes {dimension_semantics = [], scalar_prefetch = 0 : i64, scratch_operands = 0 : i64, tpu.core_type = #tpu.core_type<tc>} {
    %c0 = arith.constant 0 : index
    %c0_0 = arith.constant 0 : index
    %0 = vector.load %arg0[%c0, %c0_0] : memref<32x512xbf16, #tpu.memory_space<vmem>>, vector<32x512xbf16>
    %c0_1 = arith.constant 0 : index
    %c0_2 = arith.constant 0 : index
    %1 = vector.load %arg1[%c0_1, %c0_2] : memref<512x35xbf16, #tpu.memory_space<vmem>>, vector<512x35xbf16>
    %cst = arith.constant dense<0.000000e+00> : vector<32x35xf32>
    %2 = tpu.matmul %0, %1, %cst {dimension_numbers = #tpu.dot_dimension_numbers<[1], [0], [0], [1], [0, 0, 1, 1], [], []>} : vector<32x512xbf16>, vector<512x35xbf16>, vector<32x35xf32> -> vector<32x35xf32>
    %c0_3 = arith.constant 0 : index
    %c0_4 = arith.constant 0 : index
    %3 = vector.load %arg2[%c0_3, %c0_4] : memref<32x1xf32, #tpu.memory_space<vmem>>, vector<32x1xf32>
    %4 = vector.broadcast %3 : vector<32x1xf32> to vector<32x35xf32>
    %5 = arith.addf %2, %4 : vector<32x35xf32>
    %cst_5 = arith.constant dense<0.000000e+00> : vector<32xf32>
    %6 = vector.multi_reduction <add>, %5, %cst_5 [1] : vector<32x35xf32> to vector<32xf32>
    %7 = vector.shape_cast %6 : vector<32xf32> to vector<32x1xf32>
    %cst_6 = arith.constant 3.500000e+01 : f32
    %8 = vector.broadcast %cst_6 : f32 to vector<32x1xf32>
    %9 = arith.divf %7, %8 : vector<32x1xf32>
    %10 = vector.broadcast %9 : vector<32x1xf32> to vector<32x35xf32>
    %11 = arith.subf %5, %10 : vector<32x35xf32>
    %12 = arith.mulf %11, %11 : vector<32x35xf32>
    %cst_7 = arith.constant dense<0.000000e+00> : vector<32xf32>
    %13 = vector.multi_reduction <add>, %12, %cst_7 [1] : vector<32x35xf32> to vector<32xf32>
    %14 = vector.shape_cast %13 : vector<32xf32> to vector<32x1xf32>
    %cst_8 = arith.constant 3.500000e+01 : f32
    %15 = vector.broadcast %cst_8 : f32 to vector<32x1xf32>
    %16 = arith.divf %14, %15 : vector<32x1xf32>
    %17 = vector.broadcast %9 : vector<32x1xf32> to vector<32x35xf32>
    %18 = arith.subf %5, %17 : vector<32x35xf32>
    %cst_9 = arith.constant 9.99999974E-6 : f32
    %19 = vector.broadcast %cst_9 : f32 to vector<32x1xf32>
    %20 = arith.addf %16, %19 : vector<32x1xf32>
    %21 = math.rsqrt %20 : vector<32x1xf32>
    %22 = vector.broadcast %21 : vector<32x1xf32> to vector<32x35xf32>
    %23 = arith.mulf %18, %22 : vector<32x35xf32>
    %c0_10 = arith.constant 0 : index
    %c0_11 = arith.constant 0 : index
    %24 = vector.load %arg3[%c0_10, %c0_11] : memref<32x1xf32, #tpu.memory_space<vmem>>, vector<32x1xf32>
    %25 = vector.broadcast %24 : vector<32x1xf32> to vector<32x35xf32>
    %26 = arith.mulf %23, %25 : vector<32x35xf32>
    %c0_12 = arith.constant 0 : index
    %c0_13 = arith.constant 0 : index
    %27 = vector.load %arg4[%c0_12, %c0_13] : memref<32x1xf32, #tpu.memory_space<vmem>>, vector<32x1xf32>
    %28 = vector.broadcast %27 : vector<32x1xf32> to vector<32x35xf32>
    %29 = arith.addf %26, %28 : vector<32x35xf32>
    %cst_14 = arith.constant 0.000000e+00 : f32
    %30 = vector.broadcast %cst_14 : f32 to vector<32x35xf32>
    %31 = arith.maximumf %29, %30 : vector<32x35xf32>
    %32 = arith.truncf %31 : vector<32x35xf32> to vector<32x35xbf16>
    %c0_15 = arith.constant 0 : index
    %c0_16 = arith.constant 0 : index
    %33 = vector.load %arg5[%c0_15, %c0_16] : memref<32x35xbf16, #tpu.memory_space<vmem>>, vector<32x35xbf16>
    tpu.vector_store %arg5[%c0_15, %c0_16], %32 {strides = array<i32>} : memref<32x35xbf16, #tpu.memory_space<vmem>>, vector<32x35xbf16>,
    return
  }
}

module attributes {stable_mosaic.version = 11 : i64} {
  func.func @lstm_head_kernel(%arg0: i32, %arg1: memref<1x384xbf16, #tpu.memory_space<vmem>>, %arg2: memref<384x1024xbf16, #tpu.memory_space<vmem>>, %arg3: memref<1x1024xf32, #tpu.memory_space<vmem>>, %arg4: memref<1x256xf32, #tpu.memory_space<vmem>>, %arg5: memref<256x7xbf16, #tpu.memory_space<vmem>>, %arg6: memref<1x7xf32, #tpu.memory_space<vmem>>, %arg7: memref<1x1xf32, #tpu.memory_space<vmem>>, %arg8: memref<1x6xf32, #tpu.memory_space<vmem>>, %arg9: memref<1x256xf32, #tpu.memory_space<vmem>>, %arg10: memref<1x256xf32, #tpu.memory_space<vmem>>, %arg11: memref<1x1024xf32, #tpu.memory_space<vmem>>) attributes {dimension_semantics = [#tpu.dimension_semantics<arbitrary>], iteration_bounds = array<i64: 4>, scalar_prefetch = 0 : i64, scratch_operands = 1 : i64, tpu.core_type = #tpu.core_type<tc>, window_params = [{transform_indices = @transform_0, window_bounds = array<i64: 1, 384>}, {transform_indices = @transform_1, window_bounds = array<i64: 384, 1024>}, {pipeline_mode = #tpu.pipeline_mode<synchronous>, transform_indices = @transform_2, window_bounds = array<i64: 1, 1024>}, {pipeline_mode = #tpu.pipeline_mode<synchronous>, transform_indices = @transform_3, window_bounds = array<i64: 1, 256>}, {pipeline_mode = #tpu.pipeline_mode<synchronous>, transform_indices = @transform_4, window_bounds = array<i64: 256, 7>}, {pipeline_mode = #tpu.pipeline_mode<synchronous>, transform_indices = @transform_5, window_bounds = array<i64: 1, 7>}, {pipeline_mode = #tpu.pipeline_mode<synchronous>, transform_indices = @transform_6, window_bounds = array<i64: 1, 1>}, {pipeline_mode = #tpu.pipeline_mode<synchronous>, transform_indices = @transform_7, window_bounds = array<i64: 1, 6>}, {pipeline_mode = #tpu.pipeline_mode<synchronous>, transform_indices = @transform_8, window_bounds = array<i64: 1, 256>}, {pipeline_mode = #tpu.pipeline_mode<synchronous>, transform_indices = @transform_9, window_bounds = array<i64: 1, 256>}]} {
    %c0_i32 = arith.constant 0 : i32
    %0 = arith.cmpi eq, %arg0, %c0_i32 : i32
    %1 = arith.extui %0 : i1 to i32
    %c0_i32_0 = arith.constant 0 : i32
    %2 = arith.cmpi ne, %1, %c0_i32_0 : i32
    scf.if %2 {
      %cst_9 = arith.constant 0.000000e+00 : f32
      %12 = vector.broadcast %cst_9 : f32 to vector<1x1024xf32>
      %c0_10 = arith.constant 0 : index
      %c0_11 = arith.constant 0 : index
      %13 = vector.load %arg11[%c0_10, %c0_11] : memref<1x1024xf32, #tpu.memory_space<vmem>>, vector<1x1024xf32>
      tpu.vector_store %arg11[%c0_10, %c0_11], %12 {strides = array<i32>} : memref<1x1024xf32, #tpu.memory_space<vmem>>, vector<1x1024xf32>,
    } else {
    }
    %c0 = arith.constant 0 : index
    %c0_1 = arith.constant 0 : index
    %3 = vector.load %arg11[%c0, %c0_1] : memref<1x1024xf32, #tpu.memory_space<vmem>>, vector<1x1024xf32>
    %c0_2 = arith.constant 0 : index
    %c0_3 = arith.constant 0 : index
    %4 = vector.load %arg1[%c0_2, %c0_3] : memref<1x384xbf16, #tpu.memory_space<vmem>>, vector<1x384xbf16>
    %c0_4 = arith.constant 0 : index
    %c0_5 = arith.constant 0 : index
    %5 = vector.load %arg2[%c0_4, %c0_5] : memref<384x1024xbf16, #tpu.memory_space<vmem>>, vector<384x1024xbf16>
    %cst = arith.constant dense<0.000000e+00> : vector<1x1024xf32>
    %6 = tpu.matmul %4, %5, %cst {dimension_numbers = #tpu.dot_dimension_numbers<[1], [0], [0], [1], [0, 0, 1, 1], [], []>} : vector<1x384xbf16>, vector<384x1024xbf16>, vector<1x1024xf32> -> vector<1x1024xf32>
    %7 = arith.addf %3, %6 : vector<1x1024xf32>
    %c0_6 = arith.constant 0 : index
    %c0_7 = arith.constant 0 : index
    %8 = vector.load %arg11[%c0_6, %c0_7] : memref<1x1024xf32, #tpu.memory_space<vmem>>, vector<1x1024xf32>
    tpu.vector_store %arg11[%c0_6, %c0_7], %7 {strides = array<i32>} : memref<1x1024xf32, #tpu.memory_space<vmem>>, vector<1x1024xf32>,
    %c3_i32 = arith.constant 3 : i32
    %9 = arith.cmpi eq, %arg0, %c3_i32 : i32
    %10 = arith.extui %9 : i1 to i32
    %c0_i32_8 = arith.constant 0 : i32
    %11 = arith.cmpi ne, %10, %c0_i32_8 : i32
    scf.if %11 {
      %c0_9 = arith.constant 0 : index
      %c0_10 = arith.constant 0 : index
      %12 = vector.load %arg11[%c0_9, %c0_10] : memref<1x1024xf32, #tpu.memory_space<vmem>>, vector<1x1024xf32>
      %c0_11 = arith.constant 0 : index
      %c0_12 = arith.constant 0 : index
      %13 = vector.load %arg3[%c0_11, %c0_12] : memref<1x1024xf32, #tpu.memory_space<vmem>>, vector<1x1024xf32>
      %14 = arith.addf %12, %13 : vector<1x1024xf32>
      %15 = vector.extract_strided_slice %14 {offsets = [0, 0], sizes = [1, 256], strides = [1, 1]} : vector<1x1024xf32> to vector<1x256xf32>
      %16 = arith.negf %15 : vector<1x256xf32>
      %17 = math.exp %16 : vector<1x256xf32>
      %cst_13 = arith.constant 1.000000e+00 : f32
      %18 = vector.broadcast %cst_13 : f32 to vector<1x256xf32>
      %19 = arith.addf %18, %17 : vector<1x256xf32>
      %20 = arith.divf %18, %19 : vector<1x256xf32>
      %21 = vector.extract_strided_slice %14 {offsets = [0, 256], sizes = [1, 256], strides = [1, 1]} : vector<1x1024xf32> to vector<1x256xf32>
      %22 = arith.negf %21 : vector<1x256xf32>
      %23 = math.exp %22 : vector<1x256xf32>
      %cst_14 = arith.constant 1.000000e+00 : f32
      %24 = vector.broadcast %cst_14 : f32 to vector<1x256xf32>
      %25 = arith.addf %24, %23 : vector<1x256xf32>
      %26 = arith.divf %24, %25 : vector<1x256xf32>
      %27 = vector.extract_strided_slice %14 {offsets = [0, 512], sizes = [1, 256], strides = [1, 1]} : vector<1x1024xf32> to vector<1x256xf32>
      %28 = math.tanh %27 : vector<1x256xf32>
      %29 = vector.extract_strided_slice %14 {offsets = [0, 768], sizes = [1, 256], strides = [1, 1]} : vector<1x1024xf32> to vector<1x256xf32>
      %30 = arith.negf %29 : vector<1x256xf32>
      %31 = math.exp %30 : vector<1x256xf32>
      %cst_15 = arith.constant 1.000000e+00 : f32
      %32 = vector.broadcast %cst_15 : f32 to vector<1x256xf32>
      %33 = arith.addf %32, %31 : vector<1x256xf32>
      %34 = arith.divf %32, %33 : vector<1x256xf32>
      %c0_16 = arith.constant 0 : index
      %c0_17 = arith.constant 0 : index
      %35 = vector.load %arg4[%c0_16, %c0_17] : memref<1x256xf32, #tpu.memory_space<vmem>>, vector<1x256xf32>
      %36 = arith.mulf %26, %35 : vector<1x256xf32>
      %37 = arith.mulf %20, %28 : vector<1x256xf32>
      %38 = arith.addf %36, %37 : vector<1x256xf32>
      %39 = math.tanh %38 : vector<1x256xf32>
      %40 = arith.mulf %34, %39 : vector<1x256xf32>
      %c0_18 = arith.constant 0 : index
      %c0_19 = arith.constant 0 : index
      %41 = vector.load %arg10[%c0_18, %c0_19] : memref<1x256xf32, #tpu.memory_space<vmem>>, vector<1x256xf32>
      tpu.vector_store %arg10[%c0_18, %c0_19], %38 {strides = array<i32>} : memref<1x256xf32, #tpu.memory_space<vmem>>, vector<1x256xf32>,
      %c0_20 = arith.constant 0 : index
      %c0_21 = arith.constant 0 : index
      %42 = vector.load %arg9[%c0_20, %c0_21] : memref<1x256xf32, #tpu.memory_space<vmem>>, vector<1x256xf32>
      tpu.vector_store %arg9[%c0_20, %c0_21], %40 {strides = array<i32>} : memref<1x256xf32, #tpu.memory_space<vmem>>, vector<1x256xf32>,
      %43 = arith.truncf %40 : vector<1x256xf32> to vector<1x256xbf16>
      %c0_22 = arith.constant 0 : index
      %c0_23 = arith.constant 0 : index
      %44 = vector.load %arg5[%c0_22, %c0_23] : memref<256x7xbf16, #tpu.memory_space<vmem>>, vector<256x7xbf16>
      %cst_24 = arith.constant dense<0.000000e+00> : vector<1x7xf32>
      %45 = tpu.matmul %43, %44, %cst_24 {dimension_numbers = #tpu.dot_dimension_numbers<[1], [0], [0], [1], [0, 0, 1, 1], [], []>} : vector<1x256xbf16>, vector<256x7xbf16>, vector<1x7xf32> -> vector<1x7xf32>
      %c0_25 = arith.constant 0 : index
      %c0_26 = arith.constant 0 : index
      %46 = vector.load %arg6[%c0_25, %c0_26] : memref<1x7xf32, #tpu.memory_space<vmem>>, vector<1x7xf32>
      %47 = arith.addf %45, %46 : vector<1x7xf32>
      %48 = vector.extract_strided_slice %47 {offsets = [0, 0], sizes = [1, 1], strides = [1, 1]} : vector<1x7xf32> to vector<1x1xf32>
      %c0_27 = arith.constant 0 : index
      %c0_28 = arith.constant 0 : index
      %49 = vector.load %arg7[%c0_27, %c0_28] : memref<1x1xf32, #tpu.memory_space<vmem>>, vector<1x1xf32>
      tpu.vector_store %arg7[%c0_27, %c0_28], %48 {strides = array<i32>} : memref<1x1xf32, #tpu.memory_space<vmem>>, vector<1x1xf32>,
      %50 = vector.extract_strided_slice %47 {offsets = [0, 1], sizes = [1, 6], strides = [1, 1]} : vector<1x7xf32> to vector<1x6xf32>
      %c0_29 = arith.constant 0 : index
      %c0_30 = arith.constant 0 : index
      %51 = vector.load %arg8[%c0_29, %c0_30] : memref<1x6xf32, #tpu.memory_space<vmem>>, vector<1x6xf32>
      tpu.vector_store %arg8[%c0_29, %c0_30], %50 {strides = array<i32>} : memref<1x6xf32, #tpu.memory_space<vmem>>, vector<1x6xf32>,
    } else {
    }
    return
  }
  func.func @transform_0(%arg0: i32) -> (i32, i32) {
    %c0_i32 = arith.constant 0 : i32
    %c0_i32_0 = arith.constant 0 : i32
    return %c0_i32, %arg0 : i32, i32
  }
  func.func @transform_1(%arg0: i32) -> (i32, i32) {
    %c0_i32 = arith.constant 0 : i32
    %c0_i32_0 = arith.constant 0 : i32
    return %arg0, %c0_i32 : i32, i32
  }
  func.func @transform_2(%arg0: i32) -> (i32, i32) {
    %c0_i32 = arith.constant 0 : i32
    %c0_i32_0 = arith.constant 0 : i32
    %c0_i32_1 = arith.constant 0 : i32
    return %c0_i32, %c0_i32_0 : i32, i32
  }
  func.func @transform_3(%arg0: i32) -> (i32, i32) {
    %c0_i32 = arith.constant 0 : i32
    %c0_i32_0 = arith.constant 0 : i32
    %c0_i32_1 = arith.constant 0 : i32
    return %c0_i32, %c0_i32_0 : i32, i32
  }
  func.func @transform_4(%arg0: i32) -> (i32, i32) {
    %c0_i32 = arith.constant 0 : i32
    %c0_i32_0 = arith.constant 0 : i32
    %c0_i32_1 = arith.constant 0 : i32
    return %c0_i32, %c0_i32_0 : i32, i32
  }
  func.func @transform_5(%arg0: i32) -> (i32, i32) {
    %c0_i32 = arith.constant 0 : i32
    %c0_i32_0 = arith.constant 0 : i32
    %c0_i32_1 = arith.constant 0 : i32
    return %c0_i32, %c0_i32_0 : i32, i32
  }
  func.func @transform_6(%arg0: i32) -> (i32, i32) {
    %c0_i32 = arith.constant 0 : i32
    %c0_i32_0 = arith.constant 0 : i32
    %c0_i32_1 = arith.constant 0 : i32
    return %c0_i32, %c0_i32_0 : i32, i32
  }
  func.func @transform_7(%arg0: i32) -> (i32, i32) {
    %c0_i32 = arith.constant 0 : i32
    %c0_i32_0 = arith.constant 0 : i32
    %c0_i32_1 = arith.constant 0 : i32
    return %c0_i32, %c0_i32_0 : i32, i32
  }
  func.func @transform_8(%arg0: i32) -> (i32, i32) {
    %c0_i32 = arith.constant 0 : i32
    %c0_i32_0 = arith.constant 0 : i32
    %c0_i32_1 = arith.constant 0 : i32
    return %c0_i32, %c0_i32_0 : i32, i32
  }
  func.func @transform_9(%arg0: i32) -> (i32, i32) {
    %c0_i32 = arith.constant 0 : i32
    %c0_i32_0 = arith.constant 0 : i32
    %c0_i32_1 = arith.constant 0 : i32
    return %c0_i32, %c0_i32_0 : i32, i32
  }
}

</mosaic_0001>

<bundles_post_ra>
// kernel: a3c_forward.4
= control target key start
LH: loop header
LB: loop body
LE: loop exit
PB: predicated region body
PF: predicated region fallthrough
CT: control target
= control target key end

     0   :  { %v2908_v21 = vmov 0   ;;  %s4124_s1 = inlined_call_operand.vmem [shape: bf16[256,1920], index: 1, kind: input, shape index: {}]   ;;  %s4125_s0 = inlined_call_operand.vmem [shape: bf16[16,256], index: 0, kind: input, shape index: {}]   ;;  %s4126_s2 = inlined_call_operand.vmem [shape: f32[16,1], index: 2, kind: input, shape index: {}]   ;;  %s4127_s3 = inlined_call_operand.vmem [shape: f32[16,1], index: 3, kind: input, shape index: {}]   ;;  %s4128_s4 = inlined_call_operand.vmem [shape: f32[16,1], index: 4, kind: input, shape index: {}]   ;;  %s4129_s5 = inlined_call_operand.vmem [shape: bf16[16,1920], index: 5, kind: output, shape index: {}]  }
   0x1   :  { %v2547_v0 = vld [vmem:[%s4124_s1 + $0x4] ss:$60 sps:$4 sm:$0xff]   ;;  %v2550_v2 = vld [vmem:[%s4124_s1 + $0xc] ss:$60 sps:$4 sm:$0xff]   ;;  %v2552_v3 = vld [vmem:[%s4124_s1 + $0x7c] ss:$60 sps:$4 sm:$0xff]   ;;  %2545 = vset.pattern.permute.xlu0 %v2908_v21  ;;  %2546 = vset.pattern.permute.xlu1 %v2908_v21 }
   0x2   :  { %v2549_v1 = vld [vmem:[%s4124_s1] ss:$60 sps:$4 sm:$0xff]   ;;  %1517 = vmatprep.subr.bf16.mxu0 %v2547_v0  ;;  %v2554_v4 = vld [vmem:[%s4124_s1 + $0x8] ss:$60 sps:$4 sm:$0xff]   ;;  %v2555_v5 = vld [vmem:[%s4124_s1 + $0x78] ss:$60 sps:$4 sm:$0xff]   ;;  %1560 = vmatprep.subr.bf16.mxu1 %v2550_v2 }
   0x3   :  { %1518 = vmatpush1.bf16.msra.mxu0 %v2549_v1  ;;  %v2556_v6 = vld [vmem:[%s4124_s1 + $0x84] ss:$60 sps:$4 sm:$0xff]   ;;  %1561 = vmatpush1.bf16.msra.mxu1 %v2554_v4  ;;  %v2558_v7 = vld [vmem:[%s4124_s1 + $0xf4] ss:$60 sps:$4 sm:$0xff]   ;;  %v2562_v10 = vld [vmem:[%s4124_s1 + $0xfc] ss:$60 sps:$4 sm:$0xff]  }
   0x4   :  { %1519 = vmatprep.subr.bf16.mxu0 %v2552_v3  ;;  %1562 = vmatprep.subr.bf16.mxu1 %v2556_v6  ;;  %v2560_v8 = vld [vmem:[%s4124_s1 + $0x80] ss:$60 sps:$4 sm:$0xff]   ;;  %v2561_v9 = vld [vmem:[%s4124_s1 + $0xf0] ss:$60 sps:$4 sm:$0xff]   ;;  %v2566_v12 = vld [vmem:[%s4124_s1 + $0xf8] ss:$60 sps:$4 sm:$0xff]  }
   0x5   :  { %v2564_v11 = vld [vmem:[%s4124_s1 + $0x16c] ss:$60 sps:$4 sm:$0xff]   ;;  %v2568_v13 = vld [vmem:[%s4124_s1 + $0x174] ss:$60 sps:$4 sm:$0xff]   ;;  %v2570_v15 = vld [vmem:[%s4124_s1 + $0x1e4] ss:$60 sps:$4 sm:$0xff]  }
   0x6   :  { %v2567_v14 = vld [vmem:[%s4124_s1 + $0x168] ss:$60 sps:$4 sm:$0xff]   ;;  %v2572_v16 = vld [vmem:[%s4124_s1 + $0x170] ss:$60 sps:$4 sm:$0xff]   ;;  %v2573_v18 = vld [vmem:[%s4124_s1 + $0x1e0] ss:$60 sps:$4 sm:$0xff]  }
   0x7   :  { %1520 = vmatpush1.bf16.msra.mxu0 %v2555_v5  ;;  %1563 = vmatpush1.bf16.msra.mxu1 %v2560_v8  ;;  %v2574_v17 = vld [vmem:[%s4124_s1 + $0x1ec] ss:$60 sps:$4 sm:$0xff]   ;;  %v2576_v19 = vld [vmem:[%s4124_s1 + $0x25c] ss:$60 sps:$4 sm:$0xff]   ;;  %v2580_v22 = vld [vmem:[%s4124_s1 + $0x264] ss:$60 sps:$4 sm:$0xff]  }
   0x8   :  { %1521 = vmatprep.subr.bf16.mxu0 %v2558_v7  ;;  %1564 = vmatprep.subr.bf16.mxu1 %v2562_v10  ;;  %v2578_v20 = vld [vmem:[%s4124_s1 + $0x1e8] ss:$60 sps:$4 sm:$0xff]   ;;  %v2579_v23 = vld [vmem:[%s4124_s1 + $0x258] ss:$60 sps:$4 sm:$0xff]   ;;  %v2584_v25 = vld [vmem:[%s4124_s1 + $0x260] ss:$60 sps:$4 sm:$0xff]  }
   0x9   :  { %v2582_v24 = vld [vmem:[%s4124_s1 + $0x2d4] ss:$60 sps:$4 sm:$0xff]   ;;  %v2586_v26 = vld [vmem:[%s4124_s1 + $0x2dc] ss:$60 sps:$4 sm:$0xff]   ;;  %v2588_v28 = vld [vmem:[%s4124_s1 + $0x34c] ss:$60 sps:$4 sm:$0xff]  }
   0xa   :  { %v2585_v27 = vld [vmem:[%s4124_s1 + $0x2d0] ss:$60 sps:$4 sm:$0xff]   ;;  %v2590_v29 = vld [vmem:[%s4124_s1 + $0x2d8] ss:$60 sps:$4 sm:$0xff]   ;;  %v2591_v31 = vld [vmem:[%s4124_s1 + $0x348] ss:$60 sps:$4 sm:$0xff]  }
   0xb   :  { %1522 = vmatpush1.bf16.msra.mxu0 %v2561_v9  ;;  %1565 = vmatpush1.bf16.msra.mxu1 %v2566_v12  ;;  %v2592_v30 = vld [vmem:[%s4124_s1 + $0x354] ss:$60 sps:$4 sm:$0xff]   ;;  %v2594_v32 = vld [vmem:[%s4124_s1 + $0x3c4] ss:$60 sps:$4 sm:$0xff]   ;;  %v2598_v34 = vld [vmem:[%s4124_s1 + $0x3cc] ss:$60 sps:$4 sm:$0xff]  }
   0xc   :  { %1523 = vmatprep.subr.bf16.mxu0 %v2564_v11  ;;  %1566 = vmatprep.subr.bf16.mxu1 %v2568_v13  ;;  %v2596_v33 = vld [vmem:[%s4124_s1 + $0x350] ss:$60 sps:$4 sm:$0xff]   ;;  %v2597_v35 = vld [vmem:[%s4124_s1 + $0x3c0] ss:$60 sps:$4 sm:$0xff]   ;;  %v2602_v37 = vld [vmem:[%s4124_s1 + $0x3c8] ss:$60 sps:$4 sm:$0xff]  }
   0xd   :  { %v2600_v36 = vld [vmem:[%s4124_s1 + $0x43c] ss:$60 sps:$4 sm:$0xff]   ;;  %v2604_v38 = vld [vmem:[%s4124_s1 + $0x444] ss:$60 sps:$4 sm:$0xff]   ;;  %v2606_v40 = vld [vmem:[%s4124_s1 + $0x4b4] ss:$60 sps:$4 sm:$0xff]  }
   0xe   :  { %v2603_v39 = vld [vmem:[%s4124_s1 + $0x438] ss:$60 sps:$4 sm:$0xff]   ;;  %v2608_v41 = vld [vmem:[%s4124_s1 + $0x440] ss:$60 sps:$4 sm:$0xff]   ;;  %v2609_v43 = vld [vmem:[%s4124_s1 + $0x4b0] ss:$60 sps:$4 sm:$0xff]  }
   0xf   :  { %1524 = vmatpush1.bf16.msra.mxu0 %v2567_v14  ;;  %1567 = vmatpush1.bf16.msra.mxu1 %v2572_v16  ;;  %v2610_v42 = vld [vmem:[%s4124_s1 + $0x4bc] ss:$60 sps:$4 sm:$0xff]   ;;  %v2612_v44 = vld [vmem:[%s4124_s1 + $0x52c] ss:$60 sps:$4 sm:$0xff]   ;;  %v2616_v46 = vld [vmem:[%s4124_s1 + $0x534] ss:$60 sps:$4 sm:$0xff]  }
  0x10   :  { %1525 = vmatprep.subr.bf16.mxu0 %v2570_v15  ;;  %1568 = vmatprep.subr.bf16.mxu1 %v2574_v17  ;;  %v2614_v45 = vld [vmem:[%s4124_s1 + $0x4b8] ss:$60 sps:$4 sm:$0xff]   ;;  %v3080_v47 = vld [vmem:[%s4125_s0 + $0x4] ss:$8 sps:$4 sm:$0xff]   ;;  %v2621_v52 = vld [vmem:[%s4124_s1 + $0x5a0] ss:$60 sps:$4 sm:$0xff]  }
  0x11   :  { %v2615_v48 = vld [vmem:[%s4124_s1 + $0x528] ss:$60 sps:$4 sm:$0xff]   ;;  %1549 = vmatprep.mubr.bf16.mxu0 %v3080_v47  ;;  %v2620_v50 = vld [vmem:[%s4124_s1 + $0x530] ss:$60 sps:$4 sm:$0xff]   ;;  %1592 = vmatprep.mubr.bf16.mxu1 %v3080_v47  ;;  %v2624_v53 = vld [vmem:[%s4124_s1 + $0x61c] ss:$60 sps:$4 sm:$0xff]  }
  0x12   :  { %v2618_v49 = vld [vmem:[%s4124_s1 + $0x5a4] ss:$60 sps:$4 sm:$0xff]   ;;  %v2622_v51 = vld [vmem:[%s4124_s1 + $0x5ac] ss:$60 sps:$4 sm:$0xff]   ;;  %v2627_v56 = vld [vmem:[%s4124_s1 + $0x618] ss:$60 sps:$4 sm:$0xff]  }
  0x13   :  { %1526 = vmatpush1.bf16.msra.mxu0 %v2573_v18  ;;  %1569 = vmatpush1.bf16.msra.mxu1 %v2578_v20  ;;  %v2626_v54 = vld [vmem:[%s4124_s1 + $0x5a8] ss:$60 sps:$4 sm:$0xff]   ;;  %v2630_v57 = vld [vmem:[%s4124_s1 + $0x694] ss:$60 sps:$4 sm:$0xff]   ;;  %v2632_v58 = vld [vmem:[%s4124_s1 + $0x620] ss:$60 sps:$4 sm:$0xff]  }
  0x14   :  { %1527 = vmatprep.subr.bf16.mxu0 %v2576_v19  ;;  %1570 = vmatprep.subr.bf16.mxu1 %v2580_v22  ;;  %v2628_v55 = vld [vmem:[%s4124_s1 + $0x624] ss:$60 sps:$4 sm:$0xff]   ;;  %v2634_v59 = vld [vmem:[%s4124_s1 + $0x69c] ss:$60 sps:$4 sm:$0xff]   ;;  %v2633_v60 = vld [vmem:[%s4124_s1 + $0x690] ss:$60 sps:$4 sm:$0xff]  }
  0x15   :  { %v2636_v61 = vld [vmem:[%s4124_s1 + $0x70c] ss:$60 sps:$4 sm:$0xff]   ;;  %v2638_v62 = vld [vmem:[%s4124_s1 + $0x698] ss:$60 sps:$4 sm:$0xff]   ;;  %v2657_v10 = vld [vmem:[%s4124_s1 + $0x104] ss:$60 sps:$4 sm:$0xff]  }
  0x16   :  { %v2642_v63 = vld [vmem:[%s4124_s1 + $0x714] ss:$60 sps:$4 sm:$0xff]   ;;  %v2639_v0 = vld [vmem:[%s4124_s1 + $0x708] ss:$60 sps:$4 sm:$0xff]   ;;  %v2654_v4 = vld [vmem:[%s4124_s1 + $0x1c] ss:$60 sps:$4 sm:$0xff]  }
  0x17   :  { %1528 = vmatpush1.bf16.msra.mxu0 %v2579_v23  ;;  %1571 = vmatpush1.bf16.msra.mxu1 %v2584_v25  ;;  %v2648_v1 = vld [vmem:[%s4124_s1 + $0x14] ss:$60 sps:$4 sm:$0xff]   ;;  %v3144_v3 = vld [vmem:[%s4125_s0] ss:$8 sps:$4 sm:$0xff]   ;;  %v2663_v14 = vld [vmem:[%s4124_s1 + $0x17c] ss:$60 sps:$4 sm:$0xff]  }
  0x18   :  { %1529 = vmatprep.subr.bf16.mxu0 %v2582_v24  ;;  %1572 = vmatprep.subr.bf16.mxu1 %v2586_v26  ;;  %v2645_v2 = vld [vmem:[%s4124_s1 + $0x710] ss:$60 sps:$4 sm:$0xff]   ;;  %v2652_v7 = vld [vmem:[%s4124_s1 + $0x18] ss:$60 sps:$4 sm:$0xff]   ;;  %v2649_v9 = vld [vmem:[%s4124_s1 + $0x88] ss:$60 sps:$4 sm:$0xff]  }
  0x19   :  { %v2646_v5 = vld [vmem:[%s4124_s1 + $0x10] ss:$60 sps:$4 sm:$0xff]   ;;  %v2655_v13 = vld [vmem:[%s4124_s1 + $0x100] ss:$60 sps:$4 sm:$0xff]   ;;  %v2664_v15 = vld [vmem:[%s4124_s1 + $0x108] ss:$60 sps:$4 sm:$0xff]  }
  0x1a   :  { %v2651_v6 = vld [vmem:[%s4124_s1 + $0x8c] ss:$60 sps:$4 sm:$0xff]   ;;  %v2660_v8 = vld [vmem:[%s4124_s1 + $0x94] ss:$60 sps:$4 sm:$0xff]   ;;  %v2672_v16 = vld [vmem:[%s4124_s1 + $0x184] ss:$60 sps:$4 sm:$0xff]  }
  0x1b   :  { %1530 = vmatpush1.bf16.msra.mxu0 %v2585_v27  ;;  %1573 = vmatpush1.bf16.msra.mxu1 %v2590_v29  ;;  %v2658_v11 = vld [vmem:[%s4124_s1 + $0x90] ss:$60 sps:$4 sm:$0xff]   ;;  %v2661_v17 = vld [vmem:[%s4124_s1 + $0x178] ss:$60 sps:$4 sm:$0xff]   ;;  %v2670_v19 = vld [vmem:[%s4124_s1 + $0x180] ss:$60 sps:$4 sm:$0xff]  }
  0x1c   :  { %1531 = vmatprep.subr.bf16.mxu0 %v2588_v28  ;;  %1574 = vmatprep.subr.bf16.mxu1 %v2592_v30  ;;  %v2666_v12 = vld [vmem:[%s4124_s1 + $0x10c] ss:$60 sps:$4 sm:$0xff]   ;;  %v2669_v18 = vld [vmem:[%s4124_s1 + $0x1f4] ss:$60 sps:$4 sm:$0xff]   ;;  %v2678_v20 = vld [vmem:[%s4124_s1 + $0x1fc] ss:$60 sps:$4 sm:$0xff]  }
  0x1d   :  { %v2667_v21 = vld [vmem:[%s4124_s1 + $0x1f0] ss:$60 sps:$4 sm:$0xff]   ;;  %v2676_v23 = vld [vmem:[%s4124_s1 + $0x1f8] ss:$60 sps:$4 sm:$0xff]   ;;  %v2673_v25 = vld [vmem:[%s4124_s1 + $0x268] ss:$60 sps:$4 sm:$0xff]  }
  0x1e   :  { %v2675_v22 = vld [vmem:[%s4124_s1 + $0x26c] ss:$60 sps:$4 sm:$0xff]   ;;  %v2684_v24 = vld [vmem:[%s4124_s1 + $0x274] ss:$60 sps:$4 sm:$0xff]   ;;  %v2681_v26 = vld [vmem:[%s4124_s1 + $0x2e4] ss:$60 sps:$4 sm:$0xff]  }
  0x1f   :  { %1532 = vmatpush1.bf16.msra.mxu0 %v2591_v31  ;;  %1575 = vmatpush1.bf16.msra.mxu1 %v2596_v33  ;;  %v2682_v27 = vld [vmem:[%s4124_s1 + $0x270] ss:$60 sps:$4 sm:$0xff]   ;;  %v2679_v29 = vld [vmem:[%s4124_s1 + $0x2e0] ss:$60 sps:$4 sm:$0xff]   ;;  %v2688_v31 = vld [vmem:[%s4124_s1 + $0x2e8] ss:$60 sps:$4 sm:$0xff]  }
  0x20   :  { %1533 = vmatprep.subr.bf16.mxu0 %v2594_v32  ;;  %1576 = vmatprep.subr.bf16.mxu1 %v2598_v34  ;;  %v2690_v28 = vld [vmem:[%s4124_s1 + $0x2ec] ss:$60 sps:$4 sm:$0xff]   ;;  %v2687_v30 = vld [vmem:[%s4124_s1 + $0x35c] ss:$60 sps:$4 sm:$0xff]   ;;  %v2696_v32 = vld [vmem:[%s4124_s1 + $0x364] ss:$60 sps:$4 sm:$0xff]  }
  0x21   :  { %v2685_v33 = vld [vmem:[%s4124_s1 + $0x358] ss:$60 sps:$4 sm:$0xff]  }
  0x22   :  { %v2693_v34 = vld [vmem:[%s4124_s1 + $0x3d4] ss:$60 sps:$4 sm:$0xff]  }
  0x23   :  { %1534 = vmatpush1.bf16.msra.mxu0 %v2597_v35  ;;  %1577 = vmatpush1.bf16.msra.mxu1 %v2602_v37  ;;  %v2694_v35 = vld [vmem:[%s4124_s1 + $0x360] ss:$60 sps:$4 sm:$0xff]   ;;  %v2691_v37 = vld [vmem:[%s4124_s1 + $0x3d0] ss:$60 sps:$4 sm:$0xff]  }
  0x24   :  { %1535 = vmatprep.subr.bf16.mxu0 %v2600_v36  ;;  %1578 = vmatprep.subr.bf16.mxu1 %v2604_v38  ;;  %v2702_v36 = vld [vmem:[%s4124_s1 + $0x3dc] ss:$60 sps:$4 sm:$0xff]   ;;  %v2699_v38 = vld [vmem:[%s4124_s1 + $0x44c] ss:$60 sps:$4 sm:$0xff]  }
  0x27   :  { %1536 = vmatpush1.bf16.msra.mxu0 %v2603_v39  ;;  %1579 = vmatpush1.bf16.msra.mxu1 %v2608_v41  ;;  %v2700_v39 = vld [vmem:[%s4124_s1 + $0x3d8] ss:$60 sps:$4 sm:$0xff]   ;;  %v279_v41 = vld [vmem:[%s4126_s2] sm:$0xff] }
  0x28   :  { %1537 = vmatprep.subr.bf16.mxu0 %v2606_v40  ;;  %1580 = vmatprep.subr.bf16.mxu1 %v2610_v42  ;;  %v2708_v40 = vld [vmem:[%s4124_s1 + $0x454] ss:$60 sps:$4 sm:$0xff]   ;;  %v2697_v42 = vld [vmem:[%s4124_s1 + $0x448] ss:$60 sps:$4 sm:$0xff]  }
  0x29   :  { %283 = vperm.xlu0 %2545, %v279_v41   ;;  %v2795_v41 = vld [vmem:[%s4124_s1 + $0x45c] ss:$60 sps:$4 sm:$0xff]  }
  0x2b   :  { %1538 = vmatpush1.bf16.msra.mxu0 %v2609_v43  ;;  %1581 = vmatpush1.bf16.msra.mxu1 %v2614_v45  ;;  %v2705_v43 = vld [vmem:[%s4124_s1 + $0x4c4] ss:$60 sps:$4 sm:$0xff]   ;;  %v280_v45 = vld [vmem:[%s4126_s2 + $0x8] sm:$0xff] }
  0x2c   :  { %1539 = vmatprep.subr.bf16.mxu0 %v2612_v44  ;;  %1582 = vmatprep.subr.bf16.mxu1 %v2616_v46  ;;  %v2706_v44 = vld [vmem:[%s4124_s1 + $0x450] ss:$60 sps:$4 sm:$0xff]  }
  0x2d   :  { %v2714_v46 = vld [vmem:[%s4124_s1 + $0x4cc] ss:$60 sps:$4 sm:$0xff]   ;;  %288 = vperm.xlu0 %2545, %v280_v45   ;;  %v2801_v45 = vld [vmem:[%s4124_s1 + $0x4d4] ss:$60 sps:$4 sm:$0xff]  }
  0x2f   :  { %1540 = vmatpush1.bf16.msra.mxu0 %v2615_v48  ;;  %1583 = vmatpush1.bf16.msra.mxu1 %v2620_v50  ;;  %v2703_v48 = vld [vmem:[%s4124_s1 + $0x4c0] ss:$60 sps:$4 sm:$0xff]   ;;  %v2712_v50 = vld [vmem:[%s4124_s1 + $0x4c8] ss:$60 sps:$4 sm:$0xff]  }
  0x30   :  { %1541 = vmatprep.subr.bf16.mxu0 %v2618_v49  ;;  %1584 = vmatprep.subr.bf16.mxu1 %v2622_v51  ;;  %v2711_v49 = vld [vmem:[%s4124_s1 + $0x53c] ss:$60 sps:$4 sm:$0xff]   ;;  %v2720_v51 = vld [vmem:[%s4124_s1 + $0x544] ss:$60 sps:$4 sm:$0xff]  }
  0x33   :  { %1542 = vmatpush1.bf16.msra.mxu0 %v2621_v52  ;;  %1585 = vmatpush1.bf16.msra.mxu1 %v2626_v54  ;;  %v2709_v52 = vld [vmem:[%s4124_s1 + $0x538] ss:$60 sps:$4 sm:$0xff]   ;;  %v2718_v54 = vld [vmem:[%s4124_s1 + $0x540] ss:$60 sps:$4 sm:$0xff]  }
  0x34   :  { %1543 = vmatprep.subr.bf16.mxu0 %v2624_v53  ;;  %1586 = vmatprep.subr.bf16.mxu1 %v2628_v55  ;;  %v2717_v53 = vld [vmem:[%s4124_s1 + $0x5b4] ss:$60 sps:$4 sm:$0xff]   ;;  %v2726_v55 = vld [vmem:[%s4124_s1 + $0x5bc] ss:$60 sps:$4 sm:$0xff]  }
  0x37   :  { %1544 = vmatpush1.bf16.msra.mxu0 %v2627_v56  ;;  %1587 = vmatpush1.bf16.msra.mxu1 %v2632_v58  ;;  %v2715_v56 = vld [vmem:[%s4124_s1 + $0x5b0] ss:$60 sps:$4 sm:$0xff]   ;;  %v2724_v58 = vld [vmem:[%s4124_s1 + $0x5b8] ss:$60 sps:$4 sm:$0xff]  }
  0x38   :  { %1545 = vmatprep.subr.bf16.mxu0 %v2630_v57  ;;  %1588 = vmatprep.subr.bf16.mxu1 %v2634_v59  ;;  %v2723_v57 = vld [vmem:[%s4124_s1 + $0x62c] ss:$60 sps:$4 sm:$0xff]   ;;  %v2732_v59 = vld [vmem:[%s4124_s1 + $0x634] ss:$60 sps:$4 sm:$0xff]  }
  0x3b   :  { %1546 = vmatpush1.bf16.msra.mxu0 %v2633_v60  ;;  %1589 = vmatpush1.bf16.msra.mxu1 %v2638_v62  ;;  %v2721_v60 = vld [vmem:[%s4124_s1 + $0x628] ss:$60 sps:$4 sm:$0xff]   ;;  %v2730_v62 = vld [vmem:[%s4124_s1 + $0x630] ss:$60 sps:$4 sm:$0xff]  }
  0x3c   :  { %1547 = vmatprep.subr.bf16.mxu0 %v2636_v61  ;;  %1590 = vmatprep.subr.bf16.mxu1 %v2642_v63  ;;  %v2729_v61 = vld [vmem:[%s4124_s1 + $0x6a4] ss:$60 sps:$4 sm:$0xff]   ;;  %v2738_v63 = vld [vmem:[%s4124_s1 + $0x6ac] ss:$60 sps:$4 sm:$0xff]  }
  0x3f   :  { %1548 = vmatpush1.bf16.msra.mxu0 %v2639_v0  ;;  %1591 = vmatpush1.bf16.msra.mxu1 %v2645_v2  ;;  %v2727_v0 = vld [vmem:[%s4124_s1 + $0x6a0] ss:$60 sps:$4 sm:$0xff]   ;;  %v2736_v2 = vld [vmem:[%s4124_s1 + $0x6a8] ss:$60 sps:$4 sm:$0xff]  }
  0x40   :  { %1603 = vmatprep.subr.bf16.mxu0 %v2648_v1  ;;  %1646 = vmatprep.subr.bf16.mxu1 %v2654_v4  ;;  %v2735_v1 = vld [vmem:[%s4124_s1 + $0x71c] ss:$60 sps:$4 sm:$0xff]   ;;  %v2741_v4 = vld [vmem:[%s4124_s1 + $0x724] ss:$60 sps:$4 sm:$0xff]  }
  0x42   :  { %1550 = vmatmul.mubr.bf16.vlgmr.msra.gmra.mrb[0].mxu0 %v3144_v3  ;;  %1593 = vmatmul.mubr.bf16.vlgmr.msra.gmra.mrb[0].mxu1 %v3144_v3 }
  0x43   :  { %1604 = vmatpush1.bf16.msra.mxu0 %v2646_v5  ;;  %1635 = vmatprep.mubr.bf16.mxu0 %v3080_v47  ;;  %v2733_v5 = vld [vmem:[%s4124_s1 + $0x718] ss:$60 sps:$4 sm:$0xff]  }
  0x44   :  { %1605 = vmatprep.subr.bf16.mxu0 %v2651_v6  ;;  %1647 = vmatpush1.bf16.msra.mxu1 %v2652_v7  ;;  %v2744_v6 = vld [vmem:[%s4124_s1 + $0x24] ss:$60 sps:$4 sm:$0xff]  }
  0x45   :  { %1678 = vmatprep.mubr.bf16.mxu1 %v3080_v47  ;;  %1648 = vmatprep.subr.bf16.mxu1 %v2660_v8  ;;  %v2739_v7 = vld [vmem:[%s4124_s1 + $0x720] ss:$60 sps:$4 sm:$0xff]   ;;  %v2750_v8 = vld [vmem:[%s4124_s1 + $0x2c] ss:$60 sps:$4 sm:$0xff]  }
  0x47   :  { %1606 = vmatpush1.bf16.msra.mxu0 %v2649_v9  ;;  %v2742_v9 = vld [vmem:[%s4124_s1 + $0x20] ss:$60 sps:$4 sm:$0xff]  }
  0x48   :  { %1607 = vmatprep.subr.bf16.mxu0 %v2657_v10  ;;  %1649 = vmatpush1.bf16.msra.mxu1 %v2658_v11  ;;  %v2747_v10 = vld [vmem:[%s4124_s1 + $0x9c] ss:$60 sps:$4 sm:$0xff]   ;;  %v2748_v11 = vld [vmem:[%s4124_s1 + $0x28] ss:$60 sps:$4 sm:$0xff]  }
  0x49   :  { %1650 = vmatprep.subr.bf16.mxu1 %v2666_v12  ;;  %v2756_v12 = vld [vmem:[%s4124_s1 + $0xa4] ss:$60 sps:$4 sm:$0xff]  }
  0x4b   :  { %1608 = vmatpush1.bf16.msra.mxu0 %v2655_v13  ;;  %v2745_v13 = vld [vmem:[%s4124_s1 + $0x98] ss:$60 sps:$4 sm:$0xff]  }
  0x4c   :  { %1609 = vmatprep.subr.bf16.mxu0 %v2663_v14  ;;  %1651 = vmatpush1.bf16.msra.mxu1 %v2664_v15  ;;  %v2753_v14 = vld [vmem:[%s4124_s1 + $0x114] ss:$60 sps:$4 sm:$0xff]   ;;  %v2754_v15 = vld [vmem:[%s4124_s1 + $0xa0] ss:$60 sps:$4 sm:$0xff]  }
  0x4d   :  { %1652 = vmatprep.subr.bf16.mxu1 %v2672_v16  ;;  %v2762_v16 = vld [vmem:[%s4124_s1 + $0x11c] ss:$60 sps:$4 sm:$0xff]  }
  0x4f   :  { %1610 = vmatpush1.bf16.msra.mxu0 %v2661_v17  ;;  %v2751_v17 = vld [vmem:[%s4124_s1 + $0x110] ss:$60 sps:$4 sm:$0xff]  }
  0x50   :  { %1611 = vmatprep.subr.bf16.mxu0 %v2669_v18  ;;  %1653 = vmatpush1.bf16.msra.mxu1 %v2670_v19  ;;  %v2759_v18 = vld [vmem:[%s4124_s1 + $0x18c] ss:$60 sps:$4 sm:$0xff]   ;;  %v2768_v19 = vld [vmem:[%s4124_s1 + $0x194] ss:$60 sps:$4 sm:$0xff]  }
  0x51   :  { %1654 = vmatprep.subr.bf16.mxu1 %v2678_v20  ;;  %v2757_v20 = vld [vmem:[%s4124_s1 + $0x188] ss:$60 sps:$4 sm:$0xff]  }
  0x53   :  { %1612 = vmatpush1.bf16.msra.mxu0 %v2667_v21  ;;  %v2765_v21 = vld [vmem:[%s4124_s1 + $0x204] ss:$60 sps:$4 sm:$0xff]  }
  0x54   :  { %1613 = vmatprep.subr.bf16.mxu0 %v2675_v22  ;;  %1655 = vmatpush1.bf16.msra.mxu1 %v2676_v23  ;;  %v2766_v22 = vld [vmem:[%s4124_s1 + $0x190] ss:$60 sps:$4 sm:$0xff]  }
  0x55   :  { %1656 = vmatprep.subr.bf16.mxu1 %v2684_v24  ;;  %v2774_v23 = vld [vmem:[%s4124_s1 + $0x20c] ss:$60 sps:$4 sm:$0xff]   ;;  %v2763_v24 = vld [vmem:[%s4124_s1 + $0x200] ss:$60 sps:$4 sm:$0xff]  }
  0x57   :  { %1614 = vmatpush1.bf16.msra.mxu0 %v2673_v25  ;;  %v2771_v25 = vld [vmem:[%s4124_s1 + $0x27c] ss:$60 sps:$4 sm:$0xff]  }
  0x58   :  { %1615 = vmatprep.subr.bf16.mxu0 %v2681_v26  ;;  %1657 = vmatpush1.bf16.msra.mxu1 %v2682_v27  ;;  %v2772_v26 = vld [vmem:[%s4124_s1 + $0x208] ss:$60 sps:$4 sm:$0xff]  }
  0x59   :  { %1658 = vmatprep.subr.bf16.mxu1 %v2690_v28  ;;  %v2780_v27 = vld [vmem:[%s4124_s1 + $0x284] ss:$60 sps:$4 sm:$0xff]   ;;  %v2769_v28 = vld [vmem:[%s4124_s1 + $0x278] ss:$60 sps:$4 sm:$0xff]  }
  0x5b   :  { %1616 = vmatpush1.bf16.msra.mxu0 %v2679_v29  ;;  %v2777_v29 = vld [vmem:[%s4124_s1 + $0x2f4] ss:$60 sps:$4 sm:$0xff]  }
  0x5c   :  { %1617 = vmatprep.subr.bf16.mxu0 %v2687_v30  ;;  %1659 = vmatpush1.bf16.msra.mxu1 %v2688_v31  ;;  %v2778_v30 = vld [vmem:[%s4124_s1 + $0x280] ss:$60 sps:$4 sm:$0xff]  }
  0x5d   :  { %1660 = vmatprep.subr.bf16.mxu1 %v2696_v32  ;;  %v2786_v31 = vld [vmem:[%s4124_s1 + $0x2fc] ss:$60 sps:$4 sm:$0xff]   ;;  %v2775_v32 = vld [vmem:[%s4124_s1 + $0x2f0] ss:$60 sps:$4 sm:$0xff]  }
  0x5f   :  { %1618 = vmatpush1.bf16.msra.mxu0 %v2685_v33  ;;  %v2783_v33 = vld [vmem:[%s4124_s1 + $0x36c] ss:$60 sps:$4 sm:$0xff]  }
  0x60   :  { %1619 = vmatprep.subr.bf16.mxu0 %v2693_v34  ;;  %1661 = vmatpush1.bf16.msra.mxu1 %v2694_v35  ;;  %v2784_v34 = vld [vmem:[%s4124_s1 + $0x2f8] ss:$60 sps:$4 sm:$0xff]  }
  0x61   :  { %1662 = vmatprep.subr.bf16.mxu1 %v2702_v36  ;;  %v2792_v35 = vld [vmem:[%s4124_s1 + $0x374] ss:$60 sps:$4 sm:$0xff]   ;;  %v2781_v36 = vld [vmem:[%s4124_s1 + $0x368] ss:$60 sps:$4 sm:$0xff]  }
  0x63   :  { %1620 = vmatpush1.bf16.msra.mxu0 %v2691_v37  ;;  %v2789_v37 = vld [vmem:[%s4124_s1 + $0x3e4] ss:$60 sps:$4 sm:$0xff]  }
  0x64   :  { %1621 = vmatprep.subr.bf16.mxu0 %v2699_v38  ;;  %1663 = vmatpush1.bf16.msra.mxu1 %v2700_v39  ;;  %v2790_v38 = vld [vmem:[%s4124_s1 + $0x370] ss:$60 sps:$4 sm:$0xff]  }
  0x65   :  { %1664 = vmatprep.subr.bf16.mxu1 %v2708_v40  ;;  %v2798_v39 = vld [vmem:[%s4124_s1 + $0x3ec] ss:$60 sps:$4 sm:$0xff]   ;;  %v2787_v40 = vld [vmem:[%s4124_s1 + $0x3e0] ss:$60 sps:$4 sm:$0xff]  }
  0x67   :  { %1622 = vmatpush1.bf16.msra.mxu0 %v2697_v42  ;;  %v2796_v42 = vld [vmem:[%s4124_s1 + $0x3e8] ss:$60 sps:$4 sm:$0xff]  }
  0x68   :  { %1623 = vmatprep.subr.bf16.mxu0 %v2705_v43  ;;  %1665 = vmatpush1.bf16.msra.mxu1 %v2706_v44  ;;  %v2804_v43 = vld [vmem:[%s4124_s1 + $0x464] ss:$60 sps:$4 sm:$0xff]   ;;  %v2793_v44 = vld [vmem:[%s4124_s1 + $0x458] ss:$60 sps:$4 sm:$0xff]  }
  0x69   :  { %1666 = vmatprep.subr.bf16.mxu1 %v2714_v46  ;;  %v2802_v46 = vld [vmem:[%s4124_s1 + $0x460] ss:$60 sps:$4 sm:$0xff]  }
  0x6b   :  { %1624 = vmatpush1.bf16.msra.mxu0 %v2703_v48  ;;  %v2810_v48 = vld [vmem:[%s4124_s1 + $0x4dc] ss:$60 sps:$4 sm:$0xff]  }
  0x6c   :  { %1625 = vmatprep.subr.bf16.mxu0 %v2711_v49  ;;  %1667 = vmatpush1.bf16.msra.mxu1 %v2712_v50  ;;  %v2799_v49 = vld [vmem:[%s4124_s1 + $0x4d0] ss:$60 sps:$4 sm:$0xff]  }
  0x6d   :  { %1668 = vmatprep.subr.bf16.mxu1 %v2720_v51  ;;  %v2807_v50 = vld [vmem:[%s4124_s1 + $0x54c] ss:$60 sps:$4 sm:$0xff]   ;;  %v2808_v51 = vld [vmem:[%s4124_s1 + $0x4d8] ss:$60 sps:$4 sm:$0xff]  }
  0x6f   :  { %1626 = vmatpush1.bf16.msra.mxu0 %v2709_v52  ;;  %v2816_v52 = vld [vmem:[%s4124_s1 + $0x554] ss:$60 sps:$4 sm:$0xff]  }
  0x70   :  { %1627 = vmatprep.subr.bf16.mxu0 %v2717_v53  ;;  %1669 = vmatpush1.bf16.msra.mxu1 %v2718_v54  ;;  %v2805_v53 = vld [vmem:[%s4124_s1 + $0x548] ss:$60 sps:$4 sm:$0xff]  }
  0x71   :  { %1670 = vmatprep.subr.bf16.mxu1 %v2726_v55  ;;  %v2813_v54 = vld [vmem:[%s4124_s1 + $0x5c4] ss:$60 sps:$4 sm:$0xff]   ;;  %v2814_v55 = vld [vmem:[%s4124_s1 + $0x550] ss:$60 sps:$4 sm:$0xff]  }
  0x73   :  { %1628 = vmatpush1.bf16.msra.mxu0 %v2715_v56  ;;  %v2822_v56 = vld [vmem:[%s4124_s1 + $0x5cc] ss:$60 sps:$4 sm:$0xff]  }
  0x74   :  { %1629 = vmatprep.subr.bf16.mxu0 %v2723_v57  ;;  %1671 = vmatpush1.bf16.msra.mxu1 %v2724_v58  ;;  %v2811_v57 = vld [vmem:[%s4124_s1 + $0x5c0] ss:$60 sps:$4 sm:$0xff]  }
  0x75   :  { %1672 = vmatprep.subr.bf16.mxu1 %v2732_v59  ;;  %v2819_v58 = vld [vmem:[%s4124_s1 + $0x63c] ss:$60 sps:$4 sm:$0xff]   ;;  %v2820_v59 = vld [vmem:[%s4124_s1 + $0x5c8] ss:$60 sps:$4 sm:$0xff]  }
  0x77   :  { %1630 = vmatpush1.bf16.msra.mxu0 %v2721_v60  ;;  %v2828_v60 = vld [vmem:[%s4124_s1 + $0x644] ss:$60 sps:$4 sm:$0xff]  }
  0x78   :  { %1631 = vmatprep.subr.bf16.mxu0 %v2729_v61  ;;  %1673 = vmatpush1.bf16.msra.mxu1 %v2730_v62  ;;  %v2817_v61 = vld [vmem:[%s4124_s1 + $0x638] ss:$60 sps:$4 sm:$0xff]  }
  0x79   :  { %1674 = vmatprep.subr.bf16.mxu1 %v2738_v63  ;;  %v2825_v62 = vld [vmem:[%s4124_s1 + $0x6b4] ss:$60 sps:$4 sm:$0xff]   ;;  %v2826_v63 = vld [vmem:[%s4124_s1 + $0x640] ss:$60 sps:$4 sm:$0xff]  }
  0x7b   :  { %1632 = vmatpush1.bf16.msra.mxu0 %v2727_v0  ;;  %v2834_v0 = vld [vmem:[%s4124_s1 + $0x6bc] ss:$60 sps:$4 sm:$0xff]  }
  0x7c   :  { %1633 = vmatprep.subr.bf16.mxu0 %v2735_v1  ;;  %1675 = vmatpush1.bf16.msra.mxu1 %v2736_v2  ;;  %v2823_v1 = vld [vmem:[%s4124_s1 + $0x6b0] ss:$60 sps:$4 sm:$0xff]  }
  0x7d   :  { %1676 = vmatprep.subr.bf16.mxu1 %v2741_v4  ;;  %v2831_v2 = vld [vmem:[%s4124_s1 + $0x72c] ss:$60 sps:$4 sm:$0xff]   ;;  %v2832_v4 = vld [vmem:[%s4124_s1 + $0x6b8] ss:$60 sps:$4 sm:$0xff]  }
  0x7f   :  { %1634 = vmatpush1.bf16.msra.mxu0 %v2733_v5  ;;  %v2837_v5 = vld [vmem:[%s4124_s1 + $0x734] ss:$60 sps:$4 sm:$0xff]  }
  0x80   :  { %1689 = vmatprep.subr.bf16.mxu0 %v2744_v6  ;;  %1677 = vmatpush1.bf16.msra.mxu1 %v2739_v7  ;;  %v2829_v6 = vld [vmem:[%s4124_s1 + $0x728] ss:$60 sps:$4 sm:$0xff]   ;;  %v2840_v7 = vld [vmem:[%s4124_s1 + $0x34] ss:$60 sps:$4 sm:$0xff]  }
  0x81   :  { %1732 = vmatprep.subr.bf16.mxu1 %v2750_v8  ;;  %v2835_v8 = vld [vmem:[%s4124_s1 + $0x730] ss:$60 sps:$4 sm:$0xff]  }
  0x82   :  { %1636 = vmatmul.mubr.bf16.vlgmr.msra.gmra.mrb[4].mxu0 %v3144_v3 }
  0x83   :  { %1690 = vmatpush1.bf16.msra.mxu0 %v2742_v9  ;;  %1721 = vmatprep.mubr.bf16.mxu0 %v3080_v47  ;;  %v2844_v9 = vld [vmem:[%s4124_s1 + $0x3f8] ss:$60 sps:$4 sm:$0xff]  }
  0x84   :  { %1679 = vmatmul.mubr.bf16.vlgmr.msra.gmra.mrb[4].mxu1 %v3144_v3  ;;  %1691 = vmatprep.subr.bf16.mxu0 %v2747_v10  ;;  %v2838_v10 = vld [vmem:[%s4124_s1 + $0x30] ss:$60 sps:$4 sm:$0xff]  }
  0x85   :  { %1733 = vmatpush1.bf16.msra.mxu1 %v2748_v11  ;;  %1764 = vmatprep.mubr.bf16.mxu1 %v3080_v47  ;;  %v2760_v47 = vld [vmem:[%s4124_s1 + $0x118] ss:$60 sps:$4 sm:$0xff]   ;;  %v2843_v11 = vld [vmem:[%s4124_s1 + $0xac] ss:$60 sps:$4 sm:$0xff]  }
  0x86   :  { %1734 = vmatprep.subr.bf16.mxu1 %v2756_v12  ;;  %v2845_v12 = vld [vmem:[%s4124_s1 + $0x38] ss:$60 sps:$4 sm:$0xff]  }
  0x87   :  { %1692 = vmatpush1.bf16.msra.mxu0 %v2745_v13  ;;  %v2849_v13 = vld [vmem:[%s4124_s1 + $0x470] ss:$60 sps:$4 sm:$0xff]  }
  0x88   :  { %1693 = vmatprep.subr.bf16.mxu0 %v2753_v14  ;;  %v2841_v14 = vld [vmem:[%s4124_s1 + $0xa8] ss:$60 sps:$4 sm:$0xff]  }
  0x89   :  { %1735 = vmatpush1.bf16.msra.mxu1 %v2754_v15  ;;  %v2906_v15 = vld [vmem:[%s4125_s0 + $0x4] ss:$8 sps:$4 sm:$0xff]  }
  0x8a   :  { %1736 = vmatprep.subr.bf16.mxu1 %v2762_v16  ;;  %v2848_v16 = vld [vmem:[%s4124_s1 + $0x124] ss:$60 sps:$4 sm:$0xff]  }
  0x8b   :  { %1694 = vmatpush1.bf16.msra.mxu0 %v2751_v17  ;;  %v2850_v17 = vld [vmem:[%s4124_s1 + $0xb0] ss:$60 sps:$4 sm:$0xff]  }
  0x8c   :  { %1695 = vmatprep.subr.bf16.mxu0 %v2759_v18  ;;  %v2854_v18 = vld [vmem:[%s4124_s1 + $0x4e8] ss:$60 sps:$4 sm:$0xff]  }
  0x8d   :  { %1737 = vmatpush1.bf16.msra.mxu1 %v2760_v47  ;;  %v2846_v47 = vld [vmem:[%s4124_s1 + $0x120] ss:$60 sps:$4 sm:$0xff]  }
  0x8e   :  { %1738 = vmatprep.subr.bf16.mxu1 %v2768_v19  ;;  %v2853_v19 = vld [vmem:[%s4124_s1 + $0x19c] ss:$60 sps:$4 sm:$0xff]  }
  0x8f   :  { %1696 = vmatpush1.bf16.msra.mxu0 %v2757_v20  ;;  %v2855_v20 = vld [vmem:[%s4124_s1 + $0x128] ss:$60 sps:$4 sm:$0xff]  }
  0x90   :  { %1697 = vmatprep.subr.bf16.mxu0 %v2765_v21  ;;  %v2859_v21 = vld [vmem:[%s4124_s1 + $0x560] ss:$60 sps:$4 sm:$0xff]  }
  0x91   :  { %1739 = vmatpush1.bf16.msra.mxu1 %v2766_v22  ;;  %v2851_v22 = vld [vmem:[%s4124_s1 + $0x198] ss:$60 sps:$4 sm:$0xff]  }
  0x92   :  { %1740 = vmatprep.subr.bf16.mxu1 %v2774_v23  ;;  %v2858_v23 = vld [vmem:[%s4124_s1 + $0x214] ss:$60 sps:$4 sm:$0xff]  }
  0x93   :  { %1698 = vmatpush1.bf16.msra.mxu0 %v2763_v24  ;;  %v2860_v24 = vld [vmem:[%s4124_s1 + $0x1a0] ss:$60 sps:$4 sm:$0xff]  }
  0x94   :  { %1699 = vmatprep.subr.bf16.mxu0 %v2771_v25  ;;  %v2864_v25 = vld [vmem:[%s4124_s1 + $0x5d8] ss:$60 sps:$4 sm:$0xff]  }
  0x95   :  { %1741 = vmatpush1.bf16.msra.mxu1 %v2772_v26  ;;  %v2856_v26 = vld [vmem:[%s4124_s1 + $0x210] ss:$60 sps:$4 sm:$0xff]  }
  0x96   :  { %1742 = vmatprep.subr.bf16.mxu1 %v2780_v27  ;;  %v2863_v27 = vld [vmem:[%s4124_s1 + $0x28c] ss:$60 sps:$4 sm:$0xff]  }
  0x97   :  { %1700 = vmatpush1.bf16.msra.mxu0 %v2769_v28  ;;  %v2865_v28 = vld [vmem:[%s4124_s1 + $0x218] ss:$60 sps:$4 sm:$0xff]  }
  0x98   :  { %1701 = vmatprep.subr.bf16.mxu0 %v2777_v29  ;;  %v2869_v29 = vld [vmem:[%s4124_s1 + $0x650] ss:$60 sps:$4 sm:$0xff]  }
  0x99   :  { %1743 = vmatpush1.bf16.msra.mxu1 %v2778_v30  ;;  %v2861_v30 = vld [vmem:[%s4124_s1 + $0x288] ss:$60 sps:$4 sm:$0xff]  }
  0x9a   :  { %1744 = vmatprep.subr.bf16.mxu1 %v2786_v31  ;;  %v2868_v31 = vld [vmem:[%s4124_s1 + $0x304] ss:$60 sps:$4 sm:$0xff]  }
  0x9b   :  { %1702 = vmatpush1.bf16.msra.mxu0 %v2775_v32  ;;  %v2870_v32 = vld [vmem:[%s4124_s1 + $0x290] ss:$60 sps:$4 sm:$0xff]  }
  0x9c   :  { %1703 = vmatprep.subr.bf16.mxu0 %v2783_v33  ;;  %v2874_v33 = vld [vmem:[%s4124_s1 + $0x6c8] ss:$60 sps:$4 sm:$0xff]  }
  0x9d   :  { %1745 = vmatpush1.bf16.msra.mxu1 %v2784_v34  ;;  %v2866_v34 = vld [vmem:[%s4124_s1 + $0x300] ss:$60 sps:$4 sm:$0xff]  }
  0x9e   :  { %1746 = vmatprep.subr.bf16.mxu1 %v2792_v35  ;;  %v2873_v35 = vld [vmem:[%s4124_s1 + $0x37c] ss:$60 sps:$4 sm:$0xff]  }
  0x9f   :  { %1704 = vmatpush1.bf16.msra.mxu0 %v2781_v36  ;;  %v2875_v36 = vld [vmem:[%s4124_s1 + $0x308] ss:$60 sps:$4 sm:$0xff]  }
  0xa0   :  { %1705 = vmatprep.subr.bf16.mxu0 %v2789_v37  ;;  %v2879_v37 = vld [vmem:[%s4124_s1 + $0x740] ss:$60 sps:$4 sm:$0xff]  }
  0xa1   :  { %1747 = vmatpush1.bf16.msra.mxu1 %v2790_v38  ;;  %v2871_v38 = vld [vmem:[%s4124_s1 + $0x378] ss:$60 sps:$4 sm:$0xff]  }
  0xa2   :  { %1748 = vmatprep.subr.bf16.mxu1 %v2798_v39  ;;  %v2878_v39 = vld [vmem:[%s4124_s1 + $0x3f4] ss:$60 sps:$4 sm:$0xff]  }
  0xa3   :  { %1706 = vmatpush1.bf16.msra.mxu0 %v2787_v40  ;;  %v2880_v40 = vld [vmem:[%s4124_s1 + $0x380] ss:$60 sps:$4 sm:$0xff]  }
  0xa4   :  { %1707 = vmatprep.subr.bf16.mxu0 %v2795_v41  ;;  %v2876_v41 = vld [vmem:[%s4124_s1 + $0x3f0] ss:$60 sps:$4 sm:$0xff]  }
  0xa5   :  { %1749 = vmatpush1.bf16.msra.mxu1 %v2796_v42  ;;  %v2883_v42 = vld [vmem:[%s4124_s1 + $0x46c] ss:$60 sps:$4 sm:$0xff]  }
  0xa6   :  { %1750 = vmatprep.subr.bf16.mxu1 %v2804_v43  ;;  %v2881_v43 = vld [vmem:[%s4124_s1 + $0x468] ss:$60 sps:$4 sm:$0xff]  }
  0xa7   :  { %1708 = vmatpush1.bf16.msra.mxu0 %v2793_v44  ;;  %v2886_v44 = vld [vmem:[%s4124_s1 + $0x4e4] ss:$60 sps:$4 sm:$0xff]  }
  0xa8   :  { %1709 = vmatprep.subr.bf16.mxu0 %v2801_v45  ;;  %v2884_v45 = vld [vmem:[%s4124_s1 + $0x4e0] ss:$60 sps:$4 sm:$0xff]  }
  0xa9   :  { %1751 = vmatpush1.bf16.msra.mxu1 %v2802_v46  ;;  %v2889_v46 = vld [vmem:[%s4124_s1 + $0x55c] ss:$60 sps:$4 sm:$0xff]  }
  0xaa   :  { %1752 = vmatprep.subr.bf16.mxu1 %v2810_v48  ;;  %v2887_v48 = vld [vmem:[%s4124_s1 + $0x558] ss:$60 sps:$4 sm:$0xff]  }
  0xab   :  { %1710 = vmatpush1.bf16.msra.mxu0 %v2799_v49  ;;  %v2890_v49 = vld [vmem:[%s4124_s1 + $0x5d0] ss:$60 sps:$4 sm:$0xff]  }
  0xac   :  { %1711 = vmatprep.subr.bf16.mxu0 %v2807_v50  ;;  %v2895_v50 = vld [vmem:[%s4124_s1 + $0x64c] ss:$60 sps:$4 sm:$0xff]  }
  0xad   :  { %1753 = vmatpush1.bf16.msra.mxu1 %v2808_v51  ;;  %v2893_v51 = vld [vmem:[%s4124_s1 + $0x648] ss:$60 sps:$4 sm:$0xff]  }
  0xae   :  { %1754 = vmatprep.subr.bf16.mxu1 %v2816_v52  ;;  %v2898_v52 = vld [vmem:[%s4124_s1 + $0x6c4] ss:$60 sps:$4 sm:$0xff]  }
  0xaf   :  { %1712 = vmatpush1.bf16.msra.mxu0 %v2805_v53  ;;  %v2896_v53 = vld [vmem:[%s4124_s1 + $0x6c0] ss:$60 sps:$4 sm:$0xff]  }
  0xb0   :  { %1713 = vmatprep.subr.bf16.mxu0 %v2813_v54  ;;  %v2901_v54 = vld [vmem:[%s4124_s1 + $0x73c] ss:$60 sps:$4 sm:$0xff]  }
  0xb1   :  { %1755 = vmatpush1.bf16.msra.mxu1 %v2814_v55  ;;  %v2899_v55 = vld [vmem:[%s4124_s1 + $0x738] ss:$60 sps:$4 sm:$0xff]  }
  0xb2   :  { %1756 = vmatprep.subr.bf16.mxu1 %v2822_v56  ;;  %v2907_v56 = vld [vmem:[%s4125_s0] ss:$8 sps:$4 sm:$0xff]  }
  0xb3   :  { %1714 = vmatpush1.bf16.msra.mxu0 %v2811_v57 }
  0xb4   :  { %1715 = vmatprep.subr.bf16.mxu0 %v2819_v58 }
  0xb5   :  { %1757 = vmatpush1.bf16.msra.mxu1 %v2820_v59 }
  0xb6   :  { %1758 = vmatprep.subr.bf16.mxu1 %v2828_v60 }
  0xb7   :  { %1716 = vmatpush1.bf16.msra.mxu0 %v2817_v61 }
  0xb8   :  { %1717 = vmatprep.subr.bf16.mxu0 %v2825_v62 }
  0xb9   :  { %1759 = vmatpush1.bf16.msra.mxu1 %v2826_v63 }
  0xba   :  { %1760 = vmatprep.subr.bf16.mxu1 %v2834_v0 }
  0xbb   :  { %1718 = vmatpush1.bf16.msra.mxu0 %v2823_v1 }
  0xbc   :  { %1719 = vmatprep.subr.bf16.mxu0 %v2831_v2 }
  0xbd   :  { %1761 = vmatpush1.bf16.msra.mxu1 %v2832_v4 }
  0xbe   :  { %1762 = vmatprep.subr.bf16.mxu1 %v2837_v5 }
  0xbf   :  { %1720 = vmatpush1.bf16.msra.mxu0 %v2829_v6 }
  0xc0   :  { %1775 = vmatprep.subr.bf16.mxu0 %v2840_v7 }
  0xc1   :  { %1763 = vmatpush1.bf16.msra.mxu1 %v2835_v8 }
  0xc2   :  { %1722 = vmatmul.mubr.bf16.vlgmr.msra.gmra.mrb[8].mxu0 %v3144_v3  ;;  %2522 = vmatprep.subr.bf16.mxu1 %v2844_v9 }
  0xc3   :  { %1776 = vmatpush1.bf16.msra.mxu0 %v2838_v10  ;;  %1807 = vmatprep.mubr.bf16.mxu0 %v2906_v15 }
  0xc4   :  { %1765 = vmatmul.mubr.bf16.vlgmr.msra.gmra.mrb[8].mxu1 %v3144_v3  ;;  %1777 = vmatprep.subr.bf16.mxu0 %v2843_v11 }
  0xc5   :  { %2523 = vmatpush3.bf16.msra.mxu1 %v2845_v12  ;;  %1850 = vmatprep.mubr.bf16.mxu1 %v2906_v15 }
  0xc6   :  { %2524 = vmatprep.subr.bf16.mxu1 %v2849_v13 }
  0xc7   :  { %1778 = vmatpush1.bf16.msra.mxu0 %v2841_v14 }
  0xc8   :  { %1779 = vmatprep.subr.bf16.mxu0 %v2848_v16 }
  0xc9   :  { %2525 = vmatpush3.bf16.msra.mxu1 %v2850_v17 }
  0xca   :  { %2526 = vmatprep.subr.bf16.mxu1 %v2854_v18  ;;  %v3694_v18 = vpop.permute.xlu0 %283 }
  0xcb   :  { %1780 = vmatpush1.bf16.msra.mxu0 %v2846_v47 }
  0xcc   :  { %1781 = vmatprep.subr.bf16.mxu0 %v2853_v19 }
  0xcd   :  { %2527 = vmatpush3.bf16.msra.mxu1 %v2855_v20 }
  0xce   :  { %2528 = vmatprep.subr.bf16.mxu1 %v2859_v21  ;;  %v3696_v47 = vpop.permute.xlu0 %288 }
  0xcf   :  { %1782 = vmatpush1.bf16.msra.mxu0 %v2851_v22 }
  0xd0   :  { %1783 = vmatprep.subr.bf16.mxu0 %v2858_v23 }
  0xd1   :  { %2529 = vmatpush3.bf16.msra.mxu1 %v2860_v24 }
  0xd2   :  { %2530 = vmatprep.subr.bf16.mxu1 %v2864_v25 }
  0xd3   :  { %1784 = vmatpush1.bf16.msra.mxu0 %v2856_v26 }
  0xd4   :  { %1785 = vmatprep.subr.bf16.mxu0 %v2863_v27 }
  0xd5   :  { %2531 = vmatpush3.bf16.msra.mxu1 %v2865_v28 }
  0xd6   :  { %2532 = vmatprep.subr.bf16.mxu1 %v2869_v29 }
  0xd7   :  { %1786 = vmatpush1.bf16.msra.mxu0 %v2861_v30 }
  0xd8   :  { %1787 = vmatprep.subr.bf16.mxu0 %v2868_v31 }
  0xd9   :  { %2533 = vmatpush3.bf16.msra.mxu1 %v2870_v32 }
  0xda   :  { %2534 = vmatprep.subr.bf16.mxu1 %v2874_v33 }
  0xdb   :  { %1788 = vmatpush1.bf16.msra.mxu0 %v2866_v34 }
  0xdc   :  { %1789 = vmatprep.subr.bf16.mxu0 %v2873_v35 }
  0xdd   :  { %2535 = vmatpush3.bf16.msra.mxu1 %v2875_v36 }
  0xde   :  { %2536 = vmatprep.subr.bf16.mxu1 %v2879_v37 }
  0xdf   :  { %1790 = vmatpush1.bf16.msra.mxu0 %v2871_v38 }
  0xe0   :  { %1791 = vmatprep.subr.bf16.mxu0 %v2878_v39 }
  0xe1   :  { %2537 = vmatpush3.bf16.msra.mxu1 %v2880_v40 }
  0xe3   :  { %1792 = vmatpush1.bf16.msra.mxu0 %v2876_v41 }
  0xe4   :  { %1793 = vmatprep.subr.bf16.mxu0 %v2883_v42  ;;  %1851 = vmatmul.mubr.bf16.vlgmr.msra.gmra.mrb[12].mxu1 %v3144_v3  ;;  %v2892_v3 = vld [vmem:[%s4124_s1 + $0x5d4] ss:$60 sps:$4 sm:$0xff]  }
  0xe7   :  { %1794 = vmatpush1.bf16.msra.mxu0 %v2881_v43 }
  0xe8   :  { %1795 = vmatprep.subr.bf16.mxu0 %v2886_v44 }
  0xeb   :  { %1796 = vmatpush1.bf16.msra.mxu0 %v2884_v45 }
  0xec   :  { %1797 = vmatprep.subr.bf16.mxu0 %v2889_v46 }
  0xef   :  { %1798 = vmatpush1.bf16.msra.mxu0 %v2887_v48 }
  0xf0   :  { %1799 = vmatprep.subr.bf16.mxu0 %v2892_v3 }
  0xf3   :  { %1800 = vmatpush1.bf16.msra.mxu0 %v2890_v49 }
  0xf4   :  { %1801 = vmatprep.subr.bf16.mxu0 %v2895_v50 }
  0xf7   :  { %1802 = vmatpush1.bf16.msra.mxu0 %v2893_v51 }
  0xf8   :  { %1803 = vmatprep.subr.bf16.mxu0 %v2898_v52 }
  0xfb   :  { %1804 = vmatpush1.bf16.msra.mxu0 %v2896_v53 }
  0xfc   :  { %1805 = vmatprep.subr.bf16.mxu0 %v2901_v54 }
  0xff   :  { %1806 = vmatpush1.bf16.msra.mxu0 %v2899_v55 }
 0x102   :  { %1808 = vmatmul.mubr.bf16.vlgmr.msra.gmra.mrb[12].mxu0 %v2907_v56 }
 0x115   :  { %v1551_v57 = vpop.f32.mrb[0].mxu0  ;;  %v1594_v60 = vpop.f32.mrb[0].mxu1 }
 0x116   :  { %v1553_v58 = vpop.f32.mrb[1].mxu0  ;;  %v1596_v62 = vpop.f32.mrb[1].mxu1  ;;  %v3699_v19 = vadd.f32 %v1551_v57, %v3694_v18  ;;  %v3713_v24 = vadd.f32 %v1594_v60, %v3694_v18 }
 0x117   :  { %v1555_v59 = vpop.f32.mrb[2].mxu0  ;;  %v1598_v63 = vpop.f32.mrb[2].mxu1  ;;  %v3702_v20 = vadd.f32 %v1553_v58, %v3694_v18  ;;  %v3722_v28 = vadd.f32 %v1596_v62, %v3694_v18 }
 0x118   :  { %v1557_v61 = vpop.f32.mrb[3].mxu0  ;;  %v1600_v0 = vpop.f32.mrb[3].mxu1  ;;  %v3705_v21 = vadd.f32 %v1555_v59, %v3696_v47  ;;  %v3718_v26 = vadd.f32 %v1598_v63, %v3696_v47 }
 0x119   :  { %v3708_v22 = vadd.f32 %v1557_v61, %v3696_v47  ;;  %v1859_v23 = vadd.f32 %v3702_v20, %v3699_v19  ;;  %v3726_v31 = vadd.f32 %v1600_v0, %v3696_v47 }
 0x11b   :  { %v1875_v25 = vadd.f32 %v3708_v22, %v3705_v21  ;;  %v1860_v27 = vadd.f32 %v1859_v23, %v3713_v24 }
 0x11d   :  { %v1876_v30 = vadd.f32 %v1875_v25, %v3718_v26  ;;  %v1861_v36 = vadd.f32 %v1860_v27, %v3722_v28 }
 0x11f   :  { %v1877_v40 = vadd.f32 %v1876_v30, %v3726_v31 }
 0x155   :  { %v1637_v1 = vpop.f32.mrb[4].mxu0 }
 0x156   :  { %v1639_v2 = vpop.f32.mrb[5].mxu0  ;;  %v3729_v32 = vadd.f32 %v1637_v1, %v3694_v18 }
 0x157   :  { %v1641_v4 = vpop.f32.mrb[6].mxu0  ;;  %v1680_v5 = vpop.f32.mrb[4].mxu1  ;;  %v3738_v42 = vadd.f32 %v1639_v2, %v3694_v18 }
 0x158   :  { %v1643_v6 = vpop.f32.mrb[7].mxu0  ;;  %v1682_v7 = vpop.f32.mrb[5].mxu1  ;;  %v3733_v37 = vadd.f32 %v1641_v4, %v3696_v47  ;;  %v1862_v41 = vadd.f32 %v1861_v36, %v3729_v32  ;;  %v3746_v46 = vadd.f32 %v1680_v5, %v3694_v18 }
 0x159   :  { %v1684_v8 = vpop.f32.mrb[6].mxu1  ;;  %v3742_v44 = vadd.f32 %v1643_v6, %v3696_v47  ;;  %v3754_v50 = vadd.f32 %v1682_v7, %v3694_v18 }
 0x15a   :  { %v1686_v9 = vpop.f32.mrb[7].mxu1  ;;  %v1878_v43 = vadd.f32 %v1877_v40, %v3733_v37  ;;  %v1863_v45 = vadd.f32 %v1862_v41, %v3738_v42  ;;  %v3750_v3 = vadd.f32 %v1684_v8, %v3696_v47 }
 0x15b   :  { %v3758_v52 = vadd.f32 %v1686_v9, %v3696_v47 }
 0x15c   :  { %v1879_v48 = vadd.f32 %v1878_v43, %v3742_v44  ;;  %v1864_v49 = vadd.f32 %v1863_v45, %v3746_v46 }
 0x15e   :  { %v1880_v51 = vadd.f32 %v1879_v48, %v3750_v3  ;;  %v1865_v54 = vadd.f32 %v1864_v49, %v3754_v50 }
 0x160   :  { %v1881_v56 = vadd.f32 %v1880_v51, %v3758_v52 }
 0x195   :  { %v1723_v10 = vpop.f32.mrb[8].mxu0 }
 0x196   :  { %v1725_v11 = vpop.f32.mrb[9].mxu0  ;;  %v3761_v53 = vadd.f32 %v1723_v10, %v3694_v18 }
 0x197   :  { %v1727_v12 = vpop.f32.mrb[10].mxu0  ;;  %v1766_v13 = vpop.f32.mrb[8].mxu1  ;;  %v3770_v58 = vadd.f32 %v1725_v11, %v3694_v18 }
 0x198   :  { %v1729_v14 = vpop.f32.mrb[11].mxu0  ;;  %v1768_v15 = vpop.f32.mrb[9].mxu1  ;;  %v3765_v55 = vadd.f32 %v1727_v12, %v3696_v47  ;;  %v1866_v57 = vadd.f32 %v1865_v54, %v3761_v53  ;;  %v3778_v62 = vadd.f32 %v1766_v13, %v3694_v18 }
 0x199   :  { %v1770_v16 = vpop.f32.mrb[10].mxu1  ;;  %v3774_v60 = vadd.f32 %v1729_v14, %v3696_v47  ;;  %v3786_v2 = vadd.f32 %v1768_v15, %v3694_v18 }
 0x19a   :  { %v1772_v17 = vpop.f32.mrb[11].mxu1  ;;  %v1882_v59 = vadd.f32 %v1881_v56, %v3765_v55  ;;  %v1867_v61 = vadd.f32 %v1866_v57, %v3770_v58  ;;  %v3782_v0 = vadd.f32 %v1770_v16, %v3696_v47 }
 0x19b   :  { %v3790_v5 = vadd.f32 %v1772_v17, %v3696_v47 }
 0x19c   :  { %v1883_v63 = vadd.f32 %v1882_v59, %v3774_v60  ;;  %v1868_v1 = vadd.f32 %v1867_v61, %v3778_v62 }
 0x19e   :  { %v1884_v4 = vadd.f32 %v1883_v63, %v3782_v0  ;;  %v1869_v7 = vadd.f32 %v1868_v1, %v3786_v2 }
 0x1a0   :  { %v1885_v12 = vadd.f32 %v1884_v4, %v3790_v5 }
 0x1b7   :  { %v2538_v29 = vpop.f32.mrb[12].mxu1 }
 0x1b8   :  { %v2539_v33 = vpop.f32.mrb[13].mxu1 }
 0x1b9   :  { %v2540_v34 = vadd.f32 %v2539_v33, %v2538_v29  ;;  %v2541_v35 = vpop.f32.mrb[14].mxu1 }
 0x1ba   :  { %v2542_v38 = vpop.f32.mrb[15].mxu1 }
 0x1bb   :  { %v2543_v39 = vadd.f32 %v2542_v38, %v2541_v35  ;;  %v3809_v23 = vadd.f32 %v2540_v34, %v3694_v18  ;;  %v2022_v35 = vld [vmem:[%s4127_s3] sm:$0xff] }
 0x1bc   :  { %v2064_v34 = vld [vmem:[%s4128_s4] sm:$0xff] }
 0x1bd   :  { %v3815_v30 = vadd.f32 %v2543_v39, %v3696_v47 }
 0x1d5   :  { %v1809_v6 = vpop.f32.mrb[12].mxu0 }
 0x1d6   :  { %v3794_v8 = vadd.f32 %v1809_v6, %v3694_v18  ;;  %v1811_v9 = vpop.f32.mrb[13].mxu0 }
 0x1d7   :  { %v3797_v10 = vadd.f32 %v1811_v9, %v3694_v18  ;;  %v1813_v11 = vpop.f32.mrb[14].mxu0  ;;  %v2023_v18 = vld [vmem:[%s4127_s3 + $0x8] sm:$0xff] }
 0x1d8   :  { %v1870_v13 = vadd.f32 %v1869_v7, %v3794_v8  ;;  %v3802_v14 = vadd.f32 %v1813_v11, %v3696_v47  ;;  %v1815_v15 = vpop.f32.mrb[15].mxu0 }
 0x1d9   :  { %v3805_v16 = vadd.f32 %v1815_v15, %v3696_v47 }
 0x1da   :  { %v1886_v17 = vadd.f32 %v1885_v12, %v3802_v14  ;;  %v1871_v25 = vadd.f32 %v1870_v13, %v3797_v10 }
 0x1dc   :  { %v1887_v27 = vadd.f32 %v1886_v17, %v3805_v16  ;;  %v1872_v29 = vadd.f32 %v1871_v25, %v3809_v23 }
 0x1de   :  { %1873 = vadd.xlane.f32.xlu1 %v1872_v29  ;;  %v1888_v33 = vadd.f32 %v1887_v27, %v3815_v30 }
 0x1e2   :  { %1889 = vadd.xlane.f32.xlu1 %v1888_v33 }
 0x1f3   :  { %2026 = vperm.xlu1 %2546, %v2022_v35  }
 0x1f7   :  { %2031 = vperm.xlu1 %2546, %v2023_v18  }
 0x1fb   :  { %2068 = vperm.xlu1 %2546, %v2064_v34  }
 0x26b   :  { %v1874_v47 = vpop.xlane.xlu1 %1873 }
 0x26c   :  { %v3827_v36 = vmul.f32 0.00052083336, %v1874_v47 }
 0x26e   :  { %v3831_v38 = vsub.f32 %v3699_v19, %v3827_v36  ;;  %v3835_v39 = vsub.f32 %v3702_v20, %v3827_v36  ;;  %v3839_v41 = vsub.f32 %v3713_v24, %v3827_v36  ;;  %v3849_v19 = vsub.f32 %v3722_v28, %v3827_v36 }
 0x26f   :  { %v1890_v40 = vpop.xlane.xlu1 %1889  ;;  %v3853_v20 = vsub.f32 %v3729_v32, %v3827_v36  ;;  %v3867_v28 = vsub.f32 %v3738_v42, %v3827_v36  ;;  %v3873_v57 = vsub.f32 %v3746_v46, %v3827_v36  ;;  %v3887_v63 = vsub.f32 %v3754_v50, %v3827_v36 }
 0x270   :  { %v3841_v43 = vmul.f32 0.00052083336, %v1890_v40  ;;  %v1924_v45 = vmul.f32 %v3831_v38, %v3831_v38  ;;  %v1925_v48 = vmul.f32 %v3835_v39, %v3835_v39  ;;  %v1926_v24 = vmul.f32 %v3839_v41, %v3839_v41 }
 0x271   :  { %v1927_v32 = vmul.f32 %v3849_v19, %v3849_v19  ;;  %v1929_v46 = vmul.f32 %v3867_v28, %v3867_v28  ;;  %v1930_v6 = vmul.f32 %v3873_v57, %v3873_v57  ;;  %v3921_v17 = vsub.f32 %v3778_v62, %v3827_v36 }
 0x272   :  { %v1954_v49 = vadd.f32 %v1925_v48, %v1924_v45  ;;  %v3859_v51 = vsub.f32 %v3705_v21, %v3841_v43  ;;  %v3863_v54 = vsub.f32 %v3708_v22, %v3841_v43  ;;  %v1928_v21 = vmul.f32 %v3853_v20, %v3853_v20 }
 0x273   :  { %v3879_v22 = vsub.f32 %v3718_v26, %v3841_v43  ;;  %v3893_v4 = vsub.f32 %v3726_v31, %v3841_v43  ;;  %v3897_v26 = vsub.f32 %v3761_v53, %v3827_v36  ;;  %v3903_v50 = vsub.f32 %v3733_v37, %v3841_v43 }
 0x274   :  { %v1955_v56 = vadd.f32 %v1954_v49, %v1926_v24  ;;  %v1939_v42 = vmul.f32 %v3859_v51, %v3859_v51  ;;  %v1940_v61 = vmul.f32 %v3863_v54, %v3863_v54  ;;  %v3909_v31 = vsub.f32 %v3770_v58, %v3827_v36 }
 0x275   :  { %v1941_v9 = vmul.f32 %v3879_v22, %v3879_v22  ;;  %v1931_v53 = vmul.f32 %v3887_v63, %v3887_v63  ;;  %v3915_v13 = vsub.f32 %v3742_v44, %v3841_v43  ;;  %v1942_v37 = vmul.f32 %v3893_v4, %v3893_v4 }
 0x276   :  { %v1956_v59 = vadd.f32 %v1955_v56, %v1927_v32  ;;  %v1970_v11 = vadd.f32 %v1940_v61, %v1939_v42  ;;  %v1932_v58 = vmul.f32 %v3897_v26, %v3897_v26  ;;  %v3927_v27 = vsub.f32 %v3750_v3, %v3841_v43 }
 0x277   :  { %v1943_v44 = vmul.f32 %v3903_v50, %v3903_v50  ;;  %v3933_v33 = vsub.f32 %v3786_v2, %v3827_v36  ;;  %v1933_v62 = vmul.f32 %v3909_v31, %v3909_v31  ;;  %v3939_v18 = vsub.f32 %v3758_v52, %v3841_v43 }
 0x278   :  { %v1957_v1 = vadd.f32 %v1956_v59, %v1928_v21  ;;  %v1971_v15 = vadd.f32 %v1970_v11, %v1941_v9  ;;  %v1944_v3 = vmul.f32 %v3915_v13, %v3915_v13  ;;  %v3945_v47 = vsub.f32 %v3794_v8, %v3827_v36 }
 0x279   :  { %v1934_v2 = vmul.f32 %v3921_v17, %v3921_v17  ;;  %v3951_v45 = vsub.f32 %v3765_v55, %v3841_v43  ;;  %v1945_v52 = vmul.f32 %v3927_v27, %v3927_v27  ;;  %v3957_v24 = vsub.f32 %v3797_v10, %v3827_v36 }
 0x27a   :  { %v1958_v7 = vadd.f32 %v1957_v1, %v1929_v46  ;;  %v1972_v29 = vadd.f32 %v1971_v15, %v1942_v37  ;;  %v1935_v8 = vmul.f32 %v3933_v33, %v3933_v33  ;;  %v3963_v32 = vsub.f32 %v3774_v60, %v3841_v43 }
 0x27b   :  { %v1946_v55 = vmul.f32 %v3939_v18, %v3939_v18  ;;  %v1908_v21 = vsub.f32 %v3809_v23, %v3827_v36  ;;  %v1936_v59 = vmul.f32 %v3945_v47, %v3945_v47  ;;  %v3973_v42 = vsub.f32 %v3782_v0, %v3841_v43 }
 0x27c   :  { %v1959_v12 = vadd.f32 %v1958_v7, %v1930_v6  ;;  %v1973_v34 = vadd.f32 %v1972_v29, %v1943_v44  ;;  %v1947_v61 = vmul.f32 %v3951_v45, %v3951_v45  ;;  %v1937_v46 = vmul.f32 %v3957_v24, %v3957_v24 }
 0x27d   :  { %v3981_v6 = vsub.f32 %v3790_v5, %v3841_v43  ;;  %v1948_v23 = vmul.f32 %v3963_v32, %v3963_v32  ;;  %v1938_v7 = vmul.f32 %v1908_v21, %v1908_v21  ;;  %v3987_v0 = vsub.f32 %v3802_v14, %v3841_v43 }
 0x27e   :  { %v1960_v25 = vadd.f32 %v1959_v12, %v1931_v53  ;;  %v1974_v48 = vadd.f32 %v1973_v34, %v1944_v3  ;;  %v1949_v11 = vmul.f32 %v3973_v42, %v3973_v42  ;;  %v3993_v37 = vsub.f32 %v3805_v16, %v3841_v43  ;;  %v2065_v3 = vld [vmem:[%s4128_s4 + $0x8] sm:$0xff] }
 0x27f   :  { %v1950_v5 = vmul.f32 %v3981_v6, %v3981_v6  ;;  %v1951_v14 = vmul.f32 %v3987_v0, %v3987_v0 }
 0x280   :  { %v1961_v35 = vadd.f32 %v1960_v25, %v1932_v58  ;;  %v1975_v56 = vadd.f32 %v1974_v48, %v1945_v52  ;;  %v3999_v58 = vsub.f32 %v3815_v30, %v3841_v43  ;;  %v1952_v44 = vmul.f32 %v3993_v37, %v3993_v37  ;;  %v2027_v30 = vpop.permute.xlu1 %2026 }
 0x282   :  { %v1962_v40 = vadd.f32 %v1961_v35, %v1933_v62  ;;  %v1976_v60 = vadd.f32 %v1975_v56, %v1946_v55  ;;  %v1953_v16 = vmul.f32 %v3999_v58, %v3999_v58 }
 0x284   :  { %v1963_v49 = vadd.f32 %v1962_v40, %v1934_v2  ;;  %v1977_v36 = vadd.f32 %v1976_v60, %v1947_v61  ;;  %v4010_v43 = vpop.permute.xlu1 %2031 }
 0x286   :  { %v1964_v10 = vadd.f32 %v1963_v49, %v1935_v8  ;;  %v1978_v53 = vadd.f32 %v1977_v36, %v1948_v23 }
 0x288   :  { %v1965_v1 = vadd.f32 %v1964_v10, %v1936_v59  ;;  %v1979_v15 = vadd.f32 %v1978_v53, %v1949_v11  ;;  %v4012_v52 = vpop.permute.xlu1 %2068 }
 0x28a   :  { %v1966_v9 = vadd.f32 %v1965_v1, %v1937_v46  ;;  %v1980_v25 = vadd.f32 %v1979_v15, %v1950_v5 }
 0x28c   :  { %v1967_v12 = vadd.f32 %v1966_v9, %v1938_v7  ;;  %v1981_v29 = vadd.f32 %v1980_v25, %v1951_v14 }
 0x28e   :  { %1968 = vadd.xlane.f32.xlu0 %v1967_v12  ;;  %v1982_v62 = vadd.f32 %v1981_v29, %v1952_v44 }
 0x290   :  { %v1983_v35 = vadd.f32 %v1982_v62, %v1953_v16 }
 0x292   :  { %1984 = vadd.xlane.f32.xlu1 %v1983_v35 }
 0x2a3   :  { %2073 = vperm.xlu1 %2546, %v2065_v3  }
 0x31b   :  { %v1969_v34 = vpop.xlane.xlu0 %1968 }
 0x31c   :  { %v1986_v2 = vmul.f32 0.00052083336, %v1969_v34 }
 0x31e   :  { %v1988_v40 = vadd.f32 1e-05, %v1986_v2 }
 0x31f   :  { %v1985_v48 = vpop.xlane.xlu1 %1984 }
 0x320   :  { %2902 = vrsqrt.f32 %v1988_v40  ;;  %v1987_v8 = vmul.f32 0.00052083336, %v1985_v48 }
 0x322   :  { %v1989_v49 = vadd.f32 1e-05, %v1987_v8 }
 0x324   :  { %2904 = vrsqrt.f32 %v1989_v49 }
 0x32a   :  { %v2903_v55 = vpop.eup %2902 }
 0x32b   :  { %v1992_v56 = vmul.f32 %v2903_v55, %v3831_v38  ;;  %v1993_v59 = vmul.f32 %v2903_v55, %v3835_v39  ;;  %v1994_v10 = vmul.f32 %v2903_v55, %v3839_v41  ;;  %v1995_v61 = vmul.f32 %v2903_v55, %v3849_v19 }
 0x32c   :  { %v1996_v60 = vmul.f32 %v2903_v55, %v3853_v20  ;;  %v1997_v46 = vmul.f32 %v2903_v55, %v3867_v28  ;;  %v1998_v1 = vmul.f32 %v2903_v55, %v3873_v57  ;;  %v1999_v23 = vmul.f32 %v2903_v55, %v3887_v63 }
 0x32d   :  { %v2000_v36 = vmul.f32 %v2903_v55, %v3897_v26  ;;  %v2001_v7 = vmul.f32 %v2903_v55, %v3909_v31  ;;  %v2002_v38 = vmul.f32 %v2903_v55, %v3921_v17  ;;  %v2003_v39 = vmul.f32 %v2903_v55, %v3933_v33 }
 0x32e   :  { %v2004_v41 = vmul.f32 %v2903_v55, %v3945_v47  ;;  %v2005_v19 = vmul.f32 %v2903_v55, %v3957_v24  ;;  %v2006_v9 = vmul.f32 %v2903_v55, %v1908_v21  ;;  %v2034_v20 = vmul.f32 %v2027_v30, %v1992_v56  ;;  %v2905_v21 = vpop.eup %2904 }
 0x32f   :  { %v2035_v11 = vmul.f32 %v2027_v30, %v1993_v59  ;;  %v2036_v28 = vmul.f32 %v2027_v30, %v1994_v10  ;;  %v2037_v53 = vmul.f32 %v2027_v30, %v1995_v61  ;;  %v2038_v57 = vmul.f32 %v2027_v30, %v1996_v60 }
 0x330   :  { %v2039_v12 = vmul.f32 %v2027_v30, %v1997_v46  ;;  %v2040_v63 = vmul.f32 %v2027_v30, %v1998_v1  ;;  %v2041_v5 = vmul.f32 %v2027_v30, %v1999_v23  ;;  %v2042_v26 = vmul.f32 %v2027_v30, %v2000_v36 }
 0x331   :  { %v2043_v15 = vmul.f32 %v2027_v30, %v2001_v7  ;;  %v2044_v31 = vmul.f32 %v2027_v30, %v2002_v38  ;;  %v2045_v14 = vmul.f32 %v2027_v30, %v2003_v39  ;;  %v2046_v17 = vmul.f32 %v2027_v30, %v2004_v41 }
 0x332   :  { %v2047_v25 = vmul.f32 %v2027_v30, %v2005_v19  ;;  %v2048_v33 = vmul.f32 %v2027_v30, %v2006_v9  ;;  %v4029_v47 = vadd.f32 %v4012_v52, %v2034_v20  ;;  %v2077_v24 = vadd.f32 %v4012_v52, %v2035_v11 }
 0x333   :  { %v2078_v44 = vadd.f32 %v4012_v52, %v2036_v28  ;;  %v2079_v29 = vadd.f32 %v4012_v52, %v2037_v53  ;;  %v2080_v16 = vadd.f32 %v4012_v52, %v2038_v57  ;;  %v2081_v62 = vadd.f32 %v4012_v52, %v2039_v12 }
 0x334   :  { %v2007_v35 = vmul.f32 %v2905_v21, %v3859_v51  ;;  %v2008_v3 = vmul.f32 %v2905_v21, %v3863_v54  ;;  %v2009_v30 = vmul.f32 %v2905_v21, %v3879_v22  ;;  %v2010_v34 = vmul.f32 %v2905_v21, %v3893_v4 }
 0x335   :  { %v2011_v2 = vmul.f32 %v2905_v21, %v3903_v50  ;;  %v2012_v40 = vmul.f32 %v2905_v21, %v3915_v13  ;;  %v2013_v48 = vmul.f32 %v2905_v21, %v3927_v27  ;;  %v2014_v8 = vmul.f32 %v2905_v21, %v3939_v18 }
 0x336   :  { %v2015_v49 = vmul.f32 %v2905_v21, %v3951_v45  ;;  %v2016_v55 = vmul.f32 %v2905_v21, %v3963_v32  ;;  %v2017_v51 = vmul.f32 %v2905_v21, %v3973_v42  ;;  %v2018_v54 = vmul.f32 %v2905_v21, %v3981_v6 }
 0x337   :  { %v2019_v22 = vmul.f32 %v2905_v21, %v3987_v0  ;;  %v2020_v4 = vmul.f32 %v2905_v21, %v3993_v37  ;;  %v2021_v50 = vmul.f32 %v2905_v21, %v3999_v58  ;;  %v2049_v13 = vmul.f32 %v4010_v43, %v2007_v35 }
 0x338   :  { %v2050_v27 = vmul.f32 %v4010_v43, %v2008_v3  ;;  %v2051_v18 = vmul.f32 %v4010_v43, %v2009_v30  ;;  %v2052_v45 = vmul.f32 %v4010_v43, %v2010_v34  ;;  %v2053_v32 = vmul.f32 %v4010_v43, %v2011_v2 }
 0x339   :  { %v2054_v42 = vmul.f32 %v4010_v43, %v2012_v40  ;;  %v2055_v6 = vmul.f32 %v4010_v43, %v2013_v48  ;;  %v2056_v0 = vmul.f32 %v4010_v43, %v2014_v8  ;;  %v2057_v37 = vmul.f32 %v4010_v43, %v2015_v49 }
 0x33a   :  { %v2058_v58 = vmul.f32 %v4010_v43, %v2016_v55  ;;  %v2059_v56 = vmul.f32 %v4010_v43, %v2017_v51  ;;  %v2060_v59 = vmul.f32 %v4010_v43, %v2018_v54  ;;  %v2061_v10 = vmul.f32 %v4010_v43, %v2019_v22 }
 0x33b   :  { %v2062_v61 = vmul.f32 %v4010_v43, %v2020_v4  ;;  %v2063_v60 = vmul.f32 %v4010_v43, %v2021_v50  ;;  %v2082_v46 = vadd.f32 %v4012_v52, %v2040_v63  ;;  %v2083_v1 = vadd.f32 %v4012_v52, %v2041_v5 }
 0x33c   :  { %v2084_v23 = vadd.f32 %v4012_v52, %v2042_v26  ;;  %v2085_v36 = vadd.f32 %v4012_v52, %v2043_v15  ;;  %v2086_v7 = vadd.f32 %v4012_v52, %v2044_v31  ;;  %v2087_v38 = vadd.f32 %v4012_v52, %v2045_v14 }
 0x33d   :  { %v2088_v39 = vadd.f32 %v4012_v52, %v2046_v17  ;;  %v2089_v41 = vadd.f32 %v4012_v52, %v2047_v25  ;;  %v2090_v19 = vadd.f32 %v4012_v52, %v2048_v33  ;;  %v2106_v43 = vmax.f32 %v4029_v47, 0.0 }
 0x33e   :  { %v2107_v9 = vmax.f32 %v2077_v24, 0.0  ;;  %v2108_v20 = vmax.f32 %v2078_v44, 0.0  ;;  %v2109_v11 = vmax.f32 %v2079_v29, 0.0  ;;  %v2110_v28 = vmax.f32 %v2080_v16, 0.0  ;;  %v2074_v24 = vpop.permute.xlu1 %2073 }
 0x33f   :  { %v2111_v53 = vmax.f32 %v2081_v62, 0.0  ;;  %v2112_v57 = vmax.f32 %v2082_v46, 0.0  ;;  %v2113_v12 = vmax.f32 %v2083_v1, 0.0  ;;  %v2114_v63 = vmax.f32 %v2084_v23, 0.0 }
 0x340   :  { %v2115_v5 = vmax.f32 %v2085_v36, 0.0  ;;  %v2116_v26 = vmax.f32 %v2086_v7, 0.0  ;;  %v2117_v15 = vmax.f32 %v2087_v38, 0.0  ;;  %v2118_v31 = vmax.f32 %v2088_v39, 0.0 }
 0x341   :  { %v2119_v14 = vmax.f32 %v2089_v41, 0.0  ;;  %v2120_v17 = vmax.f32 %v2090_v19, 0.0  ;;  %v2506_v21 = vpack.c.bf16 %v2107_v9, %v2106_v43  ;;  %v2507_v25 = vpack.c.bf16 %v2109_v11, %v2108_v20 }
 0x342   :  { %v2508_v35 = vpack.c.bf16 %v2111_v53, %v2110_v28  ;;  %v2509_v52 = vpack.c.bf16 %v2113_v12, %v2112_v57  ;;  %v2510_v33 = vpack.c.bf16 %v2115_v5, %v2114_v63  ;;  %v2511_v47 = vpack.c.bf16 %v2117_v15, %v2116_v26 }
 0x343   :  { %v2512_v44 = vpack.c.bf16 %v2119_v14, %v2118_v31  ;;  %v2513_v29 = vpack.c.bf16 %v2120_v17, %v2120_v17  ;;  %2228 = vst [vmem:[%s4129_s5] sm:$0xff] %v2506_v21  ;;  %2229 = vst [vmem:[%s4129_s5 + $0x8] sm:$0xff] %v2507_v25  ;;  %v2091_v16 = vadd.f32 %v2074_v24, %v2049_v13 }
 0x344   :  { %v2092_v62 = vadd.f32 %v2074_v24, %v2050_v27  ;;  %2230 = vst [vmem:[%s4129_s5 + $0x10] sm:$0xff] %v2508_v35  ;;  %2231 = vst [vmem:[%s4129_s5 + $0x18] sm:$0xff] %v2509_v52  ;;  %v2093_v3 = vadd.f32 %v2074_v24, %v2051_v18  ;;  %v2094_v30 = vadd.f32 %v2074_v24, %v2052_v45 }
 0x345   :  { %2232 = vst [vmem:[%s4129_s5 + $0x20] sm:$0xff] %v2510_v33  ;;  %2233 = vst [vmem:[%s4129_s5 + $0x28] sm:$0xff] %v2511_v47  ;;  %v2095_v34 = vadd.f32 %v2074_v24, %v2053_v32  ;;  %v2096_v2 = vadd.f32 %v2074_v24, %v2054_v42  ;;  %v2097_v40 = vadd.f32 %v2074_v24, %v2055_v6  ;;  %v2121_v50 = vmax.f32 %v2091_v16, 0.0 }
 0x346   :  { %2234 = vst [vmem:[%s4129_s5 + $0x30] sm:$0xff] %v2512_v44  ;;  %2235 = vst [vmem:[%s4129_s5 + $0x38] sm:$0xf] %v2513_v29  ;;  %v2098_v48 = vadd.f32 %v2074_v24, %v2056_v0  ;;  %v2099_v8 = vadd.f32 %v2074_v24, %v2057_v37  ;;  %v2100_v49 = vadd.f32 %v2074_v24, %v2058_v58  ;;  %v2122_v13 = vmax.f32 %v2092_v62, 0.0 }
 0x347   :  { %v2101_v55 = vadd.f32 %v2074_v24, %v2059_v56  ;;  %v2102_v51 = vadd.f32 %v2074_v24, %v2060_v59  ;;  %v2103_v54 = vadd.f32 %v2074_v24, %v2061_v10  ;;  %v2104_v22 = vadd.f32 %v2074_v24, %v2062_v61 }
 0x348   :  { %v2105_v4 = vadd.f32 %v2074_v24, %v2063_v60  ;;  %v2123_v27 = vmax.f32 %v2093_v3, 0.0  ;;  %v2124_v18 = vmax.f32 %v2094_v30, 0.0  ;;  %v2125_v45 = vmax.f32 %v2095_v34, 0.0 }
 0x349   :  { %v2126_v32 = vmax.f32 %v2096_v2, 0.0  ;;  %v2127_v42 = vmax.f32 %v2097_v40, 0.0  ;;  %v2128_v46 = vmax.f32 %v2098_v48, 0.0  ;;  %v2129_v1 = vmax.f32 %v2099_v8, 0.0 }
 0x34a   :  { %v2130_v23 = vmax.f32 %v2100_v49, 0.0  ;;  %v2131_v36 = vmax.f32 %v2101_v55, 0.0  ;;  %v2132_v6 = vmax.f32 %v2102_v51, 0.0  ;;  %v2133_v0 = vmax.f32 %v2103_v54, 0.0 }
 0x34b   :  { %v2134_v37 = vmax.f32 %v2104_v22, 0.0  ;;  %v2135_v58 = vmax.f32 %v2105_v4, 0.0  ;;  %v2514_v56 = vpack.c.bf16 %v2122_v13, %v2121_v50  ;;  %v2515_v59 = vpack.c.bf16 %v2124_v18, %v2123_v27 }
 0x34c   :  { %v2516_v10 = vpack.c.bf16 %v2126_v32, %v2125_v45  ;;  %v2517_v61 = vpack.c.bf16 %v2128_v46, %v2127_v42  ;;  %v2518_v60 = vpack.c.bf16 %v2130_v23, %v2129_v1  ;;  %v2519_v7 = vpack.c.bf16 %v2132_v6, %v2131_v36 }
 0x34d   :  { %v2520_v38 = vpack.c.bf16 %v2134_v37, %v2133_v0  ;;  %v2521_v39 = vpack.c.bf16 %v2135_v58, %v2135_v58  ;;  %2236 = vst [vmem:[%s4129_s5 + $0x3c] sm:$0xff] %v2514_v56  ;;  %2237 = vst [vmem:[%s4129_s5 + $0x44] sm:$0xff] %v2515_v59 }
 0x34e   :  { %2238 = vst [vmem:[%s4129_s5 + $0x4c] sm:$0xff] %v2516_v10  ;;  %2239 = vst [vmem:[%s4129_s5 + $0x54] sm:$0xff] %v2517_v61 }
 0x34f   :  { %2240 = vst [vmem:[%s4129_s5 + $0x5c] sm:$0xff] %v2518_v60  ;;  %2241 = vst [vmem:[%s4129_s5 + $0x64] sm:$0xff] %v2519_v7 }
 0x350   :  { %2242 = vst [vmem:[%s4129_s5 + $0x6c] sm:$0xff] %v2520_v38  ;;  %2243 = vst [vmem:[%s4129_s5 + $0x74] sm:$0xf] %v2521_v39 }

// kernel: a3c_forward.5
= control target key start
LH: loop header
LB: loop body
LE: loop exit
PB: predicated region body
PF: predicated region fallthrough
CT: control target
= control target key end

     0   :  { %v1142_v1 = vmov 0   ;;  %vm539_vm0 = vcmask 523264   ;;  %vm874_vm1 = vcmask 1043456   ;;  %vm875_vm2 = vcmask 523268   ;;  %s1515_s1 = inlined_call_operand.vmem [shape: bf16[576,192], index: 1, kind: input, shape index: {}]   ;;  %s1516_s0 = inlined_call_operand.vmem [shape: bf16[32,576], index: 0, kind: input, shape index: {}]   ;;  %s1517_s2 = inlined_call_operand.vmem [shape: f32[32,1], index: 2, kind: input, shape index: {}]   ;;  %s1518_s3 = inlined_call_operand.vmem [shape: f32[32,1], index: 3, kind: input, shape index: {}]   ;;  %s1519_s4 = inlined_call_operand.vmem [shape: f32[32,1], index: 4, kind: input, shape index: {}]   ;;  %s1520_s5 = inlined_call_operand.vmem [shape: bf16[32,192], index: 5, kind: output, shape index: {}]  }
   0x1   :  { %v1012_v0 = vld [vmem:[%s1515_s1 + $0x4] ss:$8 sps:$4 sm:$0xff]   ;;  %1011 = vset.pattern.permute.xlu1 %v1142_v1  ;;  %1010 = vset.pattern.permute.xlu0 %v1142_v1  ;;  %v1016_v3 = vld [vmem:[%s1515_s1] ss:$8 sps:$4 sm:$0xff]   ;;  %v1018_v5 = vld [vmem:[%s1515_s1 + $0x14] ss:$8 sps:$4 sm:$0xff]  }
   0x2   :  { %v1014_v2 = vld [vmem:[%s1515_s1 + $0x104] ss:$8 sps:$4 sm:$0xff]   ;;  %546 = vmatprep.subr.bf16.mxu1 %v1012_v0  ;;  %v1017_v4 = vld [vmem:[%s1515_s1 + $0x100] ss:$8 sps:$4 sm:$0xff]   ;;  %v1020_v6 = vld [vmem:[%s1515_s1 + $0x114] ss:$8 sps:$4 sm:$0xff]  }
   0x3   :  { %599 = vmatprep.subr.bf16.mxu0 %v1014_v2  ;;  %547 = vmatpush1.bf16.msra.mxu1 %v1016_v3  ;;  %v1022_v7 = vld [vmem:[%s1515_s1 + $0x10] ss:$8 sps:$4 sm:$0xff]   ;;  %v1024_v9 = vld [vmem:[%s1515_s1 + $0x24] ss:$8 sps:$4 sm:$0xff]   ;;  %v1028_v11 = vld [vmem:[%s1515_s1 + $0x20] ss:$8 sps:$4 sm:$0xff]  }
   0x4   :  { %600 = vmatpush1.bf16.msra.mxu0 %v1017_v4  ;;  %548 = vmatprep.subr.bf16.mxu1 %v1018_v5  ;;  %v1023_v8 = vld [vmem:[%s1515_s1 + $0x110] ss:$8 sps:$4 sm:$0xff]   ;;  %v1026_v10 = vld [vmem:[%s1515_s1 + $0x124] ss:$8 sps:$4 sm:$0xff]   ;;  %v1029_v12 = vld [vmem:[%s1515_s1 + $0x120] ss:$8 sps:$4 sm:$0xff]  }
   0x5   :  { %601 = vmatprep.subr.bf16.mxu0 %v1020_v6  ;;  %v1030_v13 = vld [vmem:[%s1515_s1 + $0x34] ss:$8 sps:$4 sm:$0xff]   ;;  %v1034_v15 = vld [vmem:[%s1515_s1 + $0x30] ss:$8 sps:$4 sm:$0xff]   ;;  %v1036_v17 = vld [vmem:[%s1515_s1 + $0x44] ss:$8 sps:$4 sm:$0xff]  }
   0x6   :  { %v1032_v14 = vld [vmem:[%s1515_s1 + $0x134] ss:$8 sps:$4 sm:$0xff]   ;;  %v1035_v16 = vld [vmem:[%s1515_s1 + $0x130] ss:$8 sps:$4 sm:$0xff]   ;;  %v1038_v18 = vld [vmem:[%s1515_s1 + $0x144] ss:$8 sps:$4 sm:$0xff]  }
   0x7   :  { %549 = vmatpush1.bf16.msra.mxu1 %v1022_v7  ;;  %v1040_v19 = vld [vmem:[%s1515_s1 + $0x40] ss:$8 sps:$4 sm:$0xff]   ;;  %v1042_v21 = vld [vmem:[%s1515_s1 + $0x54] ss:$8 sps:$4 sm:$0xff]   ;;  %v1046_v23 = vld [vmem:[%s1515_s1 + $0x50] ss:$8 sps:$4 sm:$0xff]  }
   0x8   :  { %602 = vmatpush1.bf16.msra.mxu0 %v1023_v8  ;;  %550 = vmatprep.subr.bf16.mxu1 %v1024_v9  ;;  %v1041_v20 = vld [vmem:[%s1515_s1 + $0x140] ss:$8 sps:$4 sm:$0xff]   ;;  %v1044_v22 = vld [vmem:[%s1515_s1 + $0x154] ss:$8 sps:$4 sm:$0xff]   ;;  %v1047_v24 = vld [vmem:[%s1515_s1 + $0x150] ss:$8 sps:$4 sm:$0xff]  }
   0x9   :  { %603 = vmatprep.subr.bf16.mxu0 %v1026_v10  ;;  %v1048_v25 = vld [vmem:[%s1515_s1 + $0x64] ss:$8 sps:$4 sm:$0xff]   ;;  %v1052_v27 = vld [vmem:[%s1515_s1 + $0x60] ss:$8 sps:$4 sm:$0xff]   ;;  %v1054_v29 = vld [vmem:[%s1515_s1 + $0x74] ss:$8 sps:$4 sm:$0xff]  }
   0xa   :  { %v1050_v26 = vld [vmem:[%s1515_s1 + $0x164] ss:$8 sps:$4 sm:$0xff]   ;;  %v1053_v28 = vld [vmem:[%s1515_s1 + $0x160] ss:$8 sps:$4 sm:$0xff]   ;;  %v1056_v30 = vld [vmem:[%s1515_s1 + $0x174] ss:$8 sps:$4 sm:$0xff]  }
   0xb   :  { %551 = vmatpush1.bf16.msra.mxu1 %v1028_v11  ;;  %v1058_v31 = vld [vmem:[%s1515_s1 + $0x70] ss:$8 sps:$4 sm:$0xff]   ;;  %v1060_v33 = vld [vmem:[%s1515_s1 + $0x84] ss:$8 sps:$4 sm:$0xff]   ;;  %v1064_v35 = vld [vmem:[%s1515_s1 + $0x80] ss:$8 sps:$4 sm:$0xff]  }
   0xc   :  { %604 = vmatpush1.bf16.msra.mxu0 %v1029_v12  ;;  %552 = vmatprep.subr.bf16.mxu1 %v1030_v13  ;;  %v1059_v32 = vld [vmem:[%s1515_s1 + $0x170] ss:$8 sps:$4 sm:$0xff]   ;;  %v1062_v34 = vld [vmem:[%s1515_s1 + $0x184] ss:$8 sps:$4 sm:$0xff]   ;;  %v1065_v36 = vld [vmem:[%s1515_s1 + $0x180] ss:$8 sps:$4 sm:$0xff]  }
   0xd   :  { %605 = vmatprep.subr.bf16.mxu0 %v1032_v14  ;;  %v1066_v37 = vld [vmem:[%s1515_s1 + $0x94] ss:$8 sps:$4 sm:$0xff]   ;;  %v1070_v39 = vld [vmem:[%s1515_s1 + $0x90] ss:$8 sps:$4 sm:$0xff]   ;;  %v1072_v41 = vld [vmem:[%s1515_s1 + $0xa4] ss:$8 sps:$4 sm:$0xff]  }
   0xe   :  { %v1068_v38 = vld [vmem:[%s1515_s1 + $0x194] ss:$8 sps:$4 sm:$0xff]   ;;  %v1071_v40 = vld [vmem:[%s1515_s1 + $0x190] ss:$8 sps:$4 sm:$0xff]   ;;  %v1074_v42 = vld [vmem:[%s1515_s1 + $0x1a4] ss:$8 sps:$4 sm:$0xff]  }
   0xf   :  { %553 = vmatpush1.bf16.msra.mxu1 %v1034_v15  ;;  %v1076_v43 = vld [vmem:[%s1515_s1 + $0xa0] ss:$8 sps:$4 sm:$0xff]   ;;  %v1078_v45 = vld [vmem:[%s1515_s1 + $0xb4] ss:$8 sps:$4 sm:$0xff]   ;;  %v1082_v47 = vld [vmem:[%s1515_s1 + $0xb0] ss:$8 sps:$4 sm:$0xff]  }
  0x10   :  { %606 = vmatpush1.bf16.msra.mxu0 %v1035_v16  ;;  %554 = vmatprep.subr.bf16.mxu1 %v1036_v17  ;;  %v1077_v44 = vld [vmem:[%s1515_s1 + $0x1a0] ss:$8 sps:$4 sm:$0xff]   ;;  %v1080_v46 = vld [vmem:[%s1515_s1 + $0x1b4] ss:$8 sps:$4 sm:$0xff]   ;;  %v1083_v48 = vld [vmem:[%s1515_s1 + $0x1b0] ss:$8 sps:$4 sm:$0xff]  }
  0x11   :  { %607 = vmatprep.subr.bf16.mxu0 %v1038_v18  ;;  %v1084_v49 = vld [vmem:[%s1515_s1 + $0xc4] ss:$8 sps:$4 sm:$0xff]   ;;  %v1088_v53 = vld [vmem:[%s1515_s1 + $0xc0] ss:$8 sps:$4 sm:$0xff]   ;;  %v1090_v55 = vld [vmem:[%s1515_s1 + $0xd4] ss:$8 sps:$4 sm:$0xff]  }
  0x12   :  { %v1110_v50 = vld [vmem:[%s1516_s0 + $0x4] ss:$20 sps:$4 sm:$0xff]   ;;  %v1113_v52 = vld [vmem:[%s1516_s0 + $0xc] ss:$20 sps:$4 sm:$0xff]   ;;  %v1092_v56 = vld [vmem:[%s1515_s1 + $0x1d4] ss:$8 sps:$4 sm:$0xff]  }
  0x13   :  { %555 = vmatpush1.bf16.msra.mxu1 %v1040_v19  ;;  %v1086_v51 = vld [vmem:[%s1515_s1 + $0x1c4] ss:$8 sps:$4 sm:$0xff]   ;;  %578 = vmatprep.mubr.bf16.mxu1 %v1110_v50  ;;  %v1089_v54 = vld [vmem:[%s1515_s1 + $0x1c0] ss:$8 sps:$4 sm:$0xff]   ;;  %v1094_v57 = vld [vmem:[%s1515_s1 + $0xd0] ss:$8 sps:$4 sm:$0xff]  }
  0x14   :  { %608 = vmatpush1.bf16.msra.mxu0 %v1041_v20  ;;  %556 = vmatprep.subr.bf16.mxu1 %v1042_v21  ;;  %v1095_v58 = vld [vmem:[%s1515_s1 + $0x1d0] ss:$8 sps:$4 sm:$0xff]   ;;  %v1096_v59 = vld [vmem:[%s1515_s1 + $0xe4] ss:$8 sps:$4 sm:$0xff]   ;;  %v1100_v62 = vld [vmem:[%s1515_s1 + $0xe0] ss:$8 sps:$4 sm:$0xff]  }
  0x15   :  { %609 = vmatprep.subr.bf16.mxu0 %v1044_v22  ;;  %631 = vmatprep.mubr.bf16.mxu0 %v1113_v52  ;;  %v1098_v60 = vld [vmem:[%s1515_s1 + $0x1e4] ss:$8 sps:$4 sm:$0xff]   ;;  %v1101_v63 = vld [vmem:[%s1515_s1 + $0x1e0] ss:$8 sps:$4 sm:$0xff]   ;;  %v107_v0 = vld [vmem:[%s1517_s2 + $0x10] sm:$0xff] }
  0x16   :  { %v105_v61 = vld [vmem:[%s1517_s2] sm:$0xff]  ;;  %v1102_v2 = vld [vmem:[%s1515_s1 + $0xf4] ss:$8 sps:$4 sm:$0xff]   ;;  %121 = vperm.xlu0 %1010, %v107_v0   ;;  %v106_v4 = vld [vmem:[%s1517_s2 + $0x8] sm:$0xff] }
  0x17   :  { %557 = vmatpush1.bf16.msra.mxu1 %v1046_v23  ;;  %v1104_v3 = vld [vmem:[%s1515_s1 + $0x1f4] ss:$8 sps:$4 sm:$0xff]   ;;  %111 = vperm.xlu1 %1011, %v105_v61   ;;  %v1106_v6 = vld [vmem:[%s1515_s1 + $0xf0] ss:$8 sps:$4 sm:$0xff]   ;;  %v1116_v8 = vld [vmem:[%s1515_s1 + $0x204] ss:$8 sps:$4 sm:$0xff]  }
  0x18   :  { %610 = vmatpush1.bf16.msra.mxu0 %v1047_v24  ;;  %558 = vmatprep.subr.bf16.mxu1 %v1048_v25  ;;  %v108_v5 = vld [vmem:[%s1517_s2 + $0x18] sm:$0xff]  ;;  %v1108_v9 = vld [vmem:[%s1516_s0] ss:$20 sps:$4 sm:$0xff]   ;;  %v1128_v16 = vld [vmem:[%s1515_s1 + $0x224] ss:$8 sps:$4 sm:$0xff]  }
  0x19   :  { %611 = vmatprep.subr.bf16.mxu0 %v1050_v26  ;;  %v1107_v7 = vld [vmem:[%s1515_s1 + $0x1f0] ss:$8 sps:$4 sm:$0xff]   ;;  %v1111_v10 = vld [vmem:[%s1516_s0 + $0x8] ss:$20 sps:$4 sm:$0xff]   ;;  %v1120_v13 = vld [vmem:[%s1516_s0 + $0x2c] ss:$20 sps:$4 sm:$0xff]  }
  0x1a   :  { %126 = vperm.xlu0 %1010, %v108_v5   ;;  %v1114_v11 = vld [vmem:[%s1515_s1 + $0x200] ss:$8 sps:$4 sm:$0xff]   ;;  %v1119_v12 = vld [vmem:[%s1515_s1 + $0x214] ss:$8 sps:$4 sm:$0xff]   ;;  %v1117_v15 = vld [vmem:[%s1515_s1 + $0x210] ss:$8 sps:$4 sm:$0xff]  }
  0x1b   :  { %559 = vmatpush1.bf16.msra.mxu1 %v1052_v27  ;;  %116 = vperm.xlu1 %1011, %v106_v4   ;;  %v1122_v14 = vld [vmem:[%s1516_s0 + $0x34] ss:$20 sps:$4 sm:$0xff]   ;;  %v1125_v18 = vld [vmem:[%s1516_s0 + $0x30] ss:$20 sps:$4 sm:$0xff]   ;;  %v1133_v23 = vld [vmem:[%s1516_s0 + $0x38] ss:$20 sps:$4 sm:$0xff]  }
  0x1c   :  { %612 = vmatpush1.bf16.msra.mxu0 %v1053_v28  ;;  %560 = vmatprep.subr.bf16.mxu1 %v1054_v29  ;;  %v1124_v17 = vld [vmem:[%s1516_s0 + $0x28] ss:$20 sps:$4 sm:$0xff]   ;;  %v1129_v21 = vld [vmem:[%s1515_s1 + $0x230] ss:$8 sps:$4 sm:$0xff]   ;;  %vm1491_vm3 = vmor %vm875_vm2, %vm874_vm1 }
  0x1d   :  { %613 = vmatprep.subr.bf16.mxu0 %v1056_v30  ;;  %v1126_v19 = vld [vmem:[%s1515_s1 + $0x220] ss:$8 sps:$4 sm:$0xff]   ;;  %v1131_v20 = vld [vmem:[%s1515_s1 + $0x234] ss:$8 sps:$4 sm:$0xff]   ;;  %v1132_v22 = vld [vmem:[%s1516_s0 + $0x10] ss:$20 sps:$4 sm:$0xff]  }
  0x1f   :  { %561 = vmatpush1.bf16.msra.mxu1 %v1058_v31 }
  0x20   :  { %614 = vmatpush1.bf16.msra.mxu0 %v1059_v32  ;;  %562 = vmatprep.subr.bf16.mxu1 %v1060_v33 }
  0x21   :  { %615 = vmatprep.subr.bf16.mxu0 %v1062_v34 }
  0x23   :  { %563 = vmatpush1.bf16.msra.mxu1 %v1064_v35 }
  0x24   :  { %616 = vmatpush1.bf16.msra.mxu0 %v1065_v36  ;;  %564 = vmatprep.subr.bf16.mxu1 %v1066_v37 }
  0x25   :  { %617 = vmatprep.subr.bf16.mxu0 %v1068_v38 }
  0x27   :  { %565 = vmatpush1.bf16.msra.mxu1 %v1070_v39 }
  0x28   :  { %618 = vmatpush1.bf16.msra.mxu0 %v1071_v40  ;;  %566 = vmatprep.subr.bf16.mxu1 %v1072_v41 }
  0x29   :  { %619 = vmatprep.subr.bf16.mxu0 %v1074_v42 }
  0x2b   :  { %567 = vmatpush1.bf16.msra.mxu1 %v1076_v43 }
  0x2c   :  { %620 = vmatpush1.bf16.msra.mxu0 %v1077_v44  ;;  %568 = vmatprep.subr.bf16.mxu1 %v1078_v45 }
  0x2d   :  { %621 = vmatprep.subr.bf16.mxu0 %v1080_v46 }
  0x2f   :  { %569 = vmatpush1.bf16.msra.mxu1 %v1082_v47 }
  0x30   :  { %622 = vmatpush1.bf16.msra.mxu0 %v1083_v48  ;;  %570 = vmatprep.subr.bf16.mxu1 %v1084_v49 }
  0x31   :  { %623 = vmatprep.subr.bf16.mxu0 %v1086_v51 }
  0x33   :  { %571 = vmatpush1.bf16.msra.mxu1 %v1088_v53 }
  0x34   :  { %624 = vmatpush1.bf16.msra.mxu0 %v1089_v54  ;;  %572 = vmatprep.subr.bf16.mxu1 %v1090_v55 }
  0x35   :  { %625 = vmatprep.subr.bf16.mxu0 %v1092_v56 }
  0x37   :  { %573 = vmatpush1.bf16.msra.mxu1 %v1094_v57 }
  0x38   :  { %626 = vmatpush1.bf16.msra.mxu0 %v1095_v58  ;;  %574 = vmatprep.subr.bf16.mxu1 %v1096_v59 }
  0x39   :  { %627 = vmatprep.subr.bf16.mxu0 %v1098_v60 }
  0x3b   :  { %575 = vmatpush1.bf16.msra.mxu1 %v1100_v62 }
  0x3c   :  { %628 = vmatpush1.bf16.msra.mxu0 %v1101_v63  ;;  %576 = vmatprep.subr.bf16.mxu1 %v1102_v2 }
  0x3d   :  { %629 = vmatprep.subr.bf16.mxu0 %v1104_v3 }
  0x3f   :  { %577 = vmatpush1.bf16.msra.mxu1 %v1106_v6 }
  0x40   :  { %630 = vmatpush1.bf16.msra.mxu0 %v1107_v7  ;;  %977 = vmatprep.subr.bf16.mxu1 %v1116_v8 }
  0x41   :  { %652 = vmatprep.subr.bf16.mxu0 %v1116_v8 }
  0x42   :  { %579 = vmatmul.mubr.bf16.vlgmr.msra.gmra.mrb[0].mxu1 %v1108_v9 }
  0x43   :  { %632 = vmatmul.mubr.bf16.vlgmr.msra.gmra.mrb[0].mxu0 %v1111_v10  ;;  %981 = vmatpush1.bf16.msra.mxu1 %v1114_v11 }
  0x44   :  { %653 = vmatpush1.bf16.msra.mxu0 %v1114_v11  ;;  %978 = vmatprep.subr.bf16.mxu1 %v1119_v12 }
  0x45   :  { %654 = vmatprep.subr.bf16.mxu0 %v1119_v12  ;;  %588 = vmatprep.mubr.bf16.mxu1 %v1120_v13  ;;  %v778_v12 = vld [vmem:[%s1518_s3] sm:$0xff]  ;;  %v780_v13 = vld [vmem:[%s1518_s3 + $0x10] sm:$0xff] }
  0x46   :  { %641 = vmatprep.mubr.bf16.mxu0 %v1122_v14  ;;  %v781_v14 = vld [vmem:[%s1518_s3 + $0x18] sm:$0xff] }
  0x47   :  { %982 = vmatpush1.bf16.msra.mxu1 %v1117_v15 }
  0x48   :  { %655 = vmatpush1.bf16.msra.mxu0 %v1117_v15  ;;  %979 = vmatprep.subr.bf16.mxu1 %v1128_v16  ;;  %v779_v15 = vld [vmem:[%s1518_s3 + $0x8] sm:$0xff] }
  0x49   :  { %656 = vmatprep.subr.bf16.mxu0 %v1128_v16  ;;  %v811_v16 = vld [vmem:[%s1519_s4 + $0x8] sm:$0xff] }
  0x4a   :  { %589 = vmatmul.mubr.bf16.gmra.mrb[4].mxu1 %v1124_v17  ;;  %v810_v17 = vld [vmem:[%s1519_s4] sm:$0xff] }
  0x4b   :  { %642 = vmatmul.mubr.bf16.gmra.mrb[4].mxu0 %v1125_v18  ;;  %983 = vmatpush1.bf16.msra.mxu1 %v1126_v19 }
  0x4c   :  { %657 = vmatpush1.bf16.msra.mxu0 %v1126_v19  ;;  %980 = vmatprep.subr.bf16.mxu1 %v1131_v20 }
  0x4d   :  { %658 = vmatprep.subr.bf16.mxu0 %v1131_v20  ;;  %684 = vmatprep.mubr.bf16.mxu0 %v1142_v1 }
  0x4e   :  { %694 = vmatprep.mubr.bf16.mxu1 %v1142_v1 }
  0x4f   :  { %984 = vmatpush1.bf16.msra.mxu1 %v1129_v21 }
  0x50   :  { %659 = vmatpush1.bf16.msra.mxu0 %v1129_v21 }
  0x52   :  { %968 = vmatmul.mubr.msk.bf16.vlgmr.msra.gmra.mrb[8].mxu1 %vm539_vm0, %v1133_v23 }
  0x53   :  { %967 = vmatmul.mubr.msk.bf16.vlgmr.msra.gmra.mrb[0].mxu0 %vm539_vm0, %v1132_v22 }
  0x95   :  { %v122_v26 = vpop.permute.xlu0 %121 }
  0x96   :  { %v112_v28 = vpop.permute.xlu1 %111 }
  0x99   :  { %v127_v29 = vpop.permute.xlu0 %126 }
  0x9a   :  { %v117_v45 = vpop.permute.xlu1 %116 }
 0x115   :  { %v580_v24 = vpop.f32.mrb[0].mxu1 }
 0x116   :  { %v582_v25 = vpop.f32.mrb[1].mxu1  ;;  %v581_v47 = vadd.f32 %v580_v24, %v112_v28 }
 0x117   :  { %v584_v27 = vpop.f32.mrb[2].mxu1  ;;  %v583_v48 = vadd.f32 %v582_v25, %v112_v28 }
 0x118   :  { %v586_v1 = vpop.f32.mrb[3].mxu1  ;;  %v585_v51 = vadd.f32 %v584_v27, %v117_v45 }
 0x119   :  { %v587_v56 = vadd.f32 %v586_v1, %v117_v45 }
 0x11d   :  { %v590_v30 = vpop.f32.mrb[4].mxu1 }
 0x11e   :  { %v643_v31 = vpop.f32.mrb[4].mxu0  ;;  %v591_v32 = vadd.f32 %v590_v30, %v122_v26  ;;  %v592_v33 = vpop.f32.mrb[5].mxu1 }
 0x11f   :  { %v645_v34 = vpop.f32.mrb[5].mxu0  ;;  %v593_v35 = vadd.f32 %v592_v33, %v122_v26  ;;  %v594_v36 = vpop.f32.mrb[6].mxu1 }
 0x120   :  { %v647_v37 = vpop.f32.mrb[6].mxu0  ;;  %v644_v38 = vadd.f32 %v643_v31, %v591_v32  ;;  %v595_v39 = vadd.f32 %v594_v36, %v127_v29  ;;  %v596_v40 = vpop.f32.mrb[7].mxu1 }
 0x121   :  { %v649_v41 = vpop.f32.mrb[7].mxu0  ;;  %v646_v42 = vadd.f32 %v645_v34, %v593_v35  ;;  %v597_v43 = vadd.f32 %v596_v40, %v127_v29 }
 0x122   :  { %v648_v44 = vadd.f32 %v647_v37, %v595_v39 }
 0x123   :  { %v650_v46 = vadd.f32 %v649_v41, %v597_v43 }
 0x125   :  { %v696_v50 = vpop.f32.mrb[8].mxu1 }
 0x126   :  { %v686_v49 = vpop.f32.mrb[0].mxu0  ;;  %v697_v53 = vadd.f32 %v696_v50, %v644_v38  ;;  %v698_v55 = vpop.f32.mrb[9].mxu1  ;;  %v812_v50 = vld [vmem:[%s1519_s4 + $0x10] sm:$0xff] }
 0x127   :  { %v986_v52 = vadd.f32 %v686_v49, %v581_v47  ;;  %v688_v54 = vpop.f32.mrb[1].mxu0  ;;  %v699_v58 = vadd.f32 %v698_v55, %v646_v42  ;;  %v700_v60 = vpop.f32.mrb[10].mxu1  ;;  %v813_v49 = vld [vmem:[%s1519_s4 + $0x18] sm:$0xff] }
 0x128   :  { %v988_v57 = vadd.f32 %v688_v54, %v583_v48  ;;  %v690_v59 = vpop.f32.mrb[2].mxu0  ;;  %v701_v62 = vadd.f32 %v700_v60, %v648_v44  ;;  %v702_v0 = vpop.f32.mrb[11].mxu1 }
 0x129   :  { %v990_v61 = vadd.f32 %v690_v59, %v585_v51  ;;  %v692_v63 = vpop.f32.mrb[3].mxu0  ;;  %v703_v3 = vadd.f32 %v702_v0, %v650_v46  ;;  %v713_v7 = vsel %vm539_vm0, %v699_v58, 0.0 }
 0x12a   :  { %v992_v2 = vadd.f32 %v692_v63, %v587_v56  ;;  %v705_v4 = vsel %vm539_vm0, %v988_v57, 0.0  ;;  %v714_v9 = vadd.f32 %v713_v7, %v697_v53 }
 0x12b   :  { %v706_v5 = vadd.f32 %v986_v52, %v705_v4  ;;  %v717_v10 = vsel %vm539_vm0, %v703_v3, 0.0 }
 0x12c   :  { %v709_v6 = vsel %vm539_vm0, %v992_v2, 0.0  ;;  %v718_v11 = vadd.f32 %v717_v10, %v701_v62 }
 0x12d   :  { %707 = vadd.xlane.f32.xlu0 %v706_v5  ;;  %v710_v8 = vadd.f32 %v990_v61, %v709_v6 }
 0x12f   :  { %711 = vadd.xlane.f32.xlu1 %v710_v8 }
 0x131   :  { %715 = vadd.xlane.f32.xlu0 %v714_v9 }
 0x135   :  { %719 = vadd.xlane.f32.xlu0 %v718_v11 }
 0x140   :  { %784 = vperm.xlu1 %1011, %v778_v12  }
 0x144   :  { %794 = vperm.xlu1 %1011, %v780_v13  }
 0x148   :  { %799 = vperm.xlu1 %1011, %v781_v14  }
 0x14b   :  { %789 = vperm.xlu0 %1010, %v779_v15  }
 0x14c   :  { %821 = vperm.xlu1 %1011, %v811_v16  }
 0x14f   :  { %816 = vperm.xlu0 %1010, %v810_v17  }
 0x1ba   :  { %v708_v18 = vpop.xlane.xlu0 %707 }
 0x1bb   :  { %v722_v19 = vmul.f32 0.0052083335, %v708_v18 }
 0x1bc   :  { %v712_v20 = vpop.xlane.xlu1 %711 }
 0x1bd   :  { %v726_v21 = vsub.f32 %v986_v52, %v722_v19  ;;  %v727_v22 = vsub.f32 %v988_v57, %v722_v19  ;;  %v723_v23 = vmul.f32 0.0052083335, %v712_v20 }
 0x1be   :  { %v716_v24 = vpop.xlane.xlu0 %715 }
 0x1bf   :  { %v728_v25 = vsub.f32 %v990_v61, %v723_v23  ;;  %v729_v26 = vsub.f32 %v992_v2, %v723_v23  ;;  %v724_v27 = vmul.f32 0.0052083335, %v716_v24  ;;  %v734_v1 = vmul.f32 %v726_v21, %v726_v21 }
 0x1c0   :  { %v735_v28 = vmul.f32 %v727_v22, %v727_v22  ;;  %v785_v51 = vpop.permute.xlu1 %784 }
 0x1c1   :  { %v1459_v29 = vsub.f32 %v697_v53, %v724_v27  ;;  %v1461_v30 = vsub.f32 %v699_v58, %v724_v27  ;;  %v736_v31 = vmul.f32 %v728_v25, %v728_v25  ;;  %v737_v32 = vmul.f32 %v729_v26, %v729_v26 }
 0x1c2   :  { %v720_v33 = vpop.xlane.xlu0 %719  ;;  %v742_v34 = vsel %vm539_vm0, %v735_v28, 0.0 }
 0x1c3   :  { %v725_v35 = vmul.f32 0.0052083335, %v720_v33  ;;  %v743_v36 = vadd.f32 %v742_v34, %v734_v1  ;;  %v746_v37 = vsel %vm539_vm0, %v737_v32, 0.0  ;;  %v738_v38 = vmul.f32 %v1459_v29, %v1459_v29 }
 0x1c4   :  { %v747_v39 = vadd.f32 %v746_v37, %v736_v31  ;;  %v739_v40 = vmul.f32 %v1461_v30, %v1461_v30  ;;  %v795_v52 = vpop.permute.xlu1 %794 }
 0x1c5   :  { %v1469_v41 = vsub.f32 %v701_v62, %v725_v35  ;;  %v1471_v42 = vsub.f32 %v703_v3, %v725_v35  ;;  %744 = vadd.xlane.f32.xlu1 %v743_v36 }
 0x1c6   :  { %748 = vadd.xlane.f32.xlu0 %v747_v39  ;;  %v750_v43 = vsel %vm539_vm0, %v739_v40, 0.0 }
 0x1c7   :  { %v751_v44 = vadd.f32 %v750_v43, %v738_v38  ;;  %v740_v45 = vmul.f32 %v1469_v41, %v1469_v41  ;;  %v741_v46 = vmul.f32 %v1471_v42, %v1471_v42 }
 0x1c8   :  { %v800_v53 = vpop.permute.xlu1 %799 }
 0x1c9   :  { %752 = vadd.xlane.f32.xlu1 %v751_v44  ;;  %v754_v47 = vsel %vm539_vm0, %v741_v46, 0.0 }
 0x1ca   :  { %v755_v48 = vadd.f32 %v754_v47, %v740_v45  ;;  %v790_v54 = vpop.permute.xlu0 %789 }
 0x1cc   :  { %756 = vadd.xlane.f32.xlu0 %v755_v48  ;;  %v822_v55 = vpop.permute.xlu1 %821 }
 0x1ce   :  { %v817_v56 = vpop.permute.xlu0 %816 }
 0x1da   :  { %831 = vperm.xlu1 %1011, %v813_v49  }
 0x1e2   :  { %826 = vperm.xlu0 %1010, %v812_v50  }
 0x252   :  { %v745_v57 = vpop.xlane.xlu1 %744 }
 0x253   :  { %v758_v58 = vmul.f32 0.0052083335, %v745_v57  ;;  %v749_v59 = vpop.xlane.xlu0 %748 }
 0x254   :  { %v759_v60 = vmul.f32 0.0052083335, %v749_v59 }
 0x255   :  { %v762_v61 = vadd.f32 1e-05, %v758_v58 }
 0x256   :  { %v763_v62 = vadd.f32 1e-05, %v759_v60  ;;  %v753_v63 = vpop.xlane.xlu1 %752 }
 0x257   :  { %1134 = vrsqrt.f32 %v762_v61  ;;  %v760_v0 = vmul.f32 0.0052083335, %v753_v63 }
 0x258   :  { %1136 = vrsqrt.f32 %v763_v62 }
 0x259   :  { %v764_v2 = vadd.f32 1e-05, %v760_v0  ;;  %v757_v3 = vpop.xlane.xlu0 %756 }
 0x25a   :  { %v761_v4 = vmul.f32 0.0052083335, %v757_v3  ;;  %v832_v39 = vpop.permute.xlu1 %831 }
 0x25b   :  { %1138 = vrsqrt.f32 %v764_v2 }
 0x25c   :  { %v765_v5 = vadd.f32 1e-05, %v761_v4 }
 0x25e   :  { %1140 = vrsqrt.f32 %v765_v5 }
 0x261   :  { %v1135_v6 = vpop.eup %1134 }
 0x262   :  { %v1137_v7 = vpop.eup %1136  ;;  %v770_v8 = vmul.f32 %v1135_v6, %v726_v21  ;;  %v771_v9 = vmul.f32 %v1135_v6, %v727_v22 }
 0x263   :  { %v772_v10 = vmul.f32 %v1137_v7, %v728_v25  ;;  %v773_v11 = vmul.f32 %v1137_v7, %v729_v26 }
 0x264   :  { %v802_v12 = vmul.f32 %v785_v51, %v770_v8  ;;  %v803_v13 = vmul.f32 %v785_v51, %v771_v9 }
 0x265   :  { %v1139_v14 = vpop.eup %1138  ;;  %v804_v15 = vmul.f32 %v790_v54, %v772_v10  ;;  %v805_v16 = vmul.f32 %v790_v54, %v773_v11 }
 0x266   :  { %v834_v17 = vadd.f32 %v817_v56, %v802_v12  ;;  %v835_v18 = vadd.f32 %v817_v56, %v803_v13  ;;  %v774_v19 = vmul.f32 %v1139_v14, %v1459_v29  ;;  %v775_v20 = vmul.f32 %v1139_v14, %v1461_v30  ;;  %v827_v29 = vpop.permute.xlu0 %826 }
 0x267   :  { %v836_v23 = vadd.f32 %v822_v55, %v804_v15  ;;  %v837_v24 = vadd.f32 %v822_v55, %v805_v16 }
 0x268   :  { %v1141_v27 = vpop.eup %1140  ;;  %v842_v21 = vmax.f32 %v834_v17, 0.0  ;;  %v843_v22 = vmax.f32 %v835_v18, 0.0  ;;  %v806_v25 = vmul.f32 %v795_v52, %v774_v19  ;;  %v807_v26 = vmul.f32 %v795_v52, %v775_v20 }
 0x269   :  { %v844_v1 = vmax.f32 %v836_v23, 0.0  ;;  %v845_v28 = vmax.f32 %v837_v24, 0.0  ;;  %v776_v31 = vmul.f32 %v1141_v27, %v1469_v41  ;;  %v777_v32 = vmul.f32 %v1141_v27, %v1471_v42 }
 0x26a   :  { %v973_v30 = vpack.c.bf16 %v843_v22, %v842_v21  ;;  %v838_v34 = vadd.f32 %v827_v29, %v806_v25  ;;  %v839_v35 = vadd.f32 %v827_v29, %v807_v26 }
 0x26b   :  { %v974_v36 = vpack.c.bf16 %v845_v28, %v844_v1  ;;  %v808_v37 = vmul.f32 %v800_v53, %v776_v31  ;;  %v809_v38 = vmul.f32 %v800_v53, %v777_v32 }
 0x26c   :  { %877 = vst.msk [vmem:[%s1520_s5] sm:$0xff] %vm1491_vm3, %v973_v30  ;;  %v846_v40 = vmax.f32 %v838_v34, 0.0  ;;  %v847_v41 = vmax.f32 %v839_v35, 0.0 }
 0x26d   :  { %v840_v42 = vadd.f32 %v832_v39, %v808_v37  ;;  %v841_v43 = vadd.f32 %v832_v39, %v809_v38  ;;  %878 = vst.msk [vmem:[%s1520_s5 + $0x8] sm:$0xff] %vm1491_vm3, %v974_v36 }
 0x26e   :  { %v975_v44 = vpack.c.bf16 %v847_v41, %v846_v40 }
 0x26f   :  { %v848_v45 = vmax.f32 %v840_v42, 0.0  ;;  %v849_v46 = vmax.f32 %v841_v43, 0.0 }
 0x270   :  { %879 = vst.msk [vmem:[%s1520_s5 + $0x10] sm:$0xff] %vm1491_vm3, %v975_v44 }
 0x271   :  { %v976_v47 = vpack.c.bf16 %v849_v46, %v848_v45 }
 0x273   :  { %880 = vst.msk [vmem:[%s1520_s5 + $0x18] sm:$0xff] %vm1491_vm3, %v976_v47 }

// kernel: a3c_forward.6
= control target key start
LH: loop header
LB: loop body
LE: loop exit
PB: predicated region body
PF: predicated region fallthrough
CT: control target
= control target key end

     0   :  { %v745_v1 = vmov 0   ;;  %vm447_vm0 = vcmask 285696   ;;  %vm577_vm1 = vcmask 281600   ;;  %s956_s1 = inlined_call_operand.vmem [shape: bf16[512,35], index: 1, kind: input, shape index: {}]   ;;  %s957_s0 = inlined_call_operand.vmem [shape: bf16[32,512], index: 0, kind: input, shape index: {}]   ;;  %s958_s2 = inlined_call_operand.vmem [shape: f32[32,1], index: 2, kind: input, shape index: {}]   ;;  %s959_s3 = inlined_call_operand.vmem [shape: f32[32,1], index: 3, kind: input, shape index: {}]   ;;  %s960_s4 = inlined_call_operand.vmem [shape: f32[32,1], index: 4, kind: input, shape index: {}]   ;;  %s961_s5 = inlined_call_operand.vmem [shape: bf16[32,35], index: 5, kind: output, shape index: {}]  }
   0x1   :  { %v693_v0 = vld [vmem:[%s956_s1 + $0x40] sm:$0xff]   ;;  %691 = vset.pattern.permute.xlu0 %v745_v1  ;;  %692 = vset.pattern.permute.xlu1 %v745_v1  ;;  %v697_v5 = vld [vmem:[%s956_s1 + $0x48] sm:$0xff]   ;;  %v701_v9 = vld [vmem:[%s956_s1 + $0x50] sm:$0xff]  }
   0x2   :  { %v694_v2 = vld [vmem:[%s956_s1 + $0xc0] sm:$0xff]   ;;  %634 = vmatprep.subr.bf16.mxu0 %v693_v0  ;;  %v698_v6 = vld [vmem:[%s956_s1 + $0xc8] sm:$0xff]   ;;  %v702_v10 = vld [vmem:[%s956_s1 + $0xd0] sm:$0xff]  }
   0x3   :  { %v695_v3 = vld [vmem:[%s956_s1] sm:$0xff]   ;;  %662 = vmatprep.subr.bf16.mxu1 %v694_v2  ;;  %v699_v7 = vld [vmem:[%s956_s1 + $0x8] sm:$0xff]   ;;  %v703_v11 = vld [vmem:[%s956_s1 + $0x10] sm:$0xff]  }
   0x4   :  { %v696_v4 = vld [vmem:[%s956_s1 + $0x80] sm:$0xff]   ;;  %635 = vmatpush3.bf16.msra.mxu0 %v695_v3  ;;  %v700_v8 = vld [vmem:[%s956_s1 + $0x88] sm:$0xff]   ;;  %v704_v12 = vld [vmem:[%s956_s1 + $0x90] sm:$0xff]  }
   0x5   :  { %663 = vmatpush3.bf16.msra.mxu1 %v696_v4  ;;  %636 = vmatprep.subr.bf16.mxu0 %v697_v5  ;;  %v705_v13 = vld [vmem:[%s956_s1 + $0x58] sm:$0xff]   ;;  %v709_v17 = vld [vmem:[%s956_s1 + $0x60] sm:$0xff]   ;;  %v713_v21 = vld [vmem:[%s956_s1 + $0x68] sm:$0xff]  }
   0x6   :  { %664 = vmatprep.subr.bf16.mxu1 %v698_v6  ;;  %v706_v14 = vld [vmem:[%s956_s1 + $0xd8] sm:$0xff]   ;;  %v710_v18 = vld [vmem:[%s956_s1 + $0xe0] sm:$0xff]   ;;  %v714_v22 = vld [vmem:[%s956_s1 + $0xe8] sm:$0xff]  }
   0x7   :  { %v707_v15 = vld [vmem:[%s956_s1 + $0x18] sm:$0xff]   ;;  %v711_v19 = vld [vmem:[%s956_s1 + $0x20] sm:$0xff]   ;;  %v715_v23 = vld [vmem:[%s956_s1 + $0x28] sm:$0xff]  }
   0x8   :  { %637 = vmatpush3.bf16.msra.mxu0 %v699_v7  ;;  %v708_v16 = vld [vmem:[%s956_s1 + $0x98] sm:$0xff]   ;;  %v712_v20 = vld [vmem:[%s956_s1 + $0xa0] sm:$0xff]   ;;  %v716_v24 = vld [vmem:[%s956_s1 + $0xa8] sm:$0xff]  }
   0x9   :  { %665 = vmatpush3.bf16.msra.mxu1 %v700_v8  ;;  %638 = vmatprep.subr.bf16.mxu0 %v701_v9  ;;  %v717_v25 = vld [vmem:[%s956_s1 + $0x70] sm:$0xff]   ;;  %v721_v29 = vld [vmem:[%s956_s1 + $0x78] sm:$0xff]   ;;  %v93_v39 = vld [vmem:[%s958_s2] sm:$0xff] }
   0xa   :  { %666 = vmatprep.subr.bf16.mxu1 %v702_v10  ;;  %v718_v26 = vld [vmem:[%s956_s1 + $0xf0] sm:$0xff]   ;;  %v722_v30 = vld [vmem:[%s956_s1 + $0xf8] sm:$0xff]   ;;  %99 = vperm.xlu0 %691, %v93_v39   ;;  %v94_v41 = vld [vmem:[%s958_s2 + $0x8] sm:$0xff] }
   0xb   :  { %v719_v27 = vld [vmem:[%s956_s1 + $0x30] sm:$0xff]   ;;  %v723_v31 = vld [vmem:[%s956_s1 + $0x38] sm:$0xff]  }
   0xc   :  { %639 = vmatpush3.bf16.msra.mxu0 %v703_v11  ;;  %v720_v28 = vld [vmem:[%s956_s1 + $0xb0] sm:$0xff]   ;;  %v724_v32 = vld [vmem:[%s956_s1 + $0xb8] sm:$0xff]  }
   0xd   :  { %667 = vmatpush3.bf16.msra.mxu1 %v704_v12  ;;  %640 = vmatprep.subr.bf16.mxu0 %v705_v13  ;;  %v725_v33 = vld [vmem:[%s957_s0] ss:$16 sps:$4 sm:$0xff]   ;;  %v727_v34 = vld [vmem:[%s957_s0 + $0x4] ss:$16 sps:$4 sm:$0xff]   ;;  %v728_v35 = vld [vmem:[%s957_s0 + $0x8] ss:$16 sps:$4 sm:$0xff]  }
   0xe   :  { %668 = vmatprep.subr.bf16.mxu1 %v706_v14  ;;  %v730_v36 = vld [vmem:[%s957_s0 + $0xc] ss:$16 sps:$4 sm:$0xff]   ;;  %381 = vmatprep.mubr.bf16.mxu0 %v727_v34  ;;  %v731_v37 = vld [vmem:[%s957_s0 + $0x24] ss:$16 sps:$4 sm:$0xff]   ;;  %v735_v42 = vld [vmem:[%s957_s0 + $0x20] ss:$16 sps:$4 sm:$0xff]  }
   0xf   :  { %430 = vmatprep.mubr.bf16.mxu1 %v730_v36  ;;  %v733_v38 = vld [vmem:[%s957_s0 + $0x2c] ss:$16 sps:$4 sm:$0xff]   ;;  %v95_v40 = vld [vmem:[%s958_s2 + $0x10] sm:$0xff]  ;;  %v736_v44 = vld [vmem:[%s957_s0 + $0x28] ss:$16 sps:$4 sm:$0xff]   ;;  %104 = vperm.xlu0 %691, %v94_v41  }
  0x10   :  { %641 = vmatpush3.bf16.msra.mxu0 %v707_v15  ;;  %109 = vperm.xlu1 %692, %v95_v40   ;;  %v96_v43 = vld [vmem:[%s958_s2 + $0x18] sm:$0xff] }
  0x11   :  { %669 = vmatpush3.bf16.msra.mxu1 %v708_v16  ;;  %642 = vmatprep.subr.bf16.mxu0 %v709_v17 }
  0x12   :  { %670 = vmatprep.subr.bf16.mxu1 %v710_v18 }
  0x14   :  { %643 = vmatpush3.bf16.msra.mxu0 %v711_v19  ;;  %114 = vperm.xlu1 %692, %v96_v43  }
  0x15   :  { %671 = vmatpush3.bf16.msra.mxu1 %v712_v20  ;;  %644 = vmatprep.subr.bf16.mxu0 %v713_v21  ;;  %v501_v21 = vld [vmem:[%s959_s3] sm:$0xff] }
  0x16   :  { %672 = vmatprep.subr.bf16.mxu1 %v714_v22  ;;  %v503_v22 = vld [vmem:[%s959_s3 + $0x10] sm:$0xff] }
  0x18   :  { %645 = vmatpush3.bf16.msra.mxu0 %v715_v23  ;;  %v504_v23 = vld [vmem:[%s959_s3 + $0x18] sm:$0xff] }
  0x19   :  { %673 = vmatpush3.bf16.msra.mxu1 %v716_v24  ;;  %646 = vmatprep.subr.bf16.mxu0 %v717_v25  ;;  %v530_v24 = vld [vmem:[%s960_s4 + $0x8] sm:$0xff] }
  0x1a   :  { %674 = vmatprep.subr.bf16.mxu1 %v718_v26  ;;  %v502_v25 = vld [vmem:[%s959_s3 + $0x8] sm:$0xff]  ;;  %v529_v26 = vld [vmem:[%s960_s4] sm:$0xff] }
  0x1c   :  { %647 = vmatpush3.bf16.msra.mxu0 %v719_v27 }
  0x1d   :  { %675 = vmatpush3.bf16.msra.mxu1 %v720_v28  ;;  %648 = vmatprep.subr.bf16.mxu0 %v721_v29 }
  0x1e   :  { %676 = vmatprep.subr.bf16.mxu1 %v722_v30 }
  0x20   :  { %649 = vmatpush3.bf16.msra.mxu0 %v723_v31 }
  0x21   :  { %677 = vmatpush3.bf16.msra.mxu1 %v724_v32 }
  0x23   :  { %382 = vmatmul.mubr.bf16.vlgmr.msra.gmra.mrb[0].mxu0 %v725_v33 }
  0x24   :  { %431 = vmatmul.mubr.bf16.vlgmr.msra.gmra.mrb[0].mxu1 %v728_v35  ;;  %389 = vmatprep.mubr.bf16.mxu0 %v731_v37 }
  0x25   :  { %438 = vmatprep.mubr.bf16.mxu1 %v733_v38 }
  0x2b   :  { %390 = vmatmul.mubr.bf16.gmra.mrb[4].mxu0 %v735_v42 }
  0x2c   :  { %439 = vmatmul.mubr.bf16.gmra.mrb[4].mxu1 %v736_v44 }
  0x89   :  { %v100_v45 = vpop.permute.xlu0 %99 }
  0x8e   :  { %v105_v47 = vpop.permute.xlu0 %104 }
  0x8f   :  { %v110_v62 = vpop.permute.xlu1 %109 }
  0x93   :  { %v115_v14 = vpop.permute.xlu1 %114 }
  0xf6   :  { %v650_v46 = vpop.f32.mrb[0].mxu0 }
  0xf7   :  { %v678_v48 = vpop.f32.mrb[0].mxu1  ;;  %v651_v49 = vpop.f32.mrb[1].mxu0 }
  0xf8   :  { %v652_v50 = vadd.f32 %v651_v49, %v650_v46  ;;  %v679_v51 = vpop.f32.mrb[1].mxu1  ;;  %v653_v52 = vpop.f32.mrb[2].mxu0 }
  0xf9   :  { %v680_v53 = vadd.f32 %v679_v51, %v678_v48  ;;  %v681_v54 = vpop.f32.mrb[2].mxu1  ;;  %v654_v55 = vpop.f32.mrb[3].mxu0  ;;  %v531_v48 = vld [vmem:[%s960_s4 + $0x10] sm:$0xff] }
  0xfa   :  { %v384_v56 = vadd.f32 %v652_v50, %v100_v45  ;;  %v655_v57 = vadd.f32 %v654_v55, %v653_v52  ;;  %v682_v58 = vpop.f32.mrb[3].mxu1 }
  0xfb   :  { %v683_v59 = vadd.f32 %v682_v58, %v681_v54 }
  0xfc   :  { %v387_v60 = vadd.f32 %v655_v57, %v105_v47  ;;  %v433_v61 = vadd.f32 %v680_v53, %v384_v56  ;;  %v532_v47 = vld [vmem:[%s960_s4 + $0x18] sm:$0xff] }
  0xfe   :  { %v656_v63 = vpop.f32.mrb[4].mxu0  ;;  %v448_v0 = vsel %vm447_vm0, %v433_v61, 0.0  ;;  %v436_v1 = vadd.f32 %v683_v59, %v387_v60 }
  0xff   :  { %v684_v2 = vpop.f32.mrb[4].mxu1  ;;  %v657_v3 = vpop.f32.mrb[5].mxu0  ;;  %449 = vadd.xlane.f32.xlu0 %v448_v0 }
 0x100   :  { %v658_v4 = vadd.f32 %v657_v3, %v656_v63  ;;  %v685_v5 = vpop.f32.mrb[5].mxu1  ;;  %v659_v6 = vpop.f32.mrb[6].mxu0  ;;  %v451_v7 = vsel %vm447_vm0, %v436_v1, 0.0 }
 0x101   :  { %v686_v8 = vadd.f32 %v685_v5, %v684_v2  ;;  %v687_v9 = vpop.f32.mrb[6].mxu1  ;;  %v660_v10 = vpop.f32.mrb[7].mxu0  ;;  %452 = vadd.xlane.f32.xlu1 %v451_v7 }
 0x102   :  { %v392_v11 = vadd.f32 %v658_v4, %v110_v62  ;;  %v661_v12 = vadd.f32 %v660_v10, %v659_v6  ;;  %v688_v13 = vpop.f32.mrb[7].mxu1 }
 0x103   :  { %v689_v15 = vadd.f32 %v688_v13, %v687_v9 }
 0x104   :  { %v395_v16 = vadd.f32 %v661_v12, %v115_v14  ;;  %v441_v17 = vadd.f32 %v686_v8, %v392_v11 }
 0x106   :  { %v454_v18 = vsel %vm447_vm0, %v441_v17, 0.0  ;;  %v444_v19 = vadd.f32 %v689_v15, %v395_v16 }
 0x107   :  { %455 = vadd.xlane.f32.xlu0 %v454_v18 }
 0x108   :  { %v457_v20 = vsel %vm447_vm0, %v444_v19, 0.0 }
 0x10b   :  { %458 = vadd.xlane.f32.xlu0 %v457_v20 }
 0x112   :  { %507 = vperm.xlu1 %692, %v501_v21  }
 0x116   :  { %517 = vperm.xlu1 %692, %v503_v22  }
 0x11a   :  { %522 = vperm.xlu1 %692, %v504_v23  }
 0x11e   :  { %540 = vperm.xlu1 %692, %v530_v24  }
 0x121   :  { %512 = vperm.xlu0 %691, %v502_v25  }
 0x125   :  { %535 = vperm.xlu0 %691, %v529_v26  }
 0x18c   :  { %v450_v27 = vpop.xlane.xlu0 %449 }
 0x18d   :  { %v461_v28 = vmul.f32 0.028571429, %v450_v27 }
 0x18e   :  { %v453_v29 = vpop.xlane.xlu1 %452 }
 0x18f   :  { %v465_v30 = vsub.f32 %v433_v61, %v461_v28  ;;  %v462_v31 = vmul.f32 0.028571429, %v453_v29 }
 0x191   :  { %v466_v32 = vsub.f32 %v436_v1, %v462_v31  ;;  %v469_v33 = vmul.f32 %v465_v30, %v465_v30 }
 0x192   :  { %v508_v49 = vpop.permute.xlu1 %507 }
 0x193   :  { %v473_v34 = vsel %vm447_vm0, %v469_v33, 0.0  ;;  %v470_v35 = vmul.f32 %v466_v32, %v466_v32 }
 0x194   :  { %474 = vadd.xlane.f32.xlu1 %v473_v34  ;;  %v456_v36 = vpop.xlane.xlu0 %455 }
 0x195   :  { %v463_v37 = vmul.f32 0.028571429, %v456_v36  ;;  %v476_v38 = vsel %vm447_vm0, %v470_v35, 0.0 }
 0x196   :  { %477 = vadd.xlane.f32.xlu0 %v476_v38  ;;  %v518_v50 = vpop.permute.xlu1 %517 }
 0x197   :  { %v467_v39 = vsub.f32 %v441_v17, %v463_v37 }
 0x198   :  { %v459_v40 = vpop.xlane.xlu0 %458 }
 0x199   :  { %v464_v41 = vmul.f32 0.028571429, %v459_v40  ;;  %v471_v42 = vmul.f32 %v467_v39, %v467_v39 }
 0x19a   :  { %v523_v51 = vpop.permute.xlu1 %522 }
 0x19b   :  { %v468_v43 = vsub.f32 %v444_v19, %v464_v41  ;;  %v479_v44 = vsel %vm447_vm0, %v471_v42, 0.0 }
 0x19c   :  { %480 = vadd.xlane.f32.xlu1 %v479_v44 }
 0x19d   :  { %v472_v45 = vmul.f32 %v468_v43, %v468_v43 }
 0x19e   :  { %v541_v53 = vpop.permute.xlu1 %540 }
 0x19f   :  { %v482_v46 = vsel %vm447_vm0, %v472_v45, 0.0 }
 0x1a0   :  { %483 = vadd.xlane.f32.xlu0 %v482_v46  ;;  %v513_v52 = vpop.permute.xlu0 %512 }
 0x1a4   :  { %v536_v54 = vpop.permute.xlu0 %535 }
 0x1ad   :  { %550 = vperm.xlu1 %692, %v532_v47  }
 0x1b6   :  { %545 = vperm.xlu0 %691, %v531_v48  }
 0x221   :  { %v475_v55 = vpop.xlane.xlu1 %474 }
 0x222   :  { %v485_v56 = vmul.f32 0.028571429, %v475_v55 }
 0x223   :  { %v478_v57 = vpop.xlane.xlu0 %477 }
 0x224   :  { %v489_v58 = vadd.f32 1e-05, %v485_v56  ;;  %v486_v59 = vmul.f32 0.028571429, %v478_v57 }
 0x226   :  { %737 = vrsqrt.f32 %v489_v58  ;;  %v490_v60 = vadd.f32 1e-05, %v486_v59 }
 0x228   :  { %739 = vrsqrt.f32 %v490_v60 }
 0x229   :  { %v481_v61 = vpop.xlane.xlu1 %480 }
 0x22a   :  { %v487_v62 = vmul.f32 0.028571429, %v481_v61 }
 0x22c   :  { %v491_v63 = vadd.f32 1e-05, %v487_v62 }
 0x22d   :  { %v484_v0 = vpop.xlane.xlu0 %483  ;;  %v551_v24 = vpop.permute.xlu1 %550 }
 0x22e   :  { %741 = vrsqrt.f32 %v491_v63  ;;  %v488_v1 = vmul.f32 0.028571429, %v484_v0 }
 0x230   :  { %v738_v2 = vpop.eup %737  ;;  %v492_v3 = vadd.f32 1e-05, %v488_v1 }
 0x231   :  { %v497_v4 = vmul.f32 %v738_v2, %v465_v30 }
 0x232   :  { %v740_v5 = vpop.eup %739  ;;  %743 = vrsqrt.f32 %v492_v3 }
 0x233   :  { %v525_v6 = vmul.f32 %v508_v49, %v497_v4  ;;  %v498_v7 = vmul.f32 %v740_v5, %v466_v32 }
 0x235   :  { %v553_v8 = vadd.f32 %v536_v54, %v525_v6  ;;  %v526_v9 = vmul.f32 %v513_v52, %v498_v7  ;;  %v546_v19 = vpop.permute.xlu0 %545 }
 0x237   :  { %v557_v10 = vmax.f32 %v553_v8, 0.0  ;;  %v554_v11 = vadd.f32 %v541_v53, %v526_v9 }
 0x238   :  { %v742_v12 = vpop.eup %741 }
 0x239   :  { %v630_v13 = vpack.c.bf16 %v557_v10, %v557_v10  ;;  %v558_v14 = vmax.f32 %v554_v11, 0.0  ;;  %v499_v15 = vmul.f32 %v742_v12, %v467_v39 }
 0x23b   :  { %v631_v16 = vpack.c.bf16 %v558_v14, %v558_v14  ;;  %v527_v17 = vmul.f32 %v518_v50, %v499_v15  ;;  %578 = vst.msk [vmem:[%s961_s5] sm:$0xf] %vm577_vm1, %v630_v13 }
 0x23c   :  { %v744_v18 = vpop.eup %743 }
 0x23d   :  { %v500_v20 = vmul.f32 %v744_v18, %v468_v43  ;;  %579 = vst.msk [vmem:[%s961_s5 + $0x4] sm:$0xf] %vm577_vm1, %v631_v16  ;;  %v555_v21 = vadd.f32 %v546_v19, %v527_v17 }
 0x23f   :  { %v528_v22 = vmul.f32 %v523_v51, %v500_v20  ;;  %v559_v23 = vmax.f32 %v555_v21, 0.0 }
 0x241   :  { %v556_v25 = vadd.f32 %v551_v24, %v528_v22  ;;  %v632_v26 = vpack.c.bf16 %v559_v23, %v559_v23 }
 0x243   :  { %v560_v27 = vmax.f32 %v556_v25, 0.0  ;;  %580 = vst.msk [vmem:[%s961_s5 + $0x8] sm:$0xf] %vm577_vm1, %v632_v26 }
 0x245   :  { %v633_v28 = vpack.c.bf16 %v560_v27, %v560_v27 }
 0x247   :  { %581 = vst.msk [vmem:[%s961_s5 + $0xc] sm:$0xf] %vm577_vm1, %v633_v28 }

// kernel: a3c_forward.7
= control target key start
LH: loop header
LB: loop body
LE: loop exit
PB: predicated region body
PF: predicated region fallthrough
CT: control target
= control target key end

     0   :  { %15 = vsyncpa [#allocation4], 0  ;;  %s3203_s0 = inlined_call_operand.vmem [shape: bf16[1,1536], index: 0, kind: input, shape index: {}]   ;;  %s3204_s1 = inlined_call_operand.vmem [shape: bf16[1536,1024], index: 1, kind: input, shape index: {}]   ;;  %s3205_s2 = inlined_call_operand.vmem [shape: f32[1,1024], index: 2, kind: input, shape index: {}]   ;;  %s3206_s3 = inlined_call_operand.vmem [shape: f32[1,256], index: 3, kind: input, shape index: {}]   ;;  %s3207_s4 = inlined_call_operand.vmem [shape: bf16[256,7], index: 4, kind: input, shape index: {}]   ;;  %s3208_s5 = inlined_call_operand.vmem [shape: f32[1,7], index: 5, kind: input, shape index: {}]   ;;  %s3209_s6 = inlined_call_operand.hbm [shape: f32[1,1], index: 6, kind: output, shape index: {0}]   ;;  %s3210_s7 = inlined_call_operand.hbm [shape: f32[1,6], index: 7, kind: output, shape index: {1}]   ;;  %s3211_s8 = inlined_call_operand.hbm [shape: f32[1,256], index: 8, kind: output, shape index: {2}]   ;;  %s3212_s9 = inlined_call_operand.hbm [shape: f32[1,256], index: 9, kind: output, shape index: {3}]  }
   0x1   :  { %16 = vsyncpa [#allocation6], 0 }
   0x2   :  { %17 = vsyncpa [#allocation9], 0  ;;  %s2790_s30 = smov 0  }
   0x3 LB: > { %s2796_s10 = sadd.s32 4294967295, %s2730_s30   ;;  %p2270_p0 = scmp.ge.s32.totalorder %s2730_s30, 1  ;;  %s2730_s30 = sphi %s2790_s30, %s23_s30  }
   0x4   : > { %p289_p1 = scmp.lt.s32.totalorder %s2730_s30, 5 }
   0x6   : > { %p290_p2 = pnand %p2270_p0, %p289_p1 }
   0x7   : > { %s325_s11 = smul.u32 (!%p290_p2), 3, %s2796_s10  ;;  %p2273_p5 = scmp.ne.s32.totalorder (!%p290_p2), %s2796_s10, 0 }
   0x8   : > { %293 = sbr.rel (%p290_p2) target bundleno = 932 (0x3a4), region = 44 }
   0x9   : > { %s330_s12 = smul.u32 (!%p290_p2), 48, %s2796_s10  ;;  %p326_p3 = scmp.lt.s32.totalorder (!%p290_p2), %s325_s11, 11 }
   0xb   : > { %p331_p4 = scmp.lt.s32.totalorder (!%p290_p2), %s330_s12, 191 }
   0xf   : > { %s3214_s11 = smov (!%p326_p3, %s325_s11), 11  ;;  %s3216_s12 = smov (!%p331_p4, %s330_s12), 191 }
  0x10   : > { %s328_s15 = scalar_lea.vmem %s3203_s0, %s3214_s11  ;;  %s2497_s16 = sshll.u32 %s3216_s12, 5  ;;  %v2732_v0 = vmov (!%p2273_p5), 0.0  }
  0x11   : > { %s2811_s19 = scalar_lea.vmem %s3204_s1, %s2497_s16  ;;  %341 = sbr.rel (%p2273_p5) target bundleno = 24 (0x18), region = 48  ;;  %342 = vst [vmem:[#allocation2] sm:$0xff] (!%p2273_p5), %v2732_v0 }
  0x18 PF: > { %v345_v1 = vld [vmem:[%s2811_s19] sm:$0xff]  ;;  %v346_v3 = vld [vmem:[%s2811_s19 + $0x8] sm:$0xff]  ;;  %v2733_v36 = vmov 1966171168   ;;  %v549_v38 = vlaneseq  ;;  %p2467_p6 = scmp.ne.s32.totalorder %s2796_s10, 3 }
  0x19   : > { %v349_v2 = vld [vmem:[%s2811_s19 + $0x20] sm:$0xff]  ;;  %v350_v5 = vld [vmem:[%s2811_s19 + $0x28] sm:$0xff]  ;;  %v547_v37 = vunpack.c.l.s4 %v2733_v36  ;;  %vm2139_vm1 = vcmask (!%p2467_p6), 0   ;;  %s2735_s22 = smov (!%p2467_p6), 127   ;;  %vm2145_vm2 = vcmask (!%p2467_p6), 40960  }
  0x1a   : > { %v2276_v4 = vcombine.high %v345_v1, %v349_v2  ;;  %v2275_v6 = vcombine.low %v345_v1, %v349_v2  ;;  %v353_v7 = vld [vmem:[%s2811_s19 + $0x40] sm:$0xff]  ;;  %v2278_v9 = vcombine.high %v346_v3, %v350_v5  ;;  %v2277_v10 = vcombine.low %v346_v3, %v350_v5  ;;  %v354_v12 = vld [vmem:[%s2811_s19 + $0x48] sm:$0xff] }
  0x1b   : > { %v357_v8 = vld [vmem:[%s2811_s19 + $0x60] sm:$0xff]  ;;  %v358_v13 = vld [vmem:[%s2811_s19 + $0x68] sm:$0xff]  ;;  %v548_v47 = vunpack.c.0.s8 %v547_v37  ;;  %v2839_v48 = vshrl.u32 %v549_v38, 7  ;;  %vm1953_vm0 = vcmp.lt.s32.totalorder (!%p2467_p6), %v549_v38, 256 }
  0x1c   : > { %v2284_v11 = vcombine.high %v353_v7, %v357_v8  ;;  %v361_v14 = vld [vmem:[%s2811_s19 + $0x80] sm:$0xff]  ;;  %1524 = vmatprep.subr.bf16.mxu0 %v2276_v4  ;;  %v2286_v15 = vcombine.high %v354_v12, %v358_v13  ;;  %v362_v17 = vld [vmem:[%s2811_s19 + $0x88] sm:$0xff]  ;;  %1606 = vmatprep.subr.bf16.mxu1 %v2278_v9  ;;  %v2283_v19 = vcombine.low %v353_v7, %v357_v8 }
  0x1d   : > { %v365_v16 = vld [vmem:[%s2811_s19 + $0xa0] sm:$0xff]  ;;  %v366_v18 = vld [vmem:[%s2811_s19 + $0xa8] sm:$0xff]  ;;  %1525 = vmatpush1.bf16.msra.mxu0 %v2275_v6  ;;  %1607 = vmatpush1.bf16.msra.mxu1 %v2277_v10  ;;  %v2285_v20 = vcombine.low %v354_v12, %v358_v13  ;;  %v2846_v57 = vsub.s32 %v548_v47, %v2839_v48 }
  0x1e   : > { %1526 = vmatprep.subr.bf16.mxu0 %v2284_v11  ;;  %v2292_v21 = vcombine.high %v361_v14, %v365_v16  ;;  %1608 = vmatprep.subr.bf16.mxu1 %v2286_v15  ;;  %v2294_v22 = vcombine.high %v362_v17, %v366_v18  ;;  %v369_v23 = vld [vmem:[%s2811_s19 + $0xc0] sm:$0xff]  ;;  %v370_v25 = vld [vmem:[%s2811_s19 + $0xc8] sm:$0xff]  ;;  %v2291_v27 = vcombine.low %v361_v14, %v365_v16 }
  0x1f   : > { %v373_v24 = vld [vmem:[%s2811_s19 + $0xe0] sm:$0xff]  ;;  %v374_v26 = vld [vmem:[%s2811_s19 + $0xe8] sm:$0xff]  ;;  %v2293_v28 = vcombine.low %v362_v17, %v366_v18 }
  0x20   : > { %v2300_v29 = vcombine.high %v369_v23, %v373_v24  ;;  %v2302_v30 = vcombine.high %v370_v25, %v374_v26  ;;  %v377_v31 = vld [vmem:[%s2811_s19 + $0x100] sm:$0xff]  ;;  %v378_v33 = vld [vmem:[%s2811_s19 + $0x108] sm:$0xff]  ;;  %v2299_v35 = vcombine.low %v369_v23, %v373_v24  ;;  %v2301_v39 = vcombine.low %v370_v25, %v374_v26 }
  0x21   : > { %1527 = vmatpush1.bf16.msra.mxu0 %v2283_v19  ;;  %1609 = vmatpush1.bf16.msra.mxu1 %v2285_v20  ;;  %v381_v32 = vld [vmem:[%s2811_s19 + $0x120] sm:$0xff]  ;;  %v382_v34 = vld [vmem:[%s2811_s19 + $0x128] sm:$0xff] }
  0x22   : > { %1528 = vmatprep.subr.bf16.mxu0 %v2292_v21  ;;  %1610 = vmatprep.subr.bf16.mxu1 %v2294_v22  ;;  %v2308_v40 = vcombine.high %v377_v31, %v381_v32  ;;  %v2310_v41 = vcombine.high %v378_v33, %v382_v34  ;;  %v385_v42 = vld [vmem:[%s2811_s19 + $0x140] sm:$0xff]  ;;  %v386_v44 = vld [vmem:[%s2811_s19 + $0x148] sm:$0xff]  ;;  %v2307_v46 = vcombine.low %v377_v31, %v381_v32 }
  0x23   : > { %v389_v43 = vld [vmem:[%s2811_s19 + $0x160] sm:$0xff]  ;;  %v390_v45 = vld [vmem:[%s2811_s19 + $0x168] sm:$0xff]  ;;  %v2309_v49 = vcombine.low %v378_v33, %v382_v34 }
  0x24   : > { %v2316_v50 = vcombine.high %v385_v42, %v389_v43  ;;  %v2318_v51 = vcombine.high %v386_v44, %v390_v45  ;;  %v393_v52 = vld [vmem:[%s2811_s19 + $0x180] sm:$0xff]  ;;  %v394_v54 = vld [vmem:[%s2811_s19 + $0x188] sm:$0xff]  ;;  %v2315_v56 = vcombine.low %v385_v42, %v389_v43  ;;  %v2317_v58 = vcombine.low %v386_v44, %v390_v45 }
  0x25   : > { %1529 = vmatpush1.bf16.msra.mxu0 %v2291_v27  ;;  %1611 = vmatpush1.bf16.msra.mxu1 %v2293_v28  ;;  %v397_v53 = vld [vmem:[%s2811_s19 + $0x1a0] sm:$0xff]  ;;  %v398_v55 = vld [vmem:[%s2811_s19 + $0x1a8] sm:$0xff] }
  0x26   : > { %1530 = vmatprep.subr.bf16.mxu0 %v2300_v29  ;;  %1612 = vmatprep.subr.bf16.mxu1 %v2302_v30  ;;  %v2324_v59 = vcombine.high %v393_v52, %v397_v53  ;;  %v2853_v60 = vld.sshfl [vmem:[%s328_s15] sm:$0x13 pattern:$0x75316420]  ;;  %v2326_v61 = vcombine.high %v394_v54, %v398_v55  ;;  %v402_v1 = vld [vmem:[%s2811_s19 + $0x1c8] sm:$0xff]  ;;  %v2323_v3 = vcombine.low %v393_v52, %v397_v53 }
  0x27   : > { %v401_v62 = vld [vmem:[%s2811_s19 + $0x1c0] sm:$0xff]  ;;  %v545_v0 = vcombine.high %v2853_v60, %v2853_v60  ;;  %v406_v2 = vld [vmem:[%s2811_s19 + $0x1e8] sm:$0xff]  ;;  %v2325_v5 = vcombine.low %v394_v54, %v398_v55 }
  0x28   : > { %v405_v63 = vld [vmem:[%s2811_s19 + $0x1e0] sm:$0xff]  ;;  %v2334_v7 = vcombine.high %v402_v1, %v406_v2  ;;  %v410_v10 = vld [vmem:[%s2811_s19 + $0x208] sm:$0xff]  ;;  %v2333_v13 = vcombine.low %v402_v1, %v406_v2 }
  0x29   : > { %1531 = vmatpush1.bf16.msra.mxu0 %v2299_v35  ;;  %1613 = vmatpush1.bf16.msra.mxu1 %v2301_v39  ;;  %v2862_v4 = vrot.slane %v545_v0, %v2846_v57  ;;  %v2332_v6 = vcombine.high %v401_v62, %v405_v63  ;;  %v409_v8 = vld [vmem:[%s2811_s19 + $0x200] sm:$0xff]  ;;  %v414_v11 = vld [vmem:[%s2811_s19 + $0x228] sm:$0xff]  ;;  %v2331_v12 = vcombine.low %v401_v62, %v405_v63 }
  0x2a   : > { %1532 = vmatprep.subr.bf16.mxu0 %v2308_v40  ;;  %1614 = vmatprep.subr.bf16.mxu1 %v2310_v41  ;;  %v413_v9 = vld [vmem:[%s2811_s19 + $0x220] sm:$0xff]  ;;  %v2342_v15 = vcombine.high %v410_v10, %v414_v11  ;;  %v418_v18 = vld [vmem:[%s2811_s19 + $0x248] sm:$0xff]  ;;  %v2341_v21 = vcombine.low %v410_v10, %v414_v11 }
  0x2b   : > { %1556 = vmatprep.mubr.bf16.mxu0 %v2862_v4  ;;  %1638 = vmatprep.mubr.bf16.mxu1 %v2862_v4  ;;  %v2340_v14 = vcombine.high %v409_v8, %v413_v9  ;;  %v417_v16 = vld [vmem:[%s2811_s19 + $0x240] sm:$0xff]  ;;  %v422_v19 = vld [vmem:[%s2811_s19 + $0x268] sm:$0xff]  ;;  %v2339_v20 = vcombine.low %v409_v8, %v413_v9 }
  0x2c   : > { %v421_v17 = vld [vmem:[%s2811_s19 + $0x260] sm:$0xff]  ;;  %v2350_v23 = vcombine.high %v418_v18, %v422_v19  ;;  %v426_v26 = vld [vmem:[%s2811_s19 + $0x288] sm:$0xff]  ;;  %v2349_v29 = vcombine.low %v418_v18, %v422_v19 }
  0x2d   : > { %1533 = vmatpush1.bf16.msra.mxu0 %v2307_v46  ;;  %1615 = vmatpush1.bf16.msra.mxu1 %v2309_v49  ;;  %v2348_v22 = vcombine.high %v417_v16, %v421_v17  ;;  %v425_v24 = vld [vmem:[%s2811_s19 + $0x280] sm:$0xff]  ;;  %v430_v27 = vld [vmem:[%s2811_s19 + $0x2a8] sm:$0xff]  ;;  %v2347_v28 = vcombine.low %v417_v16, %v421_v17 }
  0x2e   : > { %1534 = vmatprep.subr.bf16.mxu0 %v2316_v50  ;;  %1616 = vmatprep.subr.bf16.mxu1 %v2318_v51  ;;  %v429_v25 = vld [vmem:[%s2811_s19 + $0x2a0] sm:$0xff]  ;;  %v2358_v31 = vcombine.high %v426_v26, %v430_v27  ;;  %v434_v34 = vld [vmem:[%s2811_s19 + $0x2c8] sm:$0xff]  ;;  %v2357_v37 = vcombine.low %v426_v26, %v430_v27 }
  0x2f   : > { %v2356_v30 = vcombine.high %v425_v24, %v429_v25  ;;  %v433_v32 = vld [vmem:[%s2811_s19 + $0x2c0] sm:$0xff]  ;;  %v438_v35 = vld [vmem:[%s2811_s19 + $0x2e8] sm:$0xff]  ;;  %v2355_v36 = vcombine.low %v425_v24, %v429_v25 }
  0x30   : > { %v437_v33 = vld [vmem:[%s2811_s19 + $0x2e0] sm:$0xff]  ;;  %v2366_v40 = vcombine.high %v434_v34, %v438_v35  ;;  %v442_v43 = vld [vmem:[%s2811_s19 + $0x308] sm:$0xff]  ;;  %v2365_v46 = vcombine.low %v434_v34, %v438_v35 }
  0x31   : > { %1535 = vmatpush1.bf16.msra.mxu0 %v2315_v56  ;;  %1617 = vmatpush1.bf16.msra.mxu1 %v2317_v58  ;;  %v2364_v39 = vcombine.high %v433_v32, %v437_v33  ;;  %v441_v41 = vld [vmem:[%s2811_s19 + $0x300] sm:$0xff]  ;;  %v446_v44 = vld [vmem:[%s2811_s19 + $0x328] sm:$0xff]  ;;  %v2363_v45 = vcombine.low %v433_v32, %v437_v33 }
  0x32   : > { %1536 = vmatprep.subr.bf16.mxu0 %v2324_v59  ;;  %1618 = vmatprep.subr.bf16.mxu1 %v2326_v61  ;;  %v445_v42 = vld [vmem:[%s2811_s19 + $0x320] sm:$0xff]  ;;  %v2374_v49 = vcombine.high %v442_v43, %v446_v44  ;;  %v450_v52 = vld [vmem:[%s2811_s19 + $0x348] sm:$0xff]  ;;  %v2373_v55 = vcombine.low %v442_v43, %v446_v44 }
  0x33   : > { %v2372_v47 = vcombine.high %v441_v41, %v445_v42  ;;  %v449_v50 = vld [vmem:[%s2811_s19 + $0x340] sm:$0xff]  ;;  %v454_v53 = vld [vmem:[%s2811_s19 + $0x368] sm:$0xff]  ;;  %v2371_v54 = vcombine.low %v441_v41, %v445_v42 }
  0x34   : > { %v453_v51 = vld [vmem:[%s2811_s19 + $0x360] sm:$0xff]  ;;  %v2382_v58 = vcombine.high %v450_v52, %v454_v53  ;;  %v458_v62 = vld [vmem:[%s2811_s19 + $0x388] sm:$0xff]  ;;  %v2381_v1 = vcombine.low %v450_v52, %v454_v53 }
  0x35   : > { %1537 = vmatpush1.bf16.msra.mxu0 %v2323_v3  ;;  %1619 = vmatpush1.bf16.msra.mxu1 %v2325_v5  ;;  %v2380_v56 = vcombine.high %v449_v50, %v453_v51  ;;  %v457_v59 = vld [vmem:[%s2811_s19 + $0x380] sm:$0xff]  ;;  %v462_v63 = vld [vmem:[%s2811_s19 + $0x3a8] sm:$0xff]  ;;  %v2379_v0 = vcombine.low %v449_v50, %v453_v51 }
  0x36   : > { %1538 = vmatprep.subr.bf16.mxu0 %v2332_v6  ;;  %1620 = vmatprep.subr.bf16.mxu1 %v2334_v7  ;;  %v461_v61 = vld [vmem:[%s2811_s19 + $0x3a0] sm:$0xff]  ;;  %v2390_v3 = vcombine.high %v458_v62, %v462_v63  ;;  %v466_v7 = vld [vmem:[%s2811_s19 + $0x3c8] sm:$0xff]  ;;  %v2389_v10 = vcombine.low %v458_v62, %v462_v63 }
  0x37   : > { %v2388_v2 = vcombine.high %v457_v59, %v461_v61  ;;  %v465_v5 = vld [vmem:[%s2811_s19 + $0x3c0] sm:$0xff]  ;;  %v470_v8 = vld [vmem:[%s2811_s19 + $0x3e8] sm:$0xff]  ;;  %v2387_v9 = vcombine.low %v457_v59, %v461_v61 }
  0x38   : > { %v469_v6 = vld [vmem:[%s2811_s19 + $0x3e0] sm:$0xff]  ;;  %v478_v16 = vld [vmem:[%s2811_s19 + $0x428] sm:$0xff]  ;;  %v2397_v18 = vcombine.low %v466_v7, %v470_v8 }
  0x39   : > { %1539 = vmatpush1.bf16.msra.mxu0 %v2331_v12  ;;  %1621 = vmatpush1.bf16.msra.mxu1 %v2333_v13  ;;  %v2396_v11 = vcombine.high %v465_v5, %v469_v6  ;;  %v2398_v12 = vcombine.high %v466_v7, %v470_v8  ;;  %v473_v13 = vld [vmem:[%s2811_s19 + $0x400] sm:$0xff]  ;;  %v2395_v17 = vcombine.low %v465_v5, %v469_v6  ;;  %v482_v24 = vld [vmem:[%s2811_s19 + $0x448] sm:$0xff] }
  0x3a   : > { %1540 = vmatprep.subr.bf16.mxu0 %v2340_v14  ;;  %1622 = vmatprep.subr.bf16.mxu1 %v2342_v15  ;;  %v477_v14 = vld [vmem:[%s2811_s19 + $0x420] sm:$0xff]  ;;  %v474_v15 = vld [vmem:[%s2811_s19 + $0x408] sm:$0xff] }
  0x3b   : > { %v2404_v19 = vcombine.high %v473_v13, %v477_v14  ;;  %v486_v25 = vld [vmem:[%s2811_s19 + $0x468] sm:$0xff]  ;;  %v2403_v26 = vcombine.low %v473_v13, %v477_v14  ;;  %v2405_v27 = vcombine.low %v474_v15, %v478_v16 }
  0x3c   : > { %v490_v32 = vld [vmem:[%s2811_s19 + $0x488] sm:$0xff]  ;;  %v2413_v34 = vcombine.low %v482_v24, %v486_v25 }
  0x3d   : > { %1541 = vmatpush1.bf16.msra.mxu0 %v2339_v20  ;;  %1623 = vmatpush1.bf16.msra.mxu1 %v2341_v21  ;;  %v2406_v20 = vcombine.high %v474_v15, %v478_v16  ;;  %v481_v21 = vld [vmem:[%s2811_s19 + $0x440] sm:$0xff]  ;;  %v498_v41 = vld [vmem:[%s2811_s19 + $0x4c8] sm:$0xff] }
  0x3e   : > { %1542 = vmatprep.subr.bf16.mxu0 %v2348_v22  ;;  %1624 = vmatprep.subr.bf16.mxu1 %v2350_v23  ;;  %v485_v22 = vld [vmem:[%s2811_s19 + $0x460] sm:$0xff]  ;;  %v2906_v23 = vrot.slane %v2853_v60, %v2846_v57  ;;  %v494_v60 = vld [vmem:[%s2811_s19 + $0x4a8] sm:$0xff] }
  0x3f   : > { %v2411_v33 = vcombine.low %v481_v21, %v485_v22  ;;  %v502_v42 = vld [vmem:[%s2811_s19 + $0x4e8] sm:$0xff]  ;;  %v2421_v44 = vcombine.low %v490_v32, %v494_v60 }
  0x40   : > { %v506_v50 = vld [vmem:[%s2811_s19 + $0x508] sm:$0xff]  ;;  %v2429_v53 = vcombine.low %v498_v41, %v502_v42 }
  0x41   : > { %1543 = vmatpush1.bf16.msra.mxu0 %v2347_v28  ;;  %1625 = vmatpush1.bf16.msra.mxu1 %v2349_v29  ;;  %v2412_v28 = vcombine.high %v481_v21, %v485_v22  ;;  %v2414_v29 = vcombine.high %v482_v24, %v486_v25  ;;  %v510_v51 = vld [vmem:[%s2811_s19 + $0x528] sm:$0xff]  ;;  %v348_v21 = vld [vmem:[%s2811_s19 + $0x18] sm:$0xff] }
  0x42   : > { %1544 = vmatprep.subr.bf16.mxu0 %v2356_v30  ;;  %1626 = vmatprep.subr.bf16.mxu1 %v2358_v31  ;;  %v489_v30 = vld [vmem:[%s2811_s19 + $0x480] sm:$0xff]  ;;  %v514_v59 = vld [vmem:[%s2811_s19 + $0x548] sm:$0xff]  ;;  %v2437_v63 = vcombine.low %v506_v50, %v510_v51  ;;  %v352_v22 = vld [vmem:[%s2811_s19 + $0x38] sm:$0xff] }
  0x43   : > { %v493_v31 = vld [vmem:[%s2811_s19 + $0x4a0] sm:$0xff]  ;;  %v518_v61 = vld [vmem:[%s2811_s19 + $0x568] sm:$0xff] }
  0x44   : > { %v2420_v35 = vcombine.high %v489_v30, %v493_v31  ;;  %v2419_v43 = vcombine.low %v489_v30, %v493_v31  ;;  %v522_v5 = vld [vmem:[%s2811_s19 + $0x588] sm:$0xff]  ;;  %v2445_v8 = vcombine.low %v514_v59, %v518_v61  ;;  %v2946_v30 = vcombine.high %v2906_v23, %v2906_v23  ;;  %v356_v31 = vld [vmem:[%s2811_s19 + $0x58] sm:$0xff] }
  0x45   : > { %1545 = vmatpush1.bf16.msra.mxu0 %v2355_v36  ;;  %1627 = vmatpush1.bf16.msra.mxu1 %v2357_v37  ;;  %v2422_v36 = vcombine.high %v490_v32, %v494_v60  ;;  %v497_v37 = vld [vmem:[%s2811_s19 + $0x4c0] sm:$0xff]  ;;  %v526_v6 = vld [vmem:[%s2811_s19 + $0x5a8] sm:$0xff]  ;;  %v360_v32 = vld [vmem:[%s2811_s19 + $0x78] sm:$0xff] }
  0x46   : > { %1546 = vmatprep.subr.bf16.mxu0 %v2364_v39  ;;  %1628 = vmatprep.subr.bf16.mxu1 %v2366_v40  ;;  %v501_v39 = vld [vmem:[%s2811_s19 + $0x4e0] sm:$0xff]  ;;  %v2734_v40 = vmov 0   ;;  %v530_v13 = vld [vmem:[%s2811_s19 + $0x5c8] sm:$0xff]  ;;  %v2453_v16 = vcombine.low %v522_v5, %v526_v6 }
  0x47   : > { %v2427_v52 = vcombine.low %v497_v37, %v501_v39  ;;  %v534_v14 = vld [vmem:[%s2811_s19 + $0x5e8] sm:$0xff] }
  0x48   : > { %v2461_v25 = vcombine.low %v530_v13, %v534_v14 }
  0x49   : > { %1547 = vmatpush1.bf16.msra.mxu0 %v2363_v45  ;;  %1629 = vmatpush1.bf16.msra.mxu1 %v2365_v46  ;;  %v2428_v45 = vcombine.high %v497_v37, %v501_v39  ;;  %v2430_v46 = vcombine.high %v498_v41, %v502_v42  ;;  %v367_v37 = vld [vmem:[%s2811_s19 + $0xb0] sm:$0xff]  ;;  %v364_v39 = vld [vmem:[%s2811_s19 + $0x98] sm:$0xff] }
  0x4a   : > { %1548 = vmatprep.subr.bf16.mxu0 %v2372_v47  ;;  %1630 = vmatprep.subr.bf16.mxu1 %v2374_v49  ;;  %v505_v47 = vld [vmem:[%s2811_s19 + $0x500] sm:$0xff]  ;;  %v368_v41 = vld [vmem:[%s2811_s19 + $0xb8] sm:$0xff] }
  0x4b   : > { %v509_v49 = vld [vmem:[%s2811_s19 + $0x520] sm:$0xff] }
  0x4c   : > { %v2435_v62 = vcombine.low %v505_v47, %v509_v49 }
  0x4d   : > { %1549 = vmatpush1.bf16.msra.mxu0 %v2371_v54  ;;  %1631 = vmatpush1.bf16.msra.mxu1 %v2373_v55  ;;  %v2436_v54 = vcombine.high %v505_v47, %v509_v49  ;;  %v2438_v55 = vcombine.high %v506_v50, %v510_v51  ;;  %v375_v47 = vld [vmem:[%s2811_s19 + $0xf0] sm:$0xff]  ;;  %v372_v49 = vld [vmem:[%s2811_s19 + $0xd8] sm:$0xff] }
  0x4e   : > { %1550 = vmatprep.subr.bf16.mxu0 %v2380_v56  ;;  %1632 = vmatprep.subr.bf16.mxu1 %v2382_v58  ;;  %v513_v56 = vld [vmem:[%s2811_s19 + $0x540] sm:$0xff]  ;;  %v376_v50 = vld [vmem:[%s2811_s19 + $0xf8] sm:$0xff] }
  0x4f   : > { %v517_v58 = vld [vmem:[%s2811_s19 + $0x560] sm:$0xff] }
  0x50   : > { %v2443_v7 = vcombine.low %v513_v56, %v517_v58 }
  0x51   : > { %1551 = vmatpush1.bf16.msra.mxu0 %v2379_v0  ;;  %1633 = vmatpush1.bf16.msra.mxu1 %v2381_v1  ;;  %v2444_v0 = vcombine.high %v513_v56, %v517_v58  ;;  %v2446_v1 = vcombine.high %v514_v59, %v518_v61  ;;  %v383_v56 = vld [vmem:[%s2811_s19 + $0x130] sm:$0xff]  ;;  %v380_v58 = vld [vmem:[%s2811_s19 + $0x118] sm:$0xff] }
  0x52   : > { %1552 = vmatprep.subr.bf16.mxu0 %v2388_v2  ;;  %1634 = vmatprep.subr.bf16.mxu1 %v2390_v3  ;;  %v521_v2 = vld [vmem:[%s2811_s19 + $0x580] sm:$0xff]  ;;  %v384_v59 = vld [vmem:[%s2811_s19 + $0x138] sm:$0xff] }
  0x53   : > { %v525_v3 = vld [vmem:[%s2811_s19 + $0x5a0] sm:$0xff] }
  0x54   : > { %v2451_v15 = vcombine.low %v521_v2, %v525_v3 }
  0x55   : > { %1553 = vmatpush1.bf16.msra.mxu0 %v2387_v9  ;;  %1635 = vmatpush1.bf16.msra.mxu1 %v2389_v10  ;;  %v2452_v9 = vcombine.high %v521_v2, %v525_v3  ;;  %v2454_v10 = vcombine.high %v522_v5, %v526_v6  ;;  %v388_v2 = vld [vmem:[%s2811_s19 + $0x158] sm:$0xff]  ;;  %v2313_v6 = vcombine.low %v380_v58, %v384_v59 }
  0x56   : > { %1554 = vmatprep.subr.bf16.mxu0 %v2396_v11  ;;  %1636 = vmatprep.subr.bf16.mxu1 %v2398_v12  ;;  %v529_v11 = vld [vmem:[%s2811_s19 + $0x5c0] sm:$0xff]  ;;  %v392_v3 = vld [vmem:[%s2811_s19 + $0x178] sm:$0xff] }
  0x57   : > { %v533_v12 = vld [vmem:[%s2811_s19 + $0x5e0] sm:$0xff] }
  0x58   : > { %v2459_v24 = vcombine.low %v529_v11, %v533_v12 }
  0x59   : > { %1555 = vmatpush1.bf16.msra.mxu0 %v2395_v17  ;;  %1637 = vmatpush1.bf16.msra.mxu1 %v2397_v18  ;;  %v2460_v17 = vcombine.high %v529_v11, %v533_v12  ;;  %v2462_v18 = vcombine.high %v530_v13, %v534_v14  ;;  %v396_v11 = vld [vmem:[%s2811_s19 + $0x198] sm:$0xff]  ;;  %v2321_v14 = vcombine.low %v388_v2, %v392_v3 }
  0x5a   : > { %1565 = vmatprep.subr.bf16.mxu0 %v2404_v19  ;;  %1647 = vmatprep.subr.bf16.mxu1 %v2406_v20  ;;  %v347_v19 = vld [vmem:[%s2811_s19 + $0x10] sm:$0xff]  ;;  %v400_v12 = vld [vmem:[%s2811_s19 + $0x1b8] sm:$0xff] }
  0x5b   : > { %v351_v20 = vld [vmem:[%s2811_s19 + $0x30] sm:$0xff] }
  0x5c   : > { %1557 = vmatmul.mubr.bf16.vlgmr.msra.gmra.mrb[0].mxu0 %v2906_v23  ;;  %1639 = vmatmul.mubr.bf16.vlgmr.msra.gmra.mrb[0].mxu1 %v2906_v23  ;;  %v2279_v60 = vcombine.low %v347_v19, %v351_v20 }
  0x5d   : > { %1566 = vmatpush1.bf16.msra.mxu0 %v2403_v26  ;;  %1648 = vmatpush1.bf16.msra.mxu1 %v2405_v27  ;;  %v2280_v26 = vcombine.high %v347_v19, %v351_v20  ;;  %v2282_v27 = vcombine.high %v348_v21, %v352_v22  ;;  %v404_v19 = vld [vmem:[%s2811_s19 + $0x1d8] sm:$0xff] }
  0x5e   : > { %1567 = vmatprep.subr.bf16.mxu0 %v2412_v28  ;;  %1649 = vmatprep.subr.bf16.mxu1 %v2414_v29  ;;  %v355_v28 = vld [vmem:[%s2811_s19 + $0x50] sm:$0xff]  ;;  %v408_v20 = vld [vmem:[%s2811_s19 + $0x1f8] sm:$0xff] }
  0x5f   : > { %1597 = vmatprep.mubr.bf16.mxu0 %v2734_v40  ;;  %1679 = vmatprep.mubr.bf16.mxu1 %v2734_v40  ;;  %v359_v29 = vld [vmem:[%s2811_s19 + $0x70] sm:$0xff] }
  0x60   : > { %v2287_v42 = vcombine.low %v355_v28, %v359_v29 }
  0x61   : > { %1568 = vmatpush1.bf16.msra.mxu0 %v2411_v33  ;;  %1650 = vmatpush1.bf16.msra.mxu1 %v2413_v34  ;;  %v2281_v33 = vcombine.low %v348_v21, %v352_v22  ;;  %v2288_v34 = vcombine.high %v355_v28, %v359_v29  ;;  %v2329_v22 = vcombine.low %v396_v11, %v400_v12  ;;  %v412_v28 = vld [vmem:[%s2811_s19 + $0x218] sm:$0xff] }
  0x62   : > { %1569 = vmatprep.subr.bf16.mxu0 %v2420_v35  ;;  %1651 = vmatprep.subr.bf16.mxu1 %v2422_v36  ;;  %v2290_v35 = vcombine.high %v356_v31, %v360_v32  ;;  %v363_v36 = vld [vmem:[%s2811_s19 + $0x90] sm:$0xff]  ;;  %v416_v29 = vld [vmem:[%s2811_s19 + $0x238] sm:$0xff] }
  0x63   : > { %v2295_v51 = vcombine.low %v363_v36, %v367_v37 }
  0x65   : > { %1570 = vmatpush1.bf16.msra.mxu0 %v2419_v43  ;;  %1652 = vmatpush1.bf16.msra.mxu1 %v2421_v44  ;;  %v2289_v43 = vcombine.low %v356_v31, %v360_v32  ;;  %v2296_v44 = vcombine.high %v363_v36, %v367_v37  ;;  %v2337_v32 = vcombine.low %v404_v19, %v408_v20  ;;  %v420_v36 = vld [vmem:[%s2811_s19 + $0x258] sm:$0xff] }
  0x66   : > { %1571 = vmatprep.subr.bf16.mxu0 %v2428_v45  ;;  %1653 = vmatprep.subr.bf16.mxu1 %v2430_v46  ;;  %v2298_v45 = vcombine.high %v364_v39, %v368_v41  ;;  %v371_v46 = vld [vmem:[%s2811_s19 + $0xd0] sm:$0xff]  ;;  %v424_v37 = vld [vmem:[%s2811_s19 + $0x278] sm:$0xff] }
  0x67   : > { %v2303_v61 = vcombine.low %v371_v46, %v375_v47 }
  0x69   : > { %1572 = vmatpush1.bf16.msra.mxu0 %v2427_v52  ;;  %1654 = vmatpush1.bf16.msra.mxu1 %v2429_v53  ;;  %v2297_v52 = vcombine.low %v364_v39, %v368_v41  ;;  %v2304_v53 = vcombine.high %v371_v46, %v375_v47  ;;  %v2345_v41 = vcombine.low %v412_v28, %v416_v29  ;;  %v428_v46 = vld [vmem:[%s2811_s19 + $0x298] sm:$0xff] }
  0x6a   : > { %1573 = vmatprep.subr.bf16.mxu0 %v2436_v54  ;;  %1655 = vmatprep.subr.bf16.mxu1 %v2438_v55  ;;  %v2306_v54 = vcombine.high %v372_v49, %v376_v50  ;;  %v379_v55 = vld [vmem:[%s2811_s19 + $0x110] sm:$0xff]  ;;  %v432_v47 = vld [vmem:[%s2811_s19 + $0x2b8] sm:$0xff] }
  0x6b   : > { %v2311_v5 = vcombine.low %v379_v55, %v383_v56 }
  0x6d   : > { %1574 = vmatpush1.bf16.msra.mxu0 %v2435_v62  ;;  %1656 = vmatpush1.bf16.msra.mxu1 %v2437_v63  ;;  %v2312_v62 = vcombine.high %v379_v55, %v383_v56  ;;  %v2314_v63 = vcombine.high %v380_v58, %v384_v59  ;;  %v436_v55 = vld [vmem:[%s2811_s19 + $0x2d8] sm:$0xff]  ;;  %v2361_v59 = vcombine.low %v428_v46, %v432_v47 }
  0x6e   : > { %1575 = vmatprep.subr.bf16.mxu0 %v2444_v0  ;;  %1657 = vmatprep.subr.bf16.mxu1 %v2446_v1  ;;  %v387_v0 = vld [vmem:[%s2811_s19 + $0x150] sm:$0xff]  ;;  %v440_v56 = vld [vmem:[%s2811_s19 + $0x2f8] sm:$0xff] }
  0x6f   : > { %v391_v1 = vld [vmem:[%s2811_s19 + $0x170] sm:$0xff] }
  0x70   : > { %v2319_v13 = vcombine.low %v387_v0, %v391_v1 }
  0x71   : > { %1576 = vmatpush1.bf16.msra.mxu0 %v2443_v7  ;;  %1658 = vmatpush1.bf16.msra.mxu1 %v2445_v8  ;;  %v2320_v7 = vcombine.high %v387_v0, %v391_v1  ;;  %v2322_v8 = vcombine.high %v388_v2, %v392_v3  ;;  %v444_v0 = vld [vmem:[%s2811_s19 + $0x318] sm:$0xff]  ;;  %v2369_v3 = vcombine.low %v436_v55, %v440_v56 }
  0x72   : > { %1577 = vmatprep.subr.bf16.mxu0 %v2452_v9  ;;  %1659 = vmatprep.subr.bf16.mxu1 %v2454_v10  ;;  %v395_v9 = vld [vmem:[%s2811_s19 + $0x190] sm:$0xff]  ;;  %v448_v1 = vld [vmem:[%s2811_s19 + $0x338] sm:$0xff] }
  0x73   : > { %v399_v10 = vld [vmem:[%s2811_s19 + $0x1b0] sm:$0xff] }
  0x74   : > { %v2327_v21 = vcombine.low %v395_v9, %v399_v10 }
  0x75   : > { %1578 = vmatpush1.bf16.msra.mxu0 %v2451_v15  ;;  %1660 = vmatpush1.bf16.msra.mxu1 %v2453_v16  ;;  %v2328_v15 = vcombine.high %v395_v9, %v399_v10  ;;  %v2330_v16 = vcombine.high %v396_v11, %v400_v12  ;;  %v452_v9 = vld [vmem:[%s2811_s19 + $0x358] sm:$0xff]  ;;  %v2377_v12 = vcombine.low %v444_v0, %v448_v1 }
  0x76   : > { %1579 = vmatprep.subr.bf16.mxu0 %v2460_v17  ;;  %1661 = vmatprep.subr.bf16.mxu1 %v2462_v18  ;;  %v403_v17 = vld [vmem:[%s2811_s19 + $0x1d0] sm:$0xff]  ;;  %v456_v10 = vld [vmem:[%s2811_s19 + $0x378] sm:$0xff] }
  0x77   : > { %v407_v18 = vld [vmem:[%s2811_s19 + $0x1f0] sm:$0xff] }
  0x78   : > { %v2335_v31 = vcombine.low %v403_v17, %v407_v18 }
  0x79   : > { %1580 = vmatpush1.bf16.msra.mxu0 %v2459_v24  ;;  %1662 = vmatpush1.bf16.msra.mxu1 %v2461_v25  ;;  %v2336_v24 = vcombine.high %v403_v17, %v407_v18  ;;  %v2338_v25 = vcombine.high %v404_v19, %v408_v20  ;;  %v460_v17 = vld [vmem:[%s2811_s19 + $0x398] sm:$0xff]  ;;  %v2385_v20 = vcombine.low %v452_v9, %v456_v10 }
  0x7a   : > { %1688 = vmatprep.subr.bf16.mxu0 %v2280_v26  ;;  %1770 = vmatprep.subr.bf16.mxu1 %v2282_v27  ;;  %v411_v26 = vld [vmem:[%s2811_s19 + $0x210] sm:$0xff]  ;;  %v464_v18 = vld [vmem:[%s2811_s19 + $0x3b8] sm:$0xff] }
  0x7b   : > { %v415_v27 = vld [vmem:[%s2811_s19 + $0x230] sm:$0xff] }
  0x7c   : > { %1598 = vmatmul.mubr.bf16.vlgmr.msra.gmra.mrb[0].mxu0 %v2946_v30  ;;  %1680 = vmatmul.mubr.bf16.vlgmr.msra.gmra.mrb[0].mxu1 %v2946_v30  ;;  %v2343_v39 = vcombine.low %v411_v26, %v415_v27 }
  0x7d   : > { %1689 = vmatpush1.bf16.msra.mxu0 %v2279_v60  ;;  %1771 = vmatpush1.bf16.msra.mxu1 %v2281_v33  ;;  %v2344_v60 = vcombine.high %v411_v26, %v415_v27  ;;  %v2346_v33 = vcombine.high %v412_v28, %v416_v29  ;;  %v468_v26 = vld [vmem:[%s2811_s19 + $0x3d8] sm:$0xff]  ;;  %v2393_v29 = vcombine.low %v460_v17, %v464_v18 }
  0x7e   : > { %1690 = vmatprep.subr.bf16.mxu0 %v2288_v34  ;;  %1772 = vmatprep.subr.bf16.mxu1 %v2290_v35  ;;  %v419_v34 = vld [vmem:[%s2811_s19 + $0x250] sm:$0xff]  ;;  %v472_v27 = vld [vmem:[%s2811_s19 + $0x3f8] sm:$0xff] }
  0x7f   : > { %1720 = vmatprep.mubr.bf16.mxu0 %v2862_v4  ;;  %1802 = vmatprep.mubr.bf16.mxu1 %v2862_v4  ;;  %v2305_v4 = vcombine.low %v372_v49, %v376_v50  ;;  %v423_v35 = vld [vmem:[%s2811_s19 + $0x270] sm:$0xff]  ;;  %v2353_v50 = vcombine.low %v420_v36, %v424_v37 }
  0x80   : > { %v2351_v49 = vcombine.low %v419_v34, %v423_v35 }
  0x81   : > { %1691 = vmatpush1.bf16.msra.mxu0 %v2287_v42  ;;  %1773 = vmatpush1.bf16.msra.mxu1 %v2289_v43  ;;  %v2352_v42 = vcombine.high %v419_v34, %v423_v35  ;;  %v2354_v43 = vcombine.high %v420_v36, %v424_v37  ;;  %v476_v34 = vld [vmem:[%s2811_s19 + $0x418] sm:$0xff]  ;;  %v2401_v37 = vcombine.low %v468_v26, %v472_v27 }
  0x82   : > { %1692 = vmatprep.subr.bf16.mxu0 %v2296_v44  ;;  %1774 = vmatprep.subr.bf16.mxu1 %v2298_v45  ;;  %v427_v44 = vld [vmem:[%s2811_s19 + $0x290] sm:$0xff]  ;;  %v480_v35 = vld [vmem:[%s2811_s19 + $0x438] sm:$0xff] }
  0x83   : > { %v431_v45 = vld [vmem:[%s2811_s19 + $0x2b0] sm:$0xff] }
  0x84   : > { %v2359_v58 = vcombine.low %v427_v44, %v431_v45 }
  0x85   : > { %1693 = vmatpush1.bf16.msra.mxu0 %v2295_v51  ;;  %1775 = vmatpush1.bf16.msra.mxu1 %v2297_v52  ;;  %v2360_v51 = vcombine.high %v427_v44, %v431_v45  ;;  %v2362_v52 = vcombine.high %v428_v46, %v432_v47  ;;  %v484_v44 = vld [vmem:[%s2811_s19 + $0x458] sm:$0xff]  ;;  %v2409_v47 = vcombine.low %v476_v34, %v480_v35 }
  0x86   : > { %1694 = vmatprep.subr.bf16.mxu0 %v2304_v53  ;;  %1776 = vmatprep.subr.bf16.mxu1 %v2306_v54  ;;  %v435_v53 = vld [vmem:[%s2811_s19 + $0x2d0] sm:$0xff]  ;;  %v488_v45 = vld [vmem:[%s2811_s19 + $0x478] sm:$0xff] }
  0x87   : > { %v439_v54 = vld [vmem:[%s2811_s19 + $0x2f0] sm:$0xff] }
  0x88   : > { %v2367_v2 = vcombine.low %v435_v53, %v439_v54 }
  0x89   : > { %1695 = vmatpush1.bf16.msra.mxu0 %v2303_v61  ;;  %1777 = vmatpush1.bf16.msra.mxu1 %v2305_v4  ;;  %v2368_v61 = vcombine.high %v435_v53, %v439_v54  ;;  %v2370_v4 = vcombine.high %v436_v55, %v440_v56  ;;  %v492_v53 = vld [vmem:[%s2811_s19 + $0x498] sm:$0xff]  ;;  %v2417_v56 = vcombine.low %v484_v44, %v488_v45 }
  0x8a   : > { %1696 = vmatprep.subr.bf16.mxu0 %v2312_v62  ;;  %1778 = vmatprep.subr.bf16.mxu1 %v2314_v63  ;;  %v443_v62 = vld [vmem:[%s2811_s19 + $0x310] sm:$0xff]  ;;  %v496_v54 = vld [vmem:[%s2811_s19 + $0x4b8] sm:$0xff] }
  0x8b   : > { %v447_v63 = vld [vmem:[%s2811_s19 + $0x330] sm:$0xff] }
  0x8c   : > { %v2375_v11 = vcombine.low %v443_v62, %v447_v63 }
  0x8d   : > { %1697 = vmatpush1.bf16.msra.mxu0 %v2311_v5  ;;  %1779 = vmatpush1.bf16.msra.mxu1 %v2313_v6  ;;  %v2376_v5 = vcombine.high %v443_v62, %v447_v63  ;;  %v2378_v6 = vcombine.high %v444_v0, %v448_v1  ;;  %v500_v62 = vld [vmem:[%s2811_s19 + $0x4d8] sm:$0xff]  ;;  %v2425_v0 = vcombine.low %v492_v53, %v496_v54 }
  0x8e   : > { %1698 = vmatprep.subr.bf16.mxu0 %v2320_v7  ;;  %1780 = vmatprep.subr.bf16.mxu1 %v2322_v8  ;;  %v451_v7 = vld [vmem:[%s2811_s19 + $0x350] sm:$0xff]  ;;  %v504_v63 = vld [vmem:[%s2811_s19 + $0x4f8] sm:$0xff] }
  0x8f   : > { %v455_v8 = vld [vmem:[%s2811_s19 + $0x370] sm:$0xff] }
  0x90   : > { %v2383_v19 = vcombine.low %v451_v7, %v455_v8 }
  0x91   : > { %1699 = vmatpush1.bf16.msra.mxu0 %v2319_v13  ;;  %1781 = vmatpush1.bf16.msra.mxu1 %v2321_v14  ;;  %v2384_v13 = vcombine.high %v451_v7, %v455_v8  ;;  %v2386_v14 = vcombine.high %v452_v9, %v456_v10  ;;  %v512_v7 = vld [vmem:[%s2811_s19 + $0x538] sm:$0xff] }
  0x92   : > { %1700 = vmatprep.subr.bf16.mxu0 %v2328_v15  ;;  %1782 = vmatprep.subr.bf16.mxu1 %v2330_v16  ;;  %v459_v15 = vld [vmem:[%s2811_s19 + $0x390] sm:$0xff] }
  0x93   : > { %v463_v16 = vld [vmem:[%s2811_s19 + $0x3b0] sm:$0xff] }
  0x94   : > { %v2391_v28 = vcombine.low %v459_v15, %v463_v16 }
  0x95   : > { %1701 = vmatpush1.bf16.msra.mxu0 %v2327_v21  ;;  %1783 = vmatpush1.bf16.msra.mxu1 %v2329_v22  ;;  %v2392_v21 = vcombine.high %v459_v15, %v463_v16  ;;  %v2394_v22 = vcombine.high %v460_v17, %v464_v18 }
  0x96   : > { %1702 = vmatprep.subr.bf16.mxu0 %v2336_v24  ;;  %1784 = vmatprep.subr.bf16.mxu1 %v2338_v25  ;;  %v467_v24 = vld [vmem:[%s2811_s19 + $0x3d0] sm:$0xff] }
  0x97   : > { %v471_v25 = vld [vmem:[%s2811_s19 + $0x3f0] sm:$0xff] }
  0x98   : > { %v2399_v36 = vcombine.low %v467_v24, %v471_v25 }
  0x99   : > { %1703 = vmatpush1.bf16.msra.mxu0 %v2335_v31  ;;  %1785 = vmatpush1.bf16.msra.mxu1 %v2337_v32  ;;  %v2400_v31 = vcombine.high %v467_v24, %v471_v25  ;;  %v2402_v32 = vcombine.high %v468_v26, %v472_v27 }
  0x9a   : > { %1704 = vmatprep.subr.bf16.mxu0 %v2344_v60  ;;  %1786 = vmatprep.subr.bf16.mxu1 %v2346_v33  ;;  %v475_v60 = vld [vmem:[%s2811_s19 + $0x410] sm:$0xff] }
  0x9b   : > { %v479_v33 = vld [vmem:[%s2811_s19 + $0x430] sm:$0xff] }
  0x9c   : > { %v2407_v46 = vcombine.low %v475_v60, %v479_v33 }
  0x9d   : > { %1705 = vmatpush1.bf16.msra.mxu0 %v2343_v39  ;;  %1787 = vmatpush1.bf16.msra.mxu1 %v2345_v41  ;;  %v2408_v39 = vcombine.high %v475_v60, %v479_v33  ;;  %v2410_v41 = vcombine.high %v476_v34, %v480_v35 }
  0x9e   : > { %1706 = vmatprep.subr.bf16.mxu0 %v2352_v42  ;;  %1788 = vmatprep.subr.bf16.mxu1 %v2354_v43  ;;  %v483_v42 = vld [vmem:[%s2811_s19 + $0x450] sm:$0xff] }
  0x9f   : > { %v487_v43 = vld [vmem:[%s2811_s19 + $0x470] sm:$0xff] }
  0xa0   : > { %v2415_v55 = vcombine.low %v483_v42, %v487_v43 }
  0xa1   : > { %1707 = vmatpush1.bf16.msra.mxu0 %v2351_v49  ;;  %1789 = vmatpush1.bf16.msra.mxu1 %v2353_v50  ;;  %v2416_v49 = vcombine.high %v483_v42, %v487_v43  ;;  %v2418_v50 = vcombine.high %v484_v44, %v488_v45 }
  0xa2   : > { %1708 = vmatprep.subr.bf16.mxu0 %v2360_v51  ;;  %1790 = vmatprep.subr.bf16.mxu1 %v2362_v52  ;;  %v491_v51 = vld [vmem:[%s2811_s19 + $0x490] sm:$0xff] }
  0xa3   : > { %v495_v52 = vld [vmem:[%s2811_s19 + $0x4b0] sm:$0xff] }
  0xa5   : > { %1709 = vmatpush1.bf16.msra.mxu0 %v2359_v58  ;;  %1791 = vmatpush1.bf16.msra.mxu1 %v2361_v59  ;;  %v2424_v58 = vcombine.high %v491_v51, %v495_v52  ;;  %v2426_v59 = vcombine.high %v492_v53, %v496_v54 }
  0xa6   : > { %1710 = vmatprep.subr.bf16.mxu0 %v2368_v61  ;;  %1792 = vmatprep.subr.bf16.mxu1 %v2370_v4  ;;  %v499_v61 = vld [vmem:[%s2811_s19 + $0x4d0] sm:$0xff] }
  0xa7   : > { %v503_v4 = vld [vmem:[%s2811_s19 + $0x4f0] sm:$0xff] }
  0xa8   : > { %v2432_v1 = vcombine.high %v499_v61, %v503_v4  ;;  %v2431_v8 = vcombine.low %v499_v61, %v503_v4 }
  0xa9   : > { %1711 = vmatpush1.bf16.msra.mxu0 %v2367_v2  ;;  %1793 = vmatpush1.bf16.msra.mxu1 %v2369_v3  ;;  %v2434_v2 = vcombine.high %v500_v62, %v504_v63  ;;  %v507_v3 = vld [vmem:[%s2811_s19 + $0x510] sm:$0xff] }
  0xaa   : > { %1712 = vmatprep.subr.bf16.mxu0 %v2376_v5  ;;  %1794 = vmatprep.subr.bf16.mxu1 %v2378_v6  ;;  %v511_v5 = vld [vmem:[%s2811_s19 + $0x530] sm:$0xff]  ;;  %v508_v6 = vld [vmem:[%s2811_s19 + $0x518] sm:$0xff] }
  0xab   : > { %v2440_v9 = vcombine.high %v507_v3, %v511_v5  ;;  %v2442_v10 = vcombine.high %v508_v6, %v512_v7  ;;  %v2439_v15 = vcombine.low %v507_v3, %v511_v5  ;;  %v2441_v16 = vcombine.low %v508_v6, %v512_v7  ;;  %v343_v5 = vld [vmem:[#allocation2] sm:$0xff] }
  0xad   : > { %1713 = vmatpush1.bf16.msra.mxu0 %v2375_v11  ;;  %1795 = vmatpush1.bf16.msra.mxu1 %v2377_v12  ;;  %v515_v11 = vld [vmem:[%s2811_s19 + $0x550] sm:$0xff] }
  0xae   : > { %1714 = vmatprep.subr.bf16.mxu0 %v2384_v13  ;;  %1796 = vmatprep.subr.bf16.mxu1 %v2386_v14  ;;  %v519_v12 = vld [vmem:[%s2811_s19 + $0x570] sm:$0xff]  ;;  %v516_v13 = vld [vmem:[%s2811_s19 + $0x558] sm:$0xff] }
  0xaf   : > { %v520_v14 = vld [vmem:[%s2811_s19 + $0x578] sm:$0xff]  ;;  %v2448_v17 = vcombine.high %v515_v11, %v519_v12  ;;  %v2447_v24 = vcombine.low %v515_v11, %v519_v12  ;;  %v2581_v11 = vld [vmem:[%s3207_s4 + $0x10] sm:$0xff] (!%p2467_p6)  }
  0xb0   : > { %v2450_v18 = vcombine.high %v516_v13, %v520_v14  ;;  %v2449_v25 = vcombine.low %v516_v13, %v520_v14  ;;  %v2582_v12 = vld [vmem:[%s3207_s4 + $0x58] sm:$0xff] (!%p2467_p6)   ;;  %v2584_v14 = vld [vmem:[%s3207_s4 + $0x60] sm:$0xff] (!%p2467_p6)  }
  0xb1   : > { %1715 = vmatpush1.bf16.msra.mxu0 %v2383_v19  ;;  %1797 = vmatpush1.bf16.msra.mxu1 %v2385_v20  ;;  %v523_v19 = vld [vmem:[%s2811_s19 + $0x590] sm:$0xff]  ;;  %v2583_v13 = vld [vmem:[%s3207_s4 + $0x18] sm:$0xff] (!%p2467_p6)  }
  0xb2   : > { %1716 = vmatprep.subr.bf16.mxu0 %v2392_v21  ;;  %1798 = vmatprep.subr.bf16.mxu1 %v2394_v22  ;;  %v527_v20 = vld [vmem:[%s2811_s19 + $0x5b0] sm:$0xff]  ;;  %v524_v21 = vld [vmem:[%s2811_s19 + $0x598] sm:$0xff] }
  0xb3   : > { %v528_v22 = vld [vmem:[%s2811_s19 + $0x5b8] sm:$0xff]  ;;  %v2456_v26 = vcombine.high %v523_v19, %v527_v20  ;;  %v2455_v60 = vcombine.low %v523_v19, %v527_v20  ;;  %v2587_v20 = vld [vmem:[%s3207_s4 + $0x28] sm:$0xff] (!%p2467_p6)  }
  0xb4   : > { %v2458_v27 = vcombine.high %v524_v21, %v528_v22  ;;  %v2457_v33 = vcombine.low %v524_v21, %v528_v22 }
  0xb5   : > { %1717 = vmatpush1.bf16.msra.mxu0 %v2391_v28  ;;  %1799 = vmatpush1.bf16.msra.mxu1 %v2393_v29  ;;  %v531_v28 = vld [vmem:[%s2811_s19 + $0x5d0] sm:$0xff] }
  0xb6   : > { %1718 = vmatprep.subr.bf16.mxu0 %v2400_v31  ;;  %1800 = vmatprep.subr.bf16.mxu1 %v2402_v32  ;;  %v535_v29 = vld [vmem:[%s2811_s19 + $0x5f0] sm:$0xff]  ;;  %v532_v31 = vld [vmem:[%s2811_s19 + $0x5d8] sm:$0xff] }
  0xb7   : > { %v536_v32 = vld [vmem:[%s2811_s19 + $0x5f8] sm:$0xff]  ;;  %v2464_v34 = vcombine.high %v531_v28, %v535_v29 }
  0xb8   : > { %v2466_v35 = vcombine.high %v532_v31, %v536_v32 }
  0xb9   : > { %1719 = vmatpush1.bf16.msra.mxu0 %v2399_v36  ;;  %1801 = vmatpush1.bf16.msra.mxu1 %v2401_v37  ;;  %v2463_v36 = vcombine.low %v531_v28, %v535_v29  ;;  %v2465_v37 = vcombine.low %v532_v31, %v536_v32  ;;  %v2591_v29 = vld [vmem:[%s3207_s4 + $0x38] sm:$0xff] (!%p2467_p6)  }
  0xba   : > { %1729 = vmatprep.subr.bf16.mxu0 %v2408_v39  ;;  %1811 = vmatprep.subr.bf16.mxu1 %v2410_v41 }
  0xbc   : > { %1721 = vmatmul.mubr.bf16.vlgmr.msra.gmra.mrb[4].mxu0 %v2906_v23  ;;  %1803 = vmatmul.mubr.bf16.vlgmr.msra.gmra.mrb[4].mxu1 %v2906_v23  ;;  %v2423_v23 = vcombine.low %v491_v51, %v495_v52 }
  0xbd   : > { %1730 = vmatpush1.bf16.msra.mxu0 %v2407_v46  ;;  %1812 = vmatpush1.bf16.msra.mxu1 %v2409_v47 }
  0xbe   : > { %1731 = vmatprep.subr.bf16.mxu0 %v2416_v49  ;;  %1813 = vmatprep.subr.bf16.mxu1 %v2418_v50 }
  0xbf   : > { %1761 = vmatprep.mubr.bf16.mxu0 %v2734_v40  ;;  %1843 = vmatprep.mubr.bf16.mxu1 %v2734_v40  ;;  %v2433_v40 = vcombine.low %v500_v62, %v504_v63 }
  0xc1   : > { %1732 = vmatpush1.bf16.msra.mxu0 %v2415_v55  ;;  %1814 = vmatpush1.bf16.msra.mxu1 %v2417_v56 }
  0xc2   : > { %1733 = vmatprep.subr.bf16.mxu0 %v2424_v58  ;;  %1815 = vmatprep.subr.bf16.mxu1 %v2426_v59 }
  0xc5   : > { %1734 = vmatpush1.bf16.msra.mxu0 %v2423_v23  ;;  %1816 = vmatpush1.bf16.msra.mxu1 %v2425_v0 }
  0xc6   : > { %1735 = vmatprep.subr.bf16.mxu0 %v2432_v1  ;;  %1817 = vmatprep.subr.bf16.mxu1 %v2434_v2 }
  0xc9   : > { %1736 = vmatpush1.bf16.msra.mxu0 %v2431_v8  ;;  %1818 = vmatpush1.bf16.msra.mxu1 %v2433_v40  ;;  %v2576_v8 = vld [vmem:[%s3207_s4 + $0x40] sm:$0xff] (!%p2467_p6)  }
  0xca   : > { %1737 = vmatprep.subr.bf16.mxu0 %v2440_v9  ;;  %1819 = vmatprep.subr.bf16.mxu1 %v2442_v10  ;;  %v2577_v40 = vld [vmem:[%s3207_s4] sm:$0xff] (!%p2467_p6)   ;;  %v2579_v9 = vld [vmem:[%s3207_s4 + $0x8] sm:$0xff] (!%p2467_p6)   ;;  %v2580_v10 = vld [vmem:[%s3207_s4 + $0x50] sm:$0xff] (!%p2467_p6)  }
  0xcd   : > { %1738 = vmatpush1.bf16.msra.mxu0 %v2439_v15  ;;  %1820 = vmatpush1.bf16.msra.mxu1 %v2441_v16  ;;  %v2585_v15 = vld [vmem:[%s3207_s4 + $0x20] sm:$0xff] (!%p2467_p6)   ;;  %v2586_v16 = vld [vmem:[%s3207_s4 + $0x68] sm:$0xff] (!%p2467_p6)  }
  0xce   : > { %1739 = vmatprep.subr.bf16.mxu0 %v2448_v17  ;;  %1821 = vmatprep.subr.bf16.mxu1 %v2450_v18  ;;  %v1917_v18 = vld [vmem:[%s3205_s2] sm:$0xff] (!%p2467_p6) }
  0xd1   : > { %1740 = vmatpush1.bf16.msra.mxu0 %v2447_v24  ;;  %1822 = vmatpush1.bf16.msra.mxu1 %v2449_v25  ;;  %v2588_v24 = vld [vmem:[%s3207_s4 + $0x70] sm:$0xff] (!%p2467_p6)  }
  0xd2   : > { %1741 = vmatprep.subr.bf16.mxu0 %v2456_v26  ;;  %1823 = vmatprep.subr.bf16.mxu1 %v2458_v27  ;;  %v2589_v26 = vld [vmem:[%s3207_s4 + $0x30] sm:$0xff] (!%p2467_p6)   ;;  %v2590_v27 = vld [vmem:[%s3207_s4 + $0x78] sm:$0xff] (!%p2467_p6)  }
  0xd5   : > { %1742 = vmatpush1.bf16.msra.mxu0 %v2455_v60  ;;  %1824 = vmatpush1.bf16.msra.mxu1 %v2457_v33 }
  0xd6   : > { %1743 = vmatprep.subr.bf16.mxu0 %v2464_v34  ;;  %1825 = vmatprep.subr.bf16.mxu1 %v2466_v35 }
  0xd9   : > { %1744 = vmatpush1.bf16.msra.mxu0 %v2463_v36  ;;  %1826 = vmatpush1.bf16.msra.mxu1 %v2465_v37 }
  0xda   : > { %2498 = vmatprep.subr.bf16.mxu0 (!%p2467_p6), %v2576_v8 }
  0xdc   : > { %1762 = vmatmul.mubr.bf16.vlgmr.msra.gmra.mrb[4].mxu0 %v2946_v30  ;;  %1844 = vmatmul.mubr.bf16.vlgmr.msra.gmra.mrb[4].mxu1 %v2946_v30 }
  0xdd   : > { %2499 = vmatpush3.bf16.msra.mxu0 (!%p2467_p6), %v2577_v40 }
 0x14f   : > { %v1599_v39 = vpop.f32.mrb[0].mxu0  ;;  %v1681_v41 = vpop.f32.mrb[0].mxu1 }
 0x150   : > { %v1601_v42 = vpop.f32.mrb[1].mxu0  ;;  %v1683_v44 = vpop.f32.mrb[1].mxu1 }
 0x151   : > { %v1860_v43 = vcombine.low %v1599_v39, %v1601_v42  ;;  %v1603_v45 = vpop.f32.mrb[2].mxu0  ;;  %v1861_v46 = vcombine.low %v1681_v41, %v1683_v44  ;;  %v1685_v47 = vpop.f32.mrb[2].mxu1  ;;  %v1945_v41 = vld [vmem:[%s3206_s3] sm:$0x3] (!%p2467_p6) }
 0x152   : > { %v1604_v49 = vpop.f32.mrb[3].mxu0  ;;  %v1686_v51 = vpop.f32.mrb[3].mxu1 }
 0x153   : > { %v1870_v50 = vrot.slane %v1860_v43, %v2846_v57  ;;  %v1877_v52 = vrot.slane %v1861_v46, %v2846_v57  ;;  %v1964_v49 = vsub.s32 (!%p2467_p6), 1, %v2839_v48 }
 0x155   : > { %v1892_v53 = vcombine.low %v1870_v50, %v1877_v52  ;;  %v1960_v50 = vsub.s32 (!%p2467_p6), 0, %v2839_v48 }
 0x157   : > { %v1900_v2 = vrot.slane %v1892_v53, %v2846_v57 }
 0x1af   : > { %v1763_v54 = vpop.f32.mrb[4].mxu0  ;;  %v1845_v55 = vpop.f32.mrb[4].mxu1 }
 0x1b0   : > { %v1765_v56 = vpop.f32.mrb[5].mxu0  ;;  %v1847_v30 = vpop.f32.mrb[5].mxu1 }
 0x1b1   : > { %v1862_v58 = vcombine.low %v1763_v54, %v1765_v56  ;;  %v1767_v59 = vpop.f32.mrb[6].mxu0  ;;  %v1863_v61 = vcombine.low %v1845_v55, %v1847_v30  ;;  %v1849_v4 = vpop.f32.mrb[6].mxu1  ;;  %v2002_v30 = vld [vmem:[%s3208_s5] sm:$0x1] (!%p2467_p6) }
 0x1b2   : > { %v1768_v62 = vpop.f32.mrb[7].mxu0  ;;  %v1850_v23 = vpop.f32.mrb[7].mxu1 }
 0x1b3   : > { %v1884_v63 = vrot.slane %v1862_v58, %v2846_v57  ;;  %v1891_v0 = vrot.slane %v1863_v61, %v2846_v57 }
 0x1b5   : > { %v1893_v1 = vcombine.low %v1884_v63, %v1891_v0 }
 0x1b7   : > { %v1907_v3 = vrot.slane %v1893_v1, %v2846_v57  ;;  %1915 = sbr.rel (%p2467_p6) target bundleno = 838 (0x346), region = 52  ;;  %v2578_v57 = vld [vmem:[%s3207_s4 + $0x48] sm:$0xff] (!%p2467_p6)  }
 0x1b8   : > { %2500 = vmatprep.subr.bf16.mxu0 (!%p2467_p6), %v2578_v57 }
 0x1b9   : > { %v1908_v6 = vcombine.low %v1900_v2, %v1907_v3  ;;  %2501 = vmatpush3.bf16.msra.mxu0 (!%p2467_p6), %v2579_v9 }
 0x1ba   : > { %2502 = vmatprep.subr.bf16.mxu0 (!%p2467_p6), %v2580_v10 }
 0x1bb   : > { %v1910_v7 = vadd.f32 %v1908_v6, %v343_v5 }
 0x1bd   : > { %1911 = vst [vmem:[#allocation2] sm:$0xff] %v1910_v7  ;;  %2503 = vmatpush3.bf16.msra.mxu0 (!%p2467_p6), %v2581_v11 }
 0x1be   : > { %2504 = vmatprep.subr.bf16.mxu0 %v2582_v12 }
 0x1c1   : > { %2505 = vmatpush3.bf16.msra.mxu0 %v2583_v13 }
 0x1c2   : > { %2506 = vmatprep.subr.bf16.mxu0 %v2584_v14 }
 0x1c4   : > { %v1916_v17 = vld [vmem:[#allocation2] sm:$0xff] }
 0x1c5   : > { %v1918_v19 = vadd.f32 %v1917_v18, %v1916_v17  ;;  %2507 = vmatpush3.bf16.msra.mxu0 %v2585_v15 }
 0x1c6   : > { %2508 = vmatprep.subr.bf16.mxu0 %v2586_v16 }
 0x1c7   : > { %v2468_v21 = vmul.f32 -1.442695, %v1918_v19  ;;  %v1926_v22 = vrot.slane %v1918_v19, 2  ;;  %v1937_v28 = vrot.slane %v1918_v19, 6  ;;  %v1934_v31 = vrot.slane %v1918_v19, 4 }
 0x1c9   : > { %2592 = vpow2.f32 %v2468_v21  ;;  %v2469_v25 = vmul.f32 -1.442695, %v1926_v22  ;;  %2509 = vmatpush3.bf16.msra.mxu0 %v2587_v20  ;;  %v2470_v32 = vmul.f32 -1.442695, %v1937_v28 }
 0x1ca   : > { %2510 = vmatprep.subr.bf16.mxu0 %v2588_v24 }
 0x1cb   : > { %2594 = vpow2.f32 %v2469_v25 }
 0x1cc   : > { %2596 = vtanh.f32 %v1934_v31 }
 0x1cd   : > { %2511 = vmatpush3.bf16.msra.mxu0 %v2589_v26  ;;  %2598 = vpow2.f32 %v2470_v32 }
 0x1ce   : > { %2512 = vmatprep.subr.bf16.mxu0 %v2590_v27 }
 0x1d1   : > { %2513 = vmatpush3.bf16.msra.mxu0 %v2591_v29 }
 0x1d3   : > { %v2593_v60 = vpop.eup %2592 }
 0x1d4   : > { %v1922_v33 = vadd.f32 1.0, %v2593_v60 }
 0x1d5   : > { %v2595_v34 = vpop.eup %2594 }
 0x1d6   : > { %2600 = vrcp.f32 %v1922_v33  ;;  %v1931_v35 = vadd.f32 1.0, %v2595_v34  ;;  %v2597_v36 = vpop.eup %2596 }
 0x1d7   : > { %v2599_v37 = vpop.eup %2598 }
 0x1d8   : > { %2602 = vrcp.f32 %v1931_v35  ;;  %v1942_v42 = vadd.f32 1.0, %v2599_v37 }
 0x1da   : > { %2604 = vrcp.f32 %v1942_v42 }
 0x1e0   : > { %v2601_v39 = vpop.eup %2600 }
 0x1e1   : > { %v1947_v43 = vmul.f32 %v2601_v39, %v2597_v36 }
 0x1e2   : > { %v2603_v44 = vpop.eup %2602 }
 0x1e3   : > { %v1946_v45 = vmul.f32 %v2603_v44, %v1945_v41 }
 0x1e4   : > { %v2605_v47 = vpop.eup %2604 }
 0x1e5   : > { %v1948_v46 = vadd.f32 %v1947_v43, %v1946_v45 }
 0x1e7   : > { %2606 = vtanh.f32 %v1948_v46  ;;  %1955 = vst.msk [vmem:[#allocation8] sm:$0x3] %vm1953_vm0, %v1948_v46 }
 0x1f1   : > { %v2607_v51 = vpop.eup %2606 }
 0x1f2   : > { %v1950_v52 = vmul.f32 %v2607_v51, %v2605_v47 }
 0x1f4   : > { %1956 = vst.msk [vmem:[#allocation7] sm:$0x3] %vm1953_vm0, %v1950_v52  ;;  %v1965_v53 = vrot.slane %v1950_v52, %v1964_v49  ;;  %v1961_v54 = vrot.slane %v1950_v52, %v1960_v50 }
 0x1f6   : > { %v1969_v55 = vpack.c.bf16 %v1965_v53, %v1965_v53  ;;  %v1968_v56 = vpack.c.bf16 %v1961_v54, %v1961_v54 }
 0x1f8   : > { %2131 = vmatprep.mubr.bf16.mxu0 %v1969_v55 }
 0x1f9   : > { %2132 = vmatmul.mubr.bf16.vlgmr.msra.gmra.mrb[0].mxu0 %v1968_v56 }
 0x2cc   : > { %v2514_v58 = vpop.f32.mrb[0].mxu0 }
 0x2cd   : > { %v2515_v38 = vpop.f32.mrb[1].mxu0 }
 0x2ce   : > { %v2516_v59 = vadd.f32 %v2515_v38, %v2514_v58  ;;  %v2517_v61 = vpop.f32.mrb[2].mxu0 }
 0x2cf   : > { %v2518_v4 = vpop.f32.mrb[3].mxu0 }
 0x2d0   : > { %v2134_v48 = vadd.f32 %v2516_v59, %v2002_v30 }
 0x2d2   : > { %2140 = vst.msk [vmem:[#allocation3] sm:$0x1] %vm2139_vm1, %v2134_v48  ;;  %2142 = vrot.lane.b32.xlu0 %v2134_v48, %s2735_s22 }
 0x344   : > { %v2143_v62 = vpop.permute.xlu0 %2142 }
 0x345   : > { %2146 = vst.msk [vmem:[#allocation5] sm:$0x1] %vm2145_vm2, %v2143_v62 }
 0x346 PF: > { %p2552_p7 = scmp.eq.s32.totalorder %s2796_s10, 3  ;;  %s2736_s23 = smov [#allocation5]  }
 0x347   : > { %s2165_s24 = sshll.u32 %s2736_s23, 4  ;;  %s2737_s25 = smov [#allocation3]   ;;  %s2166_s24 = int_to_ptr.vmem [resolvable:$true] %s2165_s24 }
 0x348   : > { %s2154_s26 = sshll.u32 %s2737_s25, 4  ;;  %s2608_s27 = scalar_lea.vmem %s2166_s24, 16  ;;  %s2155_s26 = int_to_ptr.vmem [resolvable:$true] %s2154_s26 }
 0x349   : > { %p2609_p8 = scmp.ne.s32.totalorder %s2166_s24, %s2608_s27  ;;  %s2614_s28 = scalar_lea.vmem %s2166_s24, 32 }
 0x34a   : > { %p2615_p11 = scmp.lt.s32.totalorder %s2166_s24, %s2166_s24  ;;  %p2616_p12 = scmp.lt.s32.totalorder %s2614_s28, %s2608_s27 }
 0x34b   : > { %p2610_p9 = pnand %p2609_p8, %p2552_p7 }
 0x34c   : > { %p2617_p13 = por %p2616_p12, %p2615_p11 }
 0x34d   : > { %p2611_p10 = pneg %p2610_p9 }
 0x34f   : > { %p2618_p0 = pnand %p2617_p13, %p2611_p10 }
 0x351   : > { %2621 = shalt.err (!%p2618_p0)
}
 0x352   : > { %s2622_s12 = scalar_lea.hbm %s3210_s7, 16 }
 0x353   : > { %p2623_p1 = scmp.ne.s32.totalorder %s3210_s7, %s2622_s12  ;;  %p2628_p4 = scmp.lt.u32.totalorder %s2622_s12, %s3210_s7 }
 0x355   : > { %p2624_p2 = pnand %p2623_p1, %p2552_p7 }
 0x357   : > { %p2625_p3 = pneg %p2624_p2 }
 0x359   : > { %p2630_p5 = pnand %p2628_p4, %p2625_p3 }
 0x35b   : > { %2633 = shalt.err (!%p2630_p5)
}
 0x35c   : > { %2539 = dma.vmem_to_hbm [thread:$0]  (%p2552_p7), %s2166_s24, 16, %s3210_s7, [#allocation6]  }
 0x35d   : > { %s2634_s19 = scalar_lea.vmem %s2155_s26, 16  ;;  %s2640_s20 = scalar_lea.vmem %s2155_s26, 32 }
 0x35e   : > { %p2635_p6 = scmp.ne.s32.totalorder %s2155_s26, %s2634_s19  ;;  %p2641_p10 = scmp.lt.s32.totalorder %s2155_s26, %s2155_s26 }
 0x35f   : > { %p2642_p11 = scmp.lt.s32.totalorder %s2640_s20, %s2634_s19 }
 0x360   : > { %p2636_p8 = pnand %p2635_p6, %p2552_p7 }
 0x361   : > { %p2643_p12 = por %p2642_p11, %p2641_p10 }
 0x362   : > { %p2637_p9 = pneg %p2636_p8 }
 0x364   : > { %p2644_p13 = pnand %p2643_p12, %p2637_p9 }
 0x366   : > { %2647 = shalt.err (!%p2644_p13)
}
 0x367   : > { %s2648_s23 = scalar_lea.hbm %s3209_s6, 16 }
 0x368   : > { %p2649_p0 = scmp.ne.s32.totalorder %s3209_s6, %s2648_s23  ;;  %p2654_p3 = scmp.lt.u32.totalorder %s2648_s23, %s3209_s6 }
 0x36a   : > { %p2650_p1 = pnand %p2649_p0, %p2552_p7 }
 0x36c   : > { %p2651_p2 = pneg %p2650_p1 }
 0x36e   : > { %p2656_p4 = pnand %p2654_p3, %p2651_p2 }
 0x370   : > { %2659 = shalt.err (!%p2656_p4)
}
 0x371   : > { %2537 = dma.vmem_to_hbm [thread:$0]  (%p2552_p7), %s2155_s26, 16, %s3209_s6, [#allocation4]  }
 0x372   : > { %s2738_s12 = smov [#allocation7]   ;;  %s2739_s14 = smov [#allocation8]  }
 0x373   : > { %s2176_s13 = sshll.u32 %s2738_s12, 4  ;;  %s2187_s15 = sshll.u32 %s2739_s14, 4  ;;  %s2177_s13 = int_to_ptr.vmem [resolvable:$true] %s2176_s13  ;;  %s2188_s15 = int_to_ptr.vmem [resolvable:$true] %s2187_s15 }
 0x374   : > { %s2660_s16 = scalar_lea.vmem %s2177_s13, 32  ;;  %p2667_p9 = scmp.lt.s32.totalorder %s2177_s13, %s2177_s13 }
 0x375   : > { %p2661_p5 = scmp.ne.s32.totalorder %s2177_s13, %s2660_s16  ;;  %p2668_p10 = scmp.lt.s32.totalorder %s2660_s16, %s2660_s16 }
 0x377   : > { %p2662_p6 = pnand %p2661_p5, %p2552_p7  ;;  %p2669_p11 = por %p2668_p10, %p2667_p9 }
 0x379   : > { %p2663_p8 = pneg %p2662_p6 }
 0x37b   : > { %p2670_p12 = pnand %p2669_p11, %p2663_p8 }
 0x37d   : > { %2673 = shalt.err (!%p2670_p12)
}
 0x37e   : > { %s2674_s26 = scalar_lea.hbm %s3211_s8, 32 }
 0x37f   : > { %p2675_p13 = scmp.ne.s32.totalorder %s3211_s8, %s2674_s26  ;;  %p2680_p2 = scmp.lt.u32.totalorder %s2674_s26, %s3211_s8 }
 0x381   : > { %p2676_p0 = pnand %p2675_p13, %p2552_p7 }
 0x383   : > { %p2677_p1 = pneg %p2676_p0 }
 0x385   : > { %p2682_p3 = pnand %p2680_p2, %p2677_p1 }
 0x387   : > { %2685 = shalt.err (!%p2682_p3)
}
 0x388   : > { %2541 = dma.vmem_to_hbm [thread:$0]  (%p2552_p7), %s2177_s13, 32, %s3211_s8, [#allocation6]  }
 0x389   : > { %s2686_s27 = scalar_lea.vmem %s2188_s15, 32  ;;  %p2693_p8 = scmp.lt.s32.totalorder %s2188_s15, %s2188_s15 }
 0x38a   : > { %p2687_p4 = scmp.ne.s32.totalorder %s2188_s15, %s2686_s27  ;;  %p2694_p9 = scmp.lt.s32.totalorder %s2686_s27, %s2686_s27 }
 0x38c   : > { %p2688_p5 = pnand %p2687_p4, %p2552_p7  ;;  %p2695_p10 = por %p2694_p9, %p2693_p8 }
 0x38e   : > { %p2689_p6 = pneg %p2688_p5 }
 0x390   : > { %p2696_p11 = pnand %p2695_p10, %p2689_p6 }
 0x392   : > { %2699 = shalt.err (!%p2696_p11)
}
 0x393   : > { %s2700_s29 = scalar_lea.hbm %s3212_s9, 32 }
 0x394   : > { %p2701_p12 = scmp.ne.s32.totalorder %s3212_s9, %s2700_s29  ;;  %p2706_p1 = scmp.lt.u32.totalorder %s2700_s29, %s3212_s9 }
 0x396   : > { %p2702_p13 = pnand %p2701_p12, %p2552_p7 }
 0x398   : > { %p2703_p0 = pneg %p2702_p13 }
 0x39a   : > { %p2708_p2 = pnand %p2706_p1, %p2703_p0 }
 0x39c   : > { %2711 = shalt.err (!%p2708_p2)
}
 0x39d   : > { %2543 = dma.vmem_to_hbm [thread:$0]  (%p2552_p7), %s2188_s15, 32, %s3212_s9, [#allocation9]  }
 0x39e   : > { %2717 = dma.done.wait (%p2552_p7), [#allocation4], 16  }
 0x39f   : > { %2719 = vsyncadd (%p2552_p7), [#allocation4], 4294967280 }
 0x3a0   : > { %2721 = dma.done.wait (%p2552_p7), [#allocation6], 48  }
 0x3a1   : > { %2723 = vsyncadd (%p2552_p7), [#allocation6], 4294967248 }
 0x3a2   : > { %2725 = dma.done.wait (%p2552_p7), [#allocation9], 32  }
 0x3a3   : > { %2727 = vsyncadd (%p2552_p7), [#allocation9], 4294967264 }
 0x3a4 PF: > { %s23_s30 = sadd.s32 1, %s2730_s30  }
 0x3a5   : > { %p20_p3 = scmp.ge.s32.totalorder %s23_s30, 6  }
 0x3a7   :  { %22 = sbr.rel (!%p20_p3) target bundleno = 3 (0x3), region = 106 }
 0x3ae   :  { %2212 = vsyncpa [#allocation4], 1 }
 0x3af   :  { %2214 = vsyncpa [#allocation4 + $0x1], 1 }
 0x3b0   :  { %2215 = vsyncpa [#allocation6], 1 }
 0x3b1   :  { %2216 = vsyncpa [#allocation9], 1 }

</bundles_post_ra>
